<compile_context>
chip_gen: v7x
topology: tpu7x:2x2x1
jax: 0.10.0
libtpu: 0.0.40
codegen_flags: <defaults>
</compile_context>

<pallas_src>
from functools import partial

import jax
import jax.numpy as jnp
from jax.experimental import pallas as pl
from jax.experimental.pallas import tpu as pltpu


# ------------------------- trace-time weight packing ------------------------ #

def _conv_band_mats(w_oihw, w_in):
    """Pack a 3x3 'valid' conv (torch OIHW weights, cross-correlation, no bias)
    into KH banded matmul weights.

    Returns M of shape (KH, w_in*Ci, Wo*O) with
      M[di, (j+dj)*Ci + c, j*O + o] = w[o, c, di, dj]
    so that, for activations laid out as X[h, w*Ci + c] = x[c, h, w],
      Y = sum_di  X[di:di+Ho, :] @ M[di]
    satisfies Y[i, j*O + o] = conv_out[o, i, j].
    """
    O, Ci, KH, KW = w_oihw.shape
    Wo = w_in - KW + 1
    mats = []
    for di in range(KH):
        t = jnp.zeros((w_in, Ci, Wo, O), jnp.float32)
        for dj in range(KW):
            ind = jnp.eye(w_in, Wo, k=-dj, dtype=jnp.float32)   # [j+dj, j] = 1
            w_co = jnp.transpose(w_oihw[:, :, di, dj])           # (Ci, O)
            t = t + ind[:, None, :, None] * w_co[None, :, None, :]
        mats.append(t.reshape(w_in * Ci, Wo * O))
    return jnp.stack(mats, axis=0)


def _rowpool_mat(h):
    """(h//2, h) matrix averaging row pairs (0.5 factor; floor on odd h)."""
    hp = h // 2
    idx = jnp.arange(hp)
    r = jnp.zeros((hp, h), jnp.float32)
    r = r.at[idx, 2 * idx].set(0.5)
    r = r.at[idx, 2 * idx + 1].set(0.5)
    return r


def _colpool_mat(w, c):
    """(w*c, (w//2)*c) matrix averaging column pairs per channel (0.5 factor)."""
    wp = w // 2
    jp = jnp.arange(wp)
    ind = jnp.zeros((w, wp), jnp.float32)
    ind = ind.at[2 * jp, jp].set(1.0)
    ind = ind.at[2 * jp + 1, jp].set(1.0)
    p = 0.5 * ind[:, None, :, None] * jnp.eye(c, dtype=jnp.float32)[None, :, None, :]
    return p.reshape(w * c, wp * c)


def pack_params(params):
    """Fold torch-layout params into bf16 matmul operands used by the kernel."""
    m1 = _conv_band_mats(params["w1"], 64)        # (3, 128, 496)
    p1 = _colpool_mat(62, 8)                      # (496, 248)
    # Split layer-1 output columns at conv-col 32 (lane 256).  Pool pairs
    # (2jp, 2jp+1) never straddle the split, so p1 is block-diagonal there.
    packed = {
        "m1a": m1[:, :, :256],                    # (3, 128, 256) -> pooled cols 0..15
        "m1b": m1[:, :, 256:],                    # (3, 128, 240) -> pooled cols 16..30
        "r1": _rowpool_mat(62),                   # (31, 62)
        "p1a": p1[:256, :128],                    # (256, 128)
        "p1b": p1[256:, 128:],                    # (240, 120)
        "m2": _conv_band_mats(params["w2"], 31),  # (3, 248, 348)
        "r2": _rowpool_mat(29),                   # (14, 29)
        "p2": _colpool_mat(29, 12),               # (348, 168)
        "m3": _conv_band_mats(params["w3"], 14),  # (3, 168, 144)
        "r3": _rowpool_mat(12),                   # (6, 12)
    }
    # Layer-3 col-pool (0.5 factor) + torch CHW flatten + fc1 folded into
    # per-row blocks:  w1fc[ip, j*12 + c, m] = 0.5 * fc1[m, c*36 + ip*6 + j//2]
    fc1r = params["fc1"].reshape(32, 12, 6, 6)                   # [m, c, ip, jp]
    t = fc1r[:, :, :, jnp.arange(12) // 2]                       # [m, c, ip, j]
    packed["w1fc"] = 0.5 * jnp.transpose(t, (2, 3, 1, 0)).reshape(6, 144, 32)
    # fc2 (1, 32) -> (32, 128) zero-padded so the final store is lane-dense.
    packed["w2fc"] = jnp.zeros((32, 128), jnp.float32).at[:, 0].set(params["fc2"][0, :])
    # All matmul operands are bf16 (MXU-native on every generation); pooling
    # coefficients (0.5) are exact in bf16.  Accumulation stays f32 in-kernel.
    return {k: v.astype(jnp.bfloat16) for k, v in packed.items()}


# ------------------------------ fused kernel ------------------------------- #

def _smartdoor_kernel(x_ref, m1a_ref, m1b_ref, r1_ref, p1a_ref, p1b_ref,
                      m2_ref, r2_ref, p2_ref, m3_ref, r3_ref, w1fc_ref, w2_ref,
                      o_ref, a1_ref, a2_ref):
    f32, bf16 = jnp.float32, jnp.bfloat16
    B = x_ref.shape[0]                           # images per grid step (static)

    def mm(a, b):                                # bf16 x bf16 -> f32 MXU matmul
        return jnp.dot(a, b, preferred_element_type=f32)

    def relu_bf16(v):                            # ReLU in f32, cast only for the MXU
        return jnp.maximum(v, 0.0).astype(bf16)

    for b in range(B):                           # Python-unrolled over the block
        slot = b & 1                             # 2-slot scratches -> 2-way interleave

        # ---- layer 1: conv3x3(2->8) + ReLU + avgpool 2x2, split in 2 column halves
        def conv1_half(m_ref, p_ref):
            acc = mm(x_ref[b, 0:62, :], m_ref[0])
            acc = acc + mm(x_ref[b, 1:63, :], m_ref[1])
            acc = acc + mm(x_ref[b, 2:64, :], m_ref[2])          # (62, 256|240) f32
            t = mm(r1_ref[...], relu_bf16(acc))                  # pool rows -> (31, .)
            return mm(t.astype(bf16), p_ref[...])                # pool cols (f32)

        a1_ref[slot, :, 0:128] = conv1_half(m1a_ref, p1a_ref).astype(bf16)
        a1_ref[slot, :, 128:248] = conv1_half(m1b_ref, p1b_ref).astype(bf16)

        # ---- layer 2: conv3x3(8->12) + ReLU + avgpool 2x2
        acc = mm(a1_ref[slot, 0:29, :], m2_ref[0])
        acc = acc + mm(a1_ref[slot, 1:30, :], m2_ref[1])
        acc = acc + mm(a1_ref[slot, 2:31, :], m2_ref[2])         # (29, 348) f32
        t = mm(r2_ref[...], relu_bf16(acc))                      # (14, 348)
        a2_ref[slot] = mm(t.astype(bf16), p2_ref[...]).astype(bf16)   # (14, 168)

        # ---- layer 3: conv3x3(12->12) + ReLU + row-pool (col-pool folded into fc1)
        acc = mm(a2_ref[slot, 0:12, :], m3_ref[0])
        acc = acc + mm(a2_ref[slot, 1:13, :], m3_ref[1])
        acc = acc + mm(a2_ref[slot, 2:14, :], m3_ref[2])         # (12, 144) f32
        rp3 = mm(r3_ref[...], relu_bf16(acc)).astype(bf16)       # (6, 144)

        # TODO(synk): Dropout2d(0.5) is identity in eval mode; training-mode
        # channel dropout (with 1/(1-p) rescale) is not implemented here.

        # ---- col-pool + flatten(CHW) + fc1 (folded into w1fc) + ReLU
        h = mm(rp3[0:1, :], w1fc_ref[0])
        for ip in range(1, 6):
            h = h + mm(rp3[ip:ip + 1, :], w1fc_ref[ip])          # (1, 32) f32
        hb = relu_bf16(h)

        # ---- fc2 (zero-padded to 128 lanes) + ReLU; lane-dense final store
        o_ref[b] = jnp.maximum(mm(hb, w2_ref[...]), 0.0)         # (1, 128)


# ------------------------------ model forward ------------------------------ #

def init_params(key, linear_size=32, n_channels_in=2, n_channels_out=1):
    k1, k2, k3, k4, k5 = jax.random.split(key, 5)
    scale = 0.1
    return {
        # torch Conv2d weight layout: (out_ch, in_ch, kh, kw)
        "w1": scale * jax.random.normal(k1, (8, n_channels_in, 3, 3), jnp.float32),
        "w2": scale * jax.random.normal(k2, (12, 8, 3, 3), jnp.float32),
        "w3": scale * jax.random.normal(k3, (12, 12, 3, 3), jnp.float32),
        # torch Linear weight layout: (out_features, in_features)
        "fc1": scale * jax.random.normal(k4, (linear_size, 432), jnp.float32),
        "fc2": scale * jax.random.normal(k5, (n_channels_out, linear_size), jnp.float32),
    }


_WEIGHT_NAMES = ("m1a", "m1b", "r1", "p1a", "p1b",
                 "m2", "r2", "p2", "m3", "r3", "w1fc", "w2fc")


@partial(jax.jit, static_argnames=("block_b",))
def smart_door_forward(x_nchw, packed, block_b=8):
    n, cin, h, w = x_nchw.shape
    assert (cin, h, w) == (2, 64, 64), "SmartDoorClassifier expects (N, 2, 64, 64)"

    # NCHW -> lane-dense bf16 (N, H, W*C) layout; one fused wrapper-side op.
    # (If the producer of x can emit this layout directly, do that instead.)
    x2d = jnp.transpose(x_nchw, (0, 2, 3, 1)).reshape(n, h, w * cin).astype(jnp.bfloat16)

    # Batch block: amortize per-grid-step overhead, but keep grid >= 2 whenever
    # N >= 2 so both v7x TensorCores get work (dimension_semantics "parallel").
    bb = 1 if n < 2 else max(1, min(block_b, n // 2))
    n_pad = -(-n // bb) * bb
    if n_pad != n:
        x2d = jnp.pad(x2d, ((0, n_pad - n), (0, 0), (0, 0)))
    grid = (n_pad // bb,)

    weights = [packed[k] for k in _WEIGHT_NAMES]

    def const_spec(arr):
        nd = arr.ndim
        return pl.BlockSpec(arr.shape, lambda i, _nd=nd: (0,) * _nd)

    # Advisory cost estimate (band-matmul formulation) so XLA schedules sensibly.
    macs_per_img = (3 * 62 * 128 * 496 + 31 * 62 * 496 + 31 * 496 * 248
                    + 3 * 29 * 248 * 348 + 14 * 29 * 348 + 14 * 348 * 168
                    + 3 * 12 * 168 * 144 + 6 * 12 * 144 + 6 * 144 * 32 + 32 * 128)
    bytes_accessed = (x2d.size * 2 + n_pad * 128 * 4
                      + sum(int(a.size) * 2 for a in weights))

    # NOTE: weights use constant index maps so they are DMA'd once and stay
    # resident; total bf16 footprint (~3 MiB double-buffered) is far below the
    # scoped-VMEM default on v5e/v6e/v7x, so no Buffered(1)/vmem_limit tweaks
    # are needed even with block_b up to 32.
    out = pl.pallas_call(
        _smartdoor_kernel,
        out_shape=jax.ShapeDtypeStruct((n_pad, 1, 128), jnp.float32),
        grid=grid,
        in_specs=[pl.BlockSpec((bb, 64, 128), lambda i: (i, 0, 0))]
                 + [const_spec(a) for a in weights],
        out_specs=pl.BlockSpec((bb, 1, 128), lambda i: (i, 0, 0)),
        scratch_shapes=[pltpu.VMEM((2, 31, 248), jnp.bfloat16),   # layer-2 input (2 slots)
                        pltpu.VMEM((2, 14, 168), jnp.bfloat16)],  # layer-3 input (2 slots)
        compiler_params=pltpu.CompilerParams(
            dimension_semantics=("parallel",)),
        cost_estimate=pl.CostEstimate(
            flops=2 * macs_per_img * n_pad,
            transcendentals=0,
            bytes_accessed=int(bytes_accessed)),
    )(x2d, *weights)

    return out[:n, 0, :1]                                         # (N, 1)


# ------------------------- pure-JAX reference check ------------------------ #

def _ref_forward(x_nchw, params):
    def conv(x, w):
        return jax.lax.conv_general_dilated(
            x, w, (1, 1), "VALID",
            dimension_numbers=("NCHW", "OIHW", "NCHW"))

    def pool(x):
        s = jax.lax.reduce_window(x, 0.0, jax.lax.add,
                                  (1, 1, 2, 2), (1, 1, 2, 2), "VALID")
        return s / 4.0

    y = jnp.maximum(conv(x_nchw, params["w1"]), 0.0); y = pool(y)
    y = jnp.maximum(conv(y, params["w2"]), 0.0); y = pool(y)
    y = jnp.maximum(conv(y, params["w3"]), 0.0); y = pool(y)
    y = y.reshape(y.shape[0], -1)
    y = jnp.maximum(y @ params["fc1"].T, 0.0)
    y = jnp.maximum(y @ params["fc2"].T, 0.0)
    return y


if __name__ == "__main__":
    key = jax.random.PRNGKey(0)
    kx, kp = jax.random.split(key)

    # batch=2, n_channels_in=2, 64x64 spatial (required so flatten size == 432).
    x = jax.random.normal(kx, (2, 2, 64, 64), jnp.float32)
    params = init_params(kp)
    packed = pack_params(params)

    out = jax.block_until_ready(smart_door_forward(x, packed))
    assert out.shape == (2, 1), out.shape

    # bf16 MXU operands -> relaxed tolerance vs. the f32 reference.
    ref = _ref_forward(x, params)
    assert jnp.allclose(out, ref, rtol=5e-2, atol=5e-3), (out, ref)

    print("KERNEL_OK")
</pallas_src>

<mosaic_0001>
module attributes {stable_mosaic.version = 11 : i64} {
  func.func @_smartdoor_kernel(%arg0: i32, %arg1: memref<1x64x128xbf16, #tpu.memory_space<vmem>>, %arg2: memref<3x128x256xbf16, #tpu.memory_space<vmem>>, %arg3: memref<3x128x240xbf16, #tpu.memory_space<vmem>>, %arg4: memref<31x62xbf16, #tpu.memory_space<vmem>>, %arg5: memref<256x128xbf16, #tpu.memory_space<vmem>>, %arg6: memref<240x120xbf16, #tpu.memory_space<vmem>>, %arg7: memref<3x248x348xbf16, #tpu.memory_space<vmem>>, %arg8: memref<14x29xbf16, #tpu.memory_space<vmem>>, %arg9: memref<348x168xbf16, #tpu.memory_space<vmem>>, %arg10: memref<3x168x144xbf16, #tpu.memory_space<vmem>>, %arg11: memref<6x12xbf16, #tpu.memory_space<vmem>>, %arg12: memref<6x144x32xbf16, #tpu.memory_space<vmem>>, %arg13: memref<32x128xbf16, #tpu.memory_space<vmem>>, %arg14: memref<1x1x128xf32, #tpu.memory_space<vmem>>, %arg15: memref<2x31x248xbf16, #tpu.memory_space<vmem>>, %arg16: memref<2x14x168xbf16, #tpu.memory_space<vmem>>) attributes {dimension_semantics = [#tpu.dimension_semantics<parallel>], iteration_bounds = array<i64: 2>, scalar_prefetch = 0 : i64, scratch_operands = 2 : i64, tpu.core_type = #tpu.core_type<tc>, window_params = [{transform_indices = @transform_0, window_bounds = array<i64: 1, 64, 128>}, {pipeline_mode = #tpu.pipeline_mode<synchronous>, transform_indices = @transform_1, window_bounds = array<i64: 3, 128, 256>}, {pipeline_mode = #tpu.pipeline_mode<synchronous>, transform_indices = @transform_2, window_bounds = array<i64: 3, 128, 240>}, {pipeline_mode = #tpu.pipeline_mode<synchronous>, transform_indices = @transform_3, window_bounds = array<i64: 31, 62>}, {pipeline_mode = #tpu.pipeline_mode<synchronous>, transform_indices = @transform_4, window_bounds = array<i64: 256, 128>}, {pipeline_mode = #tpu.pipeline_mode<synchronous>, transform_indices = @transform_5, window_bounds = array<i64: 240, 120>}, {pipeline_mode = #tpu.pipeline_mode<synchronous>, transform_indices = @transform_6, window_bounds = array<i64: 3, 248, 348>}, {pipeline_mode = #tpu.pipeline_mode<synchronous>, transform_indices = @transform_7, window_bounds = array<i64: 14, 29>}, {pipeline_mode = #tpu.pipeline_mode<synchronous>, transform_indices = @transform_8, window_bounds = array<i64: 348, 168>}, {pipeline_mode = #tpu.pipeline_mode<synchronous>, transform_indices = @transform_9, window_bounds = array<i64: 3, 168, 144>}, {pipeline_mode = #tpu.pipeline_mode<synchronous>, transform_indices = @transform_10, window_bounds = array<i64: 6, 12>}, {pipeline_mode = #tpu.pipeline_mode<synchronous>, transform_indices = @transform_11, window_bounds = array<i64: 6, 144, 32>}, {pipeline_mode = #tpu.pipeline_mode<synchronous>, transform_indices = @transform_12, window_bounds = array<i64: 32, 128>}, {transform_indices = @transform_13, window_bounds = array<i64: 1, 1, 128>}]} {
    %c0 = arith.constant 0 : index
    %c0_0 = arith.constant 0 : index
    %c0_1 = arith.constant 0 : index
    %0 = vector.load %arg1[%c0, %c0_0, %c0_1] : memref<1x64x128xbf16, #tpu.memory_space<vmem>>, vector<1x62x128xbf16>
    %1 = vector.shape_cast %0 : vector<1x62x128xbf16> to vector<62x128xbf16>
    %c0_2 = arith.constant 0 : index
    %c0_3 = arith.constant 0 : index
    %c0_4 = arith.constant 0 : index
    %2 = vector.load %arg2[%c0_2, %c0_3, %c0_4] : memref<3x128x256xbf16, #tpu.memory_space<vmem>>, vector<1x128x256xbf16>
    %3 = vector.shape_cast %2 : vector<1x128x256xbf16> to vector<128x256xbf16>
    %cst = arith.constant dense<0.000000e+00> : vector<62x256xf32>
    %4 = tpu.matmul %1, %3, %cst {dimension_numbers = #tpu.dot_dimension_numbers<[1], [0], [0], [1], [0, 0, 1, 1], [], []>} : vector<62x128xbf16>, vector<128x256xbf16>, vector<62x256xf32> -> vector<62x256xf32>
    %c0_5 = arith.constant 0 : index
    %c1 = arith.constant 1 : index
    %c0_6 = arith.constant 0 : index
    %5 = vector.load %arg1[%c0_5, %c1, %c0_6] : memref<1x64x128xbf16, #tpu.memory_space<vmem>>, vector<1x62x128xbf16>
    %6 = vector.shape_cast %5 : vector<1x62x128xbf16> to vector<62x128xbf16>
    %c1_7 = arith.constant 1 : index
    %c0_8 = arith.constant 0 : index
    %c0_9 = arith.constant 0 : index
    %7 = vector.load %arg2[%c1_7, %c0_8, %c0_9] : memref<3x128x256xbf16, #tpu.memory_space<vmem>>, vector<1x128x256xbf16>
    %8 = vector.shape_cast %7 : vector<1x128x256xbf16> to vector<128x256xbf16>
    %cst_10 = arith.constant dense<0.000000e+00> : vector<62x256xf32>
    %9 = tpu.matmul %6, %8, %cst_10 {dimension_numbers = #tpu.dot_dimension_numbers<[1], [0], [0], [1], [0, 0, 1, 1], [], []>} : vector<62x128xbf16>, vector<128x256xbf16>, vector<62x256xf32> -> vector<62x256xf32>
    %10 = arith.addf %4, %9 : vector<62x256xf32>
    %c0_11 = arith.constant 0 : index
    %c2 = arith.constant 2 : index
    %c0_12 = arith.constant 0 : index
    %11 = vector.load %arg1[%c0_11, %c2, %c0_12] : memref<1x64x128xbf16, #tpu.memory_space<vmem>>, vector<1x62x128xbf16>
    %12 = vector.shape_cast %11 : vector<1x62x128xbf16> to vector<62x128xbf16>
    %c2_13 = arith.constant 2 : index
    %c0_14 = arith.constant 0 : index
    %c0_15 = arith.constant 0 : index
    %13 = vector.load %arg2[%c2_13, %c0_14, %c0_15] : memref<3x128x256xbf16, #tpu.memory_space<vmem>>, vector<1x128x256xbf16>
    %14 = vector.shape_cast %13 : vector<1x128x256xbf16> to vector<128x256xbf16>
    %cst_16 = arith.constant dense<0.000000e+00> : vector<62x256xf32>
    %15 = tpu.matmul %12, %14, %cst_16 {dimension_numbers = #tpu.dot_dimension_numbers<[1], [0], [0], [1], [0, 0, 1, 1], [], []>} : vector<62x128xbf16>, vector<128x256xbf16>, vector<62x256xf32> -> vector<62x256xf32>
    %16 = arith.addf %10, %15 : vector<62x256xf32>
    %c0_17 = arith.constant 0 : index
    %c0_18 = arith.constant 0 : index
    %17 = vector.load %arg4[%c0_17, %c0_18] : memref<31x62xbf16, #tpu.memory_space<vmem>>, vector<31x62xbf16>
    %cst_19 = arith.constant 0.000000e+00 : f32
    %18 = vector.broadcast %cst_19 : f32 to vector<62x256xf32>
    %19 = arith.maximumf %16, %18 : vector<62x256xf32>
    %20 = arith.truncf %19 : vector<62x256xf32> to vector<62x256xbf16>
    %cst_20 = arith.constant dense<0.000000e+00> : vector<31x256xf32>
    %21 = tpu.matmul %17, %20, %cst_20 {dimension_numbers = #tpu.dot_dimension_numbers<[1], [0], [0], [1], [0, 0, 1, 1], [], []>} : vector<31x62xbf16>, vector<62x256xbf16>, vector<31x256xf32> -> vector<31x256xf32>
    %22 = arith.truncf %21 : vector<31x256xf32> to vector<31x256xbf16>
    %c0_21 = arith.constant 0 : index
    %c0_22 = arith.constant 0 : index
    %23 = vector.load %arg5[%c0_21, %c0_22] : memref<256x128xbf16, #tpu.memory_space<vmem>>, vector<256x128xbf16>
    %cst_23 = arith.constant dense<0.000000e+00> : vector<31x128xf32>
    %24 = tpu.matmul %22, %23, %cst_23 {dimension_numbers = #tpu.dot_dimension_numbers<[1], [0], [0], [1], [0, 0, 1, 1], [], []>} : vector<31x256xbf16>, vector<256x128xbf16>, vector<31x128xf32> -> vector<31x128xf32>
    %25 = arith.truncf %24 : vector<31x128xf32> to vector<31x128xbf16>
    %c0_24 = arith.constant 0 : index
    %c0_25 = arith.constant 0 : index
    %c0_26 = arith.constant 0 : index
    %26 = vector.load %arg15[%c0_24, %c0_25, %c0_26] : memref<2x31x248xbf16, #tpu.memory_space<vmem>>, vector<1x31x128xbf16>
    %27 = vector.shape_cast %26 : vector<1x31x128xbf16> to vector<31x128xbf16>
    %28 = vector.shape_cast %25 : vector<31x128xbf16> to vector<1x31x128xbf16>
    tpu.vector_store %arg15[%c0_24, %c0_25, %c0_26], %28 {strides = array<i32>} : memref<2x31x248xbf16, #tpu.memory_space<vmem>>, vector<1x31x128xbf16>,
    %c0_27 = arith.constant 0 : index
    %c0_28 = arith.constant 0 : index
    %c0_29 = arith.constant 0 : index
    %29 = vector.load %arg1[%c0_27, %c0_28, %c0_29] : memref<1x64x128xbf16, #tpu.memory_space<vmem>>, vector<1x62x128xbf16>
    %30 = vector.shape_cast %29 : vector<1x62x128xbf16> to vector<62x128xbf16>
    %c0_30 = arith.constant 0 : index
    %c0_31 = arith.constant 0 : index
    %c0_32 = arith.constant 0 : index
    %31 = vector.load %arg3[%c0_30, %c0_31, %c0_32] : memref<3x128x240xbf16, #tpu.memory_space<vmem>>, vector<1x128x240xbf16>
    %32 = vector.shape_cast %31 : vector<1x128x240xbf16> to vector<128x240xbf16>
    %cst_33 = arith.constant dense<0.000000e+00> : vector<62x240xf32>
    %33 = tpu.matmul %30, %32, %cst_33 {dimension_numbers = #tpu.dot_dimension_numbers<[1], [0], [0], [1], [0, 0, 1, 1], [], []>} : vector<62x128xbf16>, vector<128x240xbf16>, vector<62x240xf32> -> vector<62x240xf32>
    %c0_34 = arith.constant 0 : index
    %c1_35 = arith.constant 1 : index
    %c0_36 = arith.constant 0 : index
    %34 = vector.load %arg1[%c0_34, %c1_35, %c0_36] : memref<1x64x128xbf16, #tpu.memory_space<vmem>>, vector<1x62x128xbf16>
    %35 = vector.shape_cast %34 : vector<1x62x128xbf16> to vector<62x128xbf16>
    %c1_37 = arith.constant 1 : index
    %c0_38 = arith.constant 0 : index
    %c0_39 = arith.constant 0 : index
    %36 = vector.load %arg3[%c1_37, %c0_38, %c0_39] : memref<3x128x240xbf16, #tpu.memory_space<vmem>>, vector<1x128x240xbf16>
    %37 = vector.shape_cast %36 : vector<1x128x240xbf16> to vector<128x240xbf16>
    %cst_40 = arith.constant dense<0.000000e+00> : vector<62x240xf32>
    %38 = tpu.matmul %35, %37, %cst_40 {dimension_numbers = #tpu.dot_dimension_numbers<[1], [0], [0], [1], [0, 0, 1, 1], [], []>} : vector<62x128xbf16>, vector<128x240xbf16>, vector<62x240xf32> -> vector<62x240xf32>
    %39 = arith.addf %33, %38 : vector<62x240xf32>
    %c0_41 = arith.constant 0 : index
    %c2_42 = arith.constant 2 : index
    %c0_43 = arith.constant 0 : index
    %40 = vector.load %arg1[%c0_41, %c2_42, %c0_43] : memref<1x64x128xbf16, #tpu.memory_space<vmem>>, vector<1x62x128xbf16>
    %41 = vector.shape_cast %40 : vector<1x62x128xbf16> to vector<62x128xbf16>
    %c2_44 = arith.constant 2 : index
    %c0_45 = arith.constant 0 : index
    %c0_46 = arith.constant 0 : index
    %42 = vector.load %arg3[%c2_44, %c0_45, %c0_46] : memref<3x128x240xbf16, #tpu.memory_space<vmem>>, vector<1x128x240xbf16>
    %43 = vector.shape_cast %42 : vector<1x128x240xbf16> to vector<128x240xbf16>
    %cst_47 = arith.constant dense<0.000000e+00> : vector<62x240xf32>
    %44 = tpu.matmul %41, %43, %cst_47 {dimension_numbers = #tpu.dot_dimension_numbers<[1], [0], [0], [1], [0, 0, 1, 1], [], []>} : vector<62x128xbf16>, vector<128x240xbf16>, vector<62x240xf32> -> vector<62x240xf32>
    %45 = arith.addf %39, %44 : vector<62x240xf32>
    %c0_48 = arith.constant 0 : index
    %c0_49 = arith.constant 0 : index
    %46 = vector.load %arg4[%c0_48, %c0_49] : memref<31x62xbf16, #tpu.memory_space<vmem>>, vector<31x62xbf16>
    %cst_50 = arith.constant 0.000000e+00 : f32
    %47 = vector.broadcast %cst_50 : f32 to vector<62x240xf32>
    %48 = arith.maximumf %45, %47 : vector<62x240xf32>
    %49 = arith.truncf %48 : vector<62x240xf32> to vector<62x240xbf16>
    %cst_51 = arith.constant dense<0.000000e+00> : vector<31x240xf32>
    %50 = tpu.matmul %46, %49, %cst_51 {dimension_numbers = #tpu.dot_dimension_numbers<[1], [0], [0], [1], [0, 0, 1, 1], [], []>} : vector<31x62xbf16>, vector<62x240xbf16>, vector<31x240xf32> -> vector<31x240xf32>
    %51 = arith.truncf %50 : vector<31x240xf32> to vector<31x240xbf16>
    %c0_52 = arith.constant 0 : index
    %c0_53 = arith.constant 0 : index
    %52 = vector.load %arg6[%c0_52, %c0_53] : memref<240x120xbf16, #tpu.memory_space<vmem>>, vector<240x120xbf16>
    %cst_54 = arith.constant dense<0.000000e+00> : vector<31x120xf32>
    %53 = tpu.matmul %51, %52, %cst_54 {dimension_numbers = #tpu.dot_dimension_numbers<[1], [0], [0], [1], [0, 0, 1, 1], [], []>} : vector<31x240xbf16>, vector<240x120xbf16>, vector<31x120xf32> -> vector<31x120xf32>
    %54 = arith.truncf %53 : vector<31x120xf32> to vector<31x120xbf16>
    %c0_55 = arith.constant 0 : index
    %c0_56 = arith.constant 0 : index
    %c128 = arith.constant 128 : index
    %55 = vector.load %arg15[%c0_55, %c0_56, %c128] : memref<2x31x248xbf16, #tpu.memory_space<vmem>>, vector<1x31x120xbf16>
    %56 = vector.shape_cast %55 : vector<1x31x120xbf16> to vector<31x120xbf16>
    %57 = vector.shape_cast %54 : vector<31x120xbf16> to vector<1x31x120xbf16>
    tpu.vector_store %arg15[%c0_55, %c0_56, %c128], %57 {strides = array<i32>} : memref<2x31x248xbf16, #tpu.memory_space<vmem>>, vector<1x31x120xbf16>,
    %c0_57 = arith.constant 0 : index
    %c0_58 = arith.constant 0 : index
    %c0_59 = arith.constant 0 : index
    %58 = vector.load %arg15[%c0_57, %c0_58, %c0_59] : memref<2x31x248xbf16, #tpu.memory_space<vmem>>, vector<1x29x248xbf16>
    %59 = vector.shape_cast %58 : vector<1x29x248xbf16> to vector<29x248xbf16>
    %c0_60 = arith.constant 0 : index
    %c0_61 = arith.constant 0 : index
    %c0_62 = arith.constant 0 : index
    %60 = vector.load %arg7[%c0_60, %c0_61, %c0_62] : memref<3x248x348xbf16, #tpu.memory_space<vmem>>, vector<1x248x348xbf16>
    %61 = vector.shape_cast %60 : vector<1x248x348xbf16> to vector<248x348xbf16>
    %cst_63 = arith.constant dense<0.000000e+00> : vector<29x348xf32>
    %62 = tpu.matmul %59, %61, %cst_63 {dimension_numbers = #tpu.dot_dimension_numbers<[1], [0], [0], [1], [0, 0, 1, 1], [], []>} : vector<29x248xbf16>, vector<248x348xbf16>, vector<29x348xf32> -> vector<29x348xf32>
    %c0_64 = arith.constant 0 : index
    %c1_65 = arith.constant 1 : index
    %c0_66 = arith.constant 0 : index
    %63 = vector.load %arg15[%c0_64, %c1_65, %c0_66] : memref<2x31x248xbf16, #tpu.memory_space<vmem>>, vector<1x29x248xbf16>
    %64 = vector.shape_cast %63 : vector<1x29x248xbf16> to vector<29x248xbf16>
    %c1_67 = arith.constant 1 : index
    %c0_68 = arith.constant 0 : index
    %c0_69 = arith.constant 0 : index
    %65 = vector.load %arg7[%c1_67, %c0_68, %c0_69] : memref<3x248x348xbf16, #tpu.memory_space<vmem>>, vector<1x248x348xbf16>
    %66 = vector.shape_cast %65 : vector<1x248x348xbf16> to vector<248x348xbf16>
    %cst_70 = arith.constant dense<0.000000e+00> : vector<29x348xf32>
    %67 = tpu.matmul %64, %66, %cst_70 {dimension_numbers = #tpu.dot_dimension_numbers<[1], [0], [0], [1], [0, 0, 1, 1], [], []>} : vector<29x248xbf16>, vector<248x348xbf16>, vector<29x348xf32> -> vector<29x348xf32>
    %68 = arith.addf %62, %67 : vector<29x348xf32>
    %c0_71 = arith.constant 0 : index
    %c2_72 = arith.constant 2 : index
    %c0_73 = arith.constant 0 : index
    %69 = vector.load %arg15[%c0_71, %c2_72, %c0_73] : memref<2x31x248xbf16, #tpu.memory_space<vmem>>, vector<1x29x248xbf16>
    %70 = vector.shape_cast %69 : vector<1x29x248xbf16> to vector<29x248xbf16>
    %c2_74 = arith.constant 2 : index
    %c0_75 = arith.constant 0 : index
    %c0_76 = arith.constant 0 : index
    %71 = vector.load %arg7[%c2_74, %c0_75, %c0_76] : memref<3x248x348xbf16, #tpu.memory_space<vmem>>, vector<1x248x348xbf16>
    %72 = vector.shape_cast %71 : vector<1x248x348xbf16> to vector<248x348xbf16>
    %cst_77 = arith.constant dense<0.000000e+00> : vector<29x348xf32>
    %73 = tpu.matmul %70, %72, %cst_77 {dimension_numbers = #tpu.dot_dimension_numbers<[1], [0], [0], [1], [0, 0, 1, 1], [], []>} : vector<29x248xbf16>, vector<248x348xbf16>, vector<29x348xf32> -> vector<29x348xf32>
    %74 = arith.addf %68, %73 : vector<29x348xf32>
    %c0_78 = arith.constant 0 : index
    %c0_79 = arith.constant 0 : index
    %75 = vector.load %arg8[%c0_78, %c0_79] : memref<14x29xbf16, #tpu.memory_space<vmem>>, vector<14x29xbf16>
    %cst_80 = arith.constant 0.000000e+00 : f32
    %76 = vector.broadcast %cst_80 : f32 to vector<29x348xf32>
    %77 = arith.maximumf %74, %76 : vector<29x348xf32>
    %78 = arith.truncf %77 : vector<29x348xf32> to vector<29x348xbf16>
    %cst_81 = arith.constant dense<0.000000e+00> : vector<14x348xf32>
    %79 = tpu.matmul %75, %78, %cst_81 {dimension_numbers = #tpu.dot_dimension_numbers<[1], [0], [0], [1], [0, 0, 1, 1], [], []>} : vector<14x29xbf16>, vector<29x348xbf16>, vector<14x348xf32> -> vector<14x348xf32>
    %80 = arith.truncf %79 : vector<14x348xf32> to vector<14x348xbf16>
    %c0_82 = arith.constant 0 : index
    %c0_83 = arith.constant 0 : index
    %81 = vector.load %arg9[%c0_82, %c0_83] : memref<348x168xbf16, #tpu.memory_space<vmem>>, vector<348x168xbf16>
    %cst_84 = arith.constant dense<0.000000e+00> : vector<14x168xf32>
    %82 = tpu.matmul %80, %81, %cst_84 {dimension_numbers = #tpu.dot_dimension_numbers<[1], [0], [0], [1], [0, 0, 1, 1], [], []>} : vector<14x348xbf16>, vector<348x168xbf16>, vector<14x168xf32> -> vector<14x168xf32>
    %83 = arith.truncf %82 : vector<14x168xf32> to vector<14x168xbf16>
    %c0_85 = arith.constant 0 : index
    %c0_86 = arith.constant 0 : index
    %c0_87 = arith.constant 0 : index
    %84 = vector.load %arg16[%c0_85, %c0_86, %c0_87] : memref<2x14x168xbf16, #tpu.memory_space<vmem>>, vector<1x14x168xbf16>
    %85 = vector.shape_cast %84 : vector<1x14x168xbf16> to vector<14x168xbf16>
    %86 = vector.shape_cast %83 : vector<14x168xbf16> to vector<1x14x168xbf16>
    tpu.vector_store %arg16[%c0_85, %c0_86, %c0_87], %86 {strides = array<i32>} : memref<2x14x168xbf16, #tpu.memory_space<vmem>>, vector<1x14x168xbf16>,
    %c0_88 = arith.constant 0 : index
    %c0_89 = arith.constant 0 : index
    %c0_90 = arith.constant 0 : index
    %87 = vector.load %arg16[%c0_88, %c0_89, %c0_90] : memref<2x14x168xbf16, #tpu.memory_space<vmem>>, vector<1x12x168xbf16>
    %88 = vector.shape_cast %87 : vector<1x12x168xbf16> to vector<12x168xbf16>
    %c0_91 = arith.constant 0 : index
    %c0_92 = arith.constant 0 : index
    %c0_93 = arith.constant 0 : index
    %89 = vector.load %arg10[%c0_91, %c0_92, %c0_93] : memref<3x168x144xbf16, #tpu.memory_space<vmem>>, vector<1x168x144xbf16>
    %90 = vector.shape_cast %89 : vector<1x168x144xbf16> to vector<168x144xbf16>
    %cst_94 = arith.constant dense<0.000000e+00> : vector<12x144xf32>
    %91 = tpu.matmul %88, %90, %cst_94 {dimension_numbers = #tpu.dot_dimension_numbers<[1], [0], [0], [1], [0, 0, 1, 1], [], []>} : vector<12x168xbf16>, vector<168x144xbf16>, vector<12x144xf32> -> vector<12x144xf32>
    %c0_95 = arith.constant 0 : index
    %c1_96 = arith.constant 1 : index
    %c0_97 = arith.constant 0 : index
    %92 = vector.load %arg16[%c0_95, %c1_96, %c0_97] : memref<2x14x168xbf16, #tpu.memory_space<vmem>>, vector<1x12x168xbf16>
    %93 = vector.shape_cast %92 : vector<1x12x168xbf16> to vector<12x168xbf16>
    %c1_98 = arith.constant 1 : index
    %c0_99 = arith.constant 0 : index
    %c0_100 = arith.constant 0 : index
    %94 = vector.load %arg10[%c1_98, %c0_99, %c0_100] : memref<3x168x144xbf16, #tpu.memory_space<vmem>>, vector<1x168x144xbf16>
    %95 = vector.shape_cast %94 : vector<1x168x144xbf16> to vector<168x144xbf16>
    %cst_101 = arith.constant dense<0.000000e+00> : vector<12x144xf32>
    %96 = tpu.matmul %93, %95, %cst_101 {dimension_numbers = #tpu.dot_dimension_numbers<[1], [0], [0], [1], [0, 0, 1, 1], [], []>} : vector<12x168xbf16>, vector<168x144xbf16>, vector<12x144xf32> -> vector<12x144xf32>
    %97 = arith.addf %91, %96 : vector<12x144xf32>
    %c0_102 = arith.constant 0 : index
    %c2_103 = arith.constant 2 : index
    %c0_104 = arith.constant 0 : index
    %98 = vector.load %arg16[%c0_102, %c2_103, %c0_104] : memref<2x14x168xbf16, #tpu.memory_space<vmem>>, vector<1x12x168xbf16>
    %99 = vector.shape_cast %98 : vector<1x12x168xbf16> to vector<12x168xbf16>
    %c2_105 = arith.constant 2 : index
    %c0_106 = arith.constant 0 : index
    %c0_107 = arith.constant 0 : index
    %100 = vector.load %arg10[%c2_105, %c0_106, %c0_107] : memref<3x168x144xbf16, #tpu.memory_space<vmem>>, vector<1x168x144xbf16>
    %101 = vector.shape_cast %100 : vector<1x168x144xbf16> to vector<168x144xbf16>
    %cst_108 = arith.constant dense<0.000000e+00> : vector<12x144xf32>
    %102 = tpu.matmul %99, %101, %cst_108 {dimension_numbers = #tpu.dot_dimension_numbers<[1], [0], [0], [1], [0, 0, 1, 1], [], []>} : vector<12x168xbf16>, vector<168x144xbf16>, vector<12x144xf32> -> vector<12x144xf32>
    %103 = arith.addf %97, %102 : vector<12x144xf32>
    %c0_109 = arith.constant 0 : index
    %c0_110 = arith.constant 0 : index
    %104 = vector.load %arg11[%c0_109, %c0_110] : memref<6x12xbf16, #tpu.memory_space<vmem>>, vector<6x12xbf16>
    %cst_111 = arith.constant 0.000000e+00 : f32
    %105 = vector.broadcast %cst_111 : f32 to vector<12x144xf32>
    %106 = arith.maximumf %103, %105 : vector<12x144xf32>
    %107 = arith.truncf %106 : vector<12x144xf32> to vector<12x144xbf16>
    %cst_112 = arith.constant dense<0.000000e+00> : vector<6x144xf32>
    %108 = tpu.matmul %104, %107, %cst_112 {dimension_numbers = #tpu.dot_dimension_numbers<[1], [0], [0], [1], [0, 0, 1, 1], [], []>} : vector<6x12xbf16>, vector<12x144xbf16>, vector<6x144xf32> -> vector<6x144xf32>
    %109 = arith.truncf %108 : vector<6x144xf32> to vector<6x144xbf16>
    %110 = vector.extract_strided_slice %109 {offsets = [0, 0], sizes = [1, 144], strides = [1, 1]} : vector<6x144xbf16> to vector<1x144xbf16>
    %c0_113 = arith.constant 0 : index
    %c0_114 = arith.constant 0 : index
    %c0_115 = arith.constant 0 : index
    %111 = vector.load %arg12[%c0_113, %c0_114, %c0_115] : memref<6x144x32xbf16, #tpu.memory_space<vmem>>, vector<1x144x32xbf16>
    %112 = vector.shape_cast %111 : vector<1x144x32xbf16> to vector<144x32xbf16>
    %cst_116 = arith.constant dense<0.000000e+00> : vector<1x32xf32>
    %113 = tpu.matmul %110, %112, %cst_116 {dimension_numbers = #tpu.dot_dimension_numbers<[1], [0], [0], [1], [0, 0, 1, 1], [], []>} : vector<1x144xbf16>, vector<144x32xbf16>, vector<1x32xf32> -> vector<1x32xf32>
    %114 = vector.extract_strided_slice %109 {offsets = [1, 0], sizes = [1, 144], strides = [1, 1]} : vector<6x144xbf16> to vector<1x144xbf16>
    %c1_117 = arith.constant 1 : index
    %c0_118 = arith.constant 0 : index
    %c0_119 = arith.constant 0 : index
    %115 = vector.load %arg12[%c1_117, %c0_118, %c0_119] : memref<6x144x32xbf16, #tpu.memory_space<vmem>>, vector<1x144x32xbf16>
    %116 = vector.shape_cast %115 : vector<1x144x32xbf16> to vector<144x32xbf16>
    %cst_120 = arith.constant dense<0.000000e+00> : vector<1x32xf32>
    %117 = tpu.matmul %114, %116, %cst_120 {dimension_numbers = #tpu.dot_dimension_numbers<[1], [0], [0], [1], [0, 0, 1, 1], [], []>} : vector<1x144xbf16>, vector<144x32xbf16>, vector<1x32xf32> -> vector<1x32xf32>
    %118 = arith.addf %113, %117 : vector<1x32xf32>
    %119 = vector.extract_strided_slice %109 {offsets = [2, 0], sizes = [1, 144], strides = [1, 1]} : vector<6x144xbf16> to vector<1x144xbf16>
    %c2_121 = arith.constant 2 : index
    %c0_122 = arith.constant 0 : index
    %c0_123 = arith.constant 0 : index
    %120 = vector.load %arg12[%c2_121, %c0_122, %c0_123] : memref<6x144x32xbf16, #tpu.memory_space<vmem>>, vector<1x144x32xbf16>
    %121 = vector.shape_cast %120 : vector<1x144x32xbf16> to vector<144x32xbf16>
    %cst_124 = arith.constant dense<0.000000e+00> : vector<1x32xf32>
    %122 = tpu.matmul %119, %121, %cst_124 {dimension_numbers = #tpu.dot_dimension_numbers<[1], [0], [0], [1], [0, 0, 1, 1], [], []>} : vector<1x144xbf16>, vector<144x32xbf16>, vector<1x32xf32> -> vector<1x32xf32>
    %123 = arith.addf %118, %122 : vector<1x32xf32>
    %124 = vector.extract_strided_slice %109 {offsets = [3, 0], sizes = [1, 144], strides = [1, 1]} : vector<6x144xbf16> to vector<1x144xbf16>
    %c3 = arith.constant 3 : index
    %c0_125 = arith.constant 0 : index
    %c0_126 = arith.constant 0 : index
    %125 = vector.load %arg12[%c3, %c0_125, %c0_126] : memref<6x144x32xbf16, #tpu.memory_space<vmem>>, vector<1x144x32xbf16>
    %126 = vector.shape_cast %125 : vector<1x144x32xbf16> to vector<144x32xbf16>
    %cst_127 = arith.constant dense<0.000000e+00> : vector<1x32xf32>
    %127 = tpu.matmul %124, %126, %cst_127 {dimension_numbers = #tpu.dot_dimension_numbers<[1], [0], [0], [1], [0, 0, 1, 1], [], []>} : vector<1x144xbf16>, vector<144x32xbf16>, vector<1x32xf32> -> vector<1x32xf32>
    %128 = arith.addf %123, %127 : vector<1x32xf32>
    %129 = vector.extract_strided_slice %109 {offsets = [4, 0], sizes = [1, 144], strides = [1, 1]} : vector<6x144xbf16> to vector<1x144xbf16>
    %c4 = arith.constant 4 : index
    %c0_128 = arith.constant 0 : index
    %c0_129 = arith.constant 0 : index
    %130 = vector.load %arg12[%c4, %c0_128, %c0_129] : memref<6x144x32xbf16, #tpu.memory_space<vmem>>, vector<1x144x32xbf16>
    %131 = vector.shape_cast %130 : vector<1x144x32xbf16> to vector<144x32xbf16>
    %cst_130 = arith.constant dense<0.000000e+00> : vector<1x32xf32>
    %132 = tpu.matmul %129, %131, %cst_130 {dimension_numbers = #tpu.dot_dimension_numbers<[1], [0], [0], [1], [0, 0, 1, 1], [], []>} : vector<1x144xbf16>, vector<144x32xbf16>, vector<1x32xf32> -> vector<1x32xf32>
    %133 = arith.addf %128, %132 : vector<1x32xf32>
    %134 = vector.extract_strided_slice %109 {offsets = [5, 0], sizes = [1, 144], strides = [1, 1]} : vector<6x144xbf16> to vector<1x144xbf16>
    %c5 = arith.constant 5 : index
    %c0_131 = arith.constant 0 : index
    %c0_132 = arith.constant 0 : index
    %135 = vector.load %arg12[%c5, %c0_131, %c0_132] : memref<6x144x32xbf16, #tpu.memory_space<vmem>>, vector<1x144x32xbf16>
    %136 = vector.shape_cast %135 : vector<1x144x32xbf16> to vector<144x32xbf16>
    %cst_133 = arith.constant dense<0.000000e+00> : vector<1x32xf32>
    %137 = tpu.matmul %134, %136, %cst_133 {dimension_numbers = #tpu.dot_dimension_numbers<[1], [0], [0], [1], [0, 0, 1, 1], [], []>} : vector<1x144xbf16>, vector<144x32xbf16>, vector<1x32xf32> -> vector<1x32xf32>
    %138 = arith.addf %133, %137 : vector<1x32xf32>
    %cst_134 = arith.constant 0.000000e+00 : f32
    %139 = vector.broadcast %cst_134 : f32 to vector<1x32xf32>
    %140 = arith.maximumf %138, %139 : vector<1x32xf32>
    %141 = arith.truncf %140 : vector<1x32xf32> to vector<1x32xbf16>
    %c0_135 = arith.constant 0 : index
    %c0_136 = arith.constant 0 : index
    %142 = vector.load %arg13[%c0_135, %c0_136] : memref<32x128xbf16, #tpu.memory_space<vmem>>, vector<32x128xbf16>
    %cst_137 = arith.constant dense<0.000000e+00> : vector<1x128xf32>
    %143 = tpu.matmul %141, %142, %cst_137 {dimension_numbers = #tpu.dot_dimension_numbers<[1], [0], [0], [1], [0, 0, 1, 1], [], []>} : vector<1x32xbf16>, vector<32x128xbf16>, vector<1x128xf32> -> vector<1x128xf32>
    %cst_138 = arith.constant 0.000000e+00 : f32
    %144 = vector.broadcast %cst_138 : f32 to vector<1x128xf32>
    %145 = arith.maximumf %143, %144 : vector<1x128xf32>
    %c0_139 = arith.constant 0 : index
    %c0_140 = arith.constant 0 : index
    %c0_141 = arith.constant 0 : index
    %146 = vector.load %arg14[%c0_139, %c0_140, %c0_141] : memref<1x1x128xf32, #tpu.memory_space<vmem>>, vector<1x1x128xf32>
    %147 = vector.shape_cast %146 : vector<1x1x128xf32> to vector<1x128xf32>
    %148 = vector.shape_cast %145 : vector<1x128xf32> to vector<1x1x128xf32>
    tpu.vector_store %arg14[%c0_139, %c0_140, %c0_141], %148 {strides = array<i32>} : memref<1x1x128xf32, #tpu.memory_space<vmem>>, vector<1x1x128xf32>,
    return
  }
  func.func @transform_0(%arg0: i32) -> (i32, i32, i32) {
    %c0_i32 = arith.constant 0 : i32
    %c0_i32_0 = arith.constant 0 : i32
    %c0_i32_1 = arith.constant 0 : i32
    return %arg0, %c0_i32, %c0_i32_0 : i32, i32, i32
  }
  func.func @transform_1(%arg0: i32) -> (i32, i32, i32) {
    %c0_i32 = arith.constant 0 : i32
    %c0_i32_0 = arith.constant 0 : i32
    %c0_i32_1 = arith.constant 0 : i32
    %c0_i32_2 = arith.constant 0 : i32
    return %c0_i32, %c0_i32_0, %c0_i32_1 : i32, i32, i32
  }
  func.func @transform_2(%arg0: i32) -> (i32, i32, i32) {
    %c0_i32 = arith.constant 0 : i32
    %c0_i32_0 = arith.constant 0 : i32
    %c0_i32_1 = arith.constant 0 : i32
    %c0_i32_2 = arith.constant 0 : i32
    return %c0_i32, %c0_i32_0, %c0_i32_1 : i32, i32, i32
  }
  func.func @transform_3(%arg0: i32) -> (i32, i32) {
    %c0_i32 = arith.constant 0 : i32
    %c0_i32_0 = arith.constant 0 : i32
    %c0_i32_1 = arith.constant 0 : i32
    return %c0_i32, %c0_i32_0 : i32, i32
  }
  func.func @transform_4(%arg0: i32) -> (i32, i32) {
    %c0_i32 = arith.constant 0 : i32
    %c0_i32_0 = arith.constant 0 : i32
    %c0_i32_1 = arith.constant 0 : i32
    return %c0_i32, %c0_i32_0 : i32, i32
  }
  func.func @transform_5(%arg0: i32) -> (i32, i32) {
    %c0_i32 = arith.constant 0 : i32
    %c0_i32_0 = arith.constant 0 : i32
    %c0_i32_1 = arith.constant 0 : i32
    return %c0_i32, %c0_i32_0 : i32, i32
  }
  func.func @transform_6(%arg0: i32) -> (i32, i32, i32) {
    %c0_i32 = arith.constant 0 : i32
    %c0_i32_0 = arith.constant 0 : i32
    %c0_i32_1 = arith.constant 0 : i32
    %c0_i32_2 = arith.constant 0 : i32
    return %c0_i32, %c0_i32_0, %c0_i32_1 : i32, i32, i32
  }
  func.func @transform_7(%arg0: i32) -> (i32, i32) {
    %c0_i32 = arith.constant 0 : i32
    %c0_i32_0 = arith.constant 0 : i32
    %c0_i32_1 = arith.constant 0 : i32
    return %c0_i32, %c0_i32_0 : i32, i32
  }
  func.func @transform_8(%arg0: i32) -> (i32, i32) {
    %c0_i32 = arith.constant 0 : i32
    %c0_i32_0 = arith.constant 0 : i32
    %c0_i32_1 = arith.constant 0 : i32
    return %c0_i32, %c0_i32_0 : i32, i32
  }
  func.func @transform_9(%arg0: i32) -> (i32, i32, i32) {
    %c0_i32 = arith.constant 0 : i32
    %c0_i32_0 = arith.constant 0 : i32
    %c0_i32_1 = arith.constant 0 : i32
    %c0_i32_2 = arith.constant 0 : i32
    return %c0_i32, %c0_i32_0, %c0_i32_1 : i32, i32, i32
  }
  func.func @transform_10(%arg0: i32) -> (i32, i32) {
    %c0_i32 = arith.constant 0 : i32
    %c0_i32_0 = arith.constant 0 : i32
    %c0_i32_1 = arith.constant 0 : i32
    return %c0_i32, %c0_i32_0 : i32, i32
  }
  func.func @transform_11(%arg0: i32) -> (i32, i32, i32) {
    %c0_i32 = arith.constant 0 : i32
    %c0_i32_0 = arith.constant 0 : i32
    %c0_i32_1 = arith.constant 0 : i32
    %c0_i32_2 = arith.constant 0 : i32
    return %c0_i32, %c0_i32_0, %c0_i32_1 : i32, i32, i32
  }
  func.func @transform_12(%arg0: i32) -> (i32, i32) {
    %c0_i32 = arith.constant 0 : i32
    %c0_i32_0 = arith.constant 0 : i32
    %c0_i32_1 = arith.constant 0 : i32
    return %c0_i32, %c0_i32_0 : i32, i32
  }
  func.func @transform_13(%arg0: i32) -> (i32, i32, i32) {
    %c0_i32 = arith.constant 0 : i32
    %c0_i32_0 = arith.constant 0 : i32
    %c0_i32_1 = arith.constant 0 : i32
    return %arg0, %c0_i32, %c0_i32_0 : i32, i32, i32
  }
}

</mosaic_0001>

<bundles_post_ra>
// kernel: smart_door_forward.1
= control target key start
LH: loop header
LB: loop body
LE: loop exit
PB: predicated region body
PF: predicated region fallthrough
CT: control target
= control target key end

     0   :  { %s7444_s25 = smov 0   ;;  %s9131_s0 = inlined_call_operand.vmem [shape: bf16[2,64,128], index: 0, kind: input, shape index: {}]   ;;  %s9132_s1 = inlined_call_operand.vmem [shape: bf16[3,128,256], index: 1, kind: input, shape index: {}]   ;;  %s9133_s2 = inlined_call_operand.vmem [shape: bf16[3,128,240], index: 2, kind: input, shape index: {}]   ;;  %s9134_s3 = inlined_call_operand.vmem [shape: bf16[31,62], index: 3, kind: input, shape index: {}]   ;;  %s9135_s4 = inlined_call_operand.vmem [shape: bf16[256,128], index: 4, kind: input, shape index: {}]   ;;  %s9136_s5 = inlined_call_operand.vmem [shape: bf16[240,120], index: 5, kind: input, shape index: {}]   ;;  %s9137_s6 = inlined_call_operand.vmem [shape: bf16[3,248,348], index: 6, kind: input, shape index: {}]   ;;  %s9138_s7 = inlined_call_operand.vmem [shape: bf16[14,29], index: 7, kind: input, shape index: {}]   ;;  %s9139_s8 = inlined_call_operand.vmem [shape: bf16[348,168], index: 8, kind: input, shape index: {}]   ;;  %s9140_s9 = inlined_call_operand.vmem [shape: bf16[3,168,144], index: 9, kind: input, shape index: {}]   ;;  %s9141_s10 = inlined_call_operand.vmem [shape: bf16[6,12], index: 10, kind: input, shape index: {}]   ;;  %s9142_s11 = inlined_call_operand.vmem [shape: bf16[6,144,32], index: 11, kind: input, shape index: {}]   ;;  %s9143_s12 = inlined_call_operand.vmem [shape: bf16[32,128], index: 12, kind: input, shape index: {}]   ;;  %s9144_s13 = inlined_call_operand.vmem [shape: f32[2,1,128], index: 13, kind: output, shape index: {}]  }
   0x1 LB: > { %s5628_s26 = sadd.s32 4294967295, %s7368_s25   ;;  %p5632_p0 = scmp.ge.s32.totalorder %s7368_s25, 1  ;;  %s7368_s25 = sphi %s7444_s25, %s23_s25  }
   0x2   : > { %p387_p1 = scmp.lt.s32.totalorder %s7368_s25, 3 }
   0x4   : > { %p388_p2 = pnand %p5632_p0, %p387_p1 }
   0x5   : > { %v6749_v0 = vld [vmem:[%s9132_s1 + $0x84] ss:$8 sps:$4 sm:$0xff] (!%p388_p2)   ;;  %p429_p3 = scmp.lt.s32.totalorder (!%p388_p2), %s5628_s26, 1  ;;  %v6751_v1 = vld [vmem:[%s9132_s1 + $0x80] ss:$8 sps:$4 sm:$0xff] (!%p388_p2)   ;;  %v7370_v2 = vmov (!%p388_p2), 0  }
   0x6   : > { %391 = sbr.rel (%p388_p2) target bundleno = 3332 (0xd04), region = 72  ;;  %648 = vmatprep.mubr.bf16.mxu0 (!%p388_p2), %v7370_v2  ;;  %1135 = vmatprep.mubr.bf16.mxu1 (!%p388_p2), %v7370_v2  ;;  %v6752_v3 = vld [vmem:[%s9132_s1 + $0x94] ss:$8 sps:$4 sm:$0xff] (!%p388_p2)   ;;  %v6754_v4 = vld [vmem:[%s9132_s1 + $0x90] ss:$8 sps:$4 sm:$0xff] (!%p388_p2)   ;;  %vm870_vm0 = vcmask (!%p388_p2), 1046528  }
   0x7   : > { %616 = vmatprep.subr.bf16.mxu0 (!%p388_p2), %v6749_v0  ;;  %v6755_v5 = vld [vmem:[%s9132_s1 + $0xa4] ss:$8 sps:$4 sm:$0xff] (!%p388_p2)   ;;  %v6757_v6 = vld [vmem:[%s9132_s1 + $0xa0] ss:$8 sps:$4 sm:$0xff] (!%p388_p2)   ;;  %v6758_v7 = vld [vmem:[%s9132_s1 + $0xb4] ss:$8 sps:$4 sm:$0xff] (!%p388_p2)  }
   0x8   : > { %617 = vmatpush1.bf16.msra.mxu0 (!%p388_p2), %v6751_v1  ;;  %v6760_v8 = vld [vmem:[%s9132_s1 + $0xb0] ss:$8 sps:$4 sm:$0xff] (!%p388_p2)   ;;  %v6761_v9 = vld [vmem:[%s9132_s1 + $0xc4] ss:$8 sps:$4 sm:$0xff] (!%p388_p2)   ;;  %v6763_v12 = vld [vmem:[%s9132_s1 + $0xc0] ss:$8 sps:$4 sm:$0xff] (!%p388_p2)  }
   0x9   : > { %618 = vmatprep.subr.bf16.mxu0 (!%p388_p2), %v6752_v3  ;;  %v6764_v14 = vld [vmem:[%s9132_s1 + $0xd4] ss:$8 sps:$4 sm:$0xff] (!%p388_p2)   ;;  %v6766_v15 = vld [vmem:[%s9132_s1 + $0xd0] ss:$8 sps:$4 sm:$0xff] (!%p388_p2)   ;;  %v6767_v21 = vld [vmem:[%s9132_s1 + $0xe4] ss:$8 sps:$4 sm:$0xff] (!%p388_p2)  }
   0xa   : > { %v6769_v26 = vld [vmem:[%s9132_s1 + $0xe0] ss:$8 sps:$4 sm:$0xff] (!%p388_p2)   ;;  %v6770_v31 = vld [vmem:[%s9132_s1 + $0xf4] ss:$8 sps:$4 sm:$0xff] (!%p388_p2)   ;;  %v6772_v33 = vld [vmem:[%s9132_s1 + $0xf0] ss:$8 sps:$4 sm:$0xff] (!%p388_p2)  }
   0xb   : > { %vm500_vm1 = vsmask.f32 (!%p388_p2), 7424  ;;  %v6777_v36 = vld [vmem:[%s9132_s1 + $0x4] ss:$8 sps:$4 sm:$0xff] (!%p388_p2)   ;;  %v6775_v38 = vld [vmem:[%s9132_s1] ss:$8 sps:$4 sm:$0xff] (!%p388_p2)  }
   0xc   : > { %619 = vmatpush1.bf16.msra.mxu0 (!%p388_p2), %v6754_v4  ;;  %v6780_v42 = vld [vmem:[%s9132_s1 + $0x14] ss:$8 sps:$4 sm:$0xff] (!%p388_p2)   ;;  %v6778_v43 = vld [vmem:[%s9132_s1 + $0x10] ss:$8 sps:$4 sm:$0xff] (!%p388_p2)   ;;  %v6784_v46 = vld [vmem:[%s9132_s1 + $0x24] ss:$8 sps:$4 sm:$0xff] (!%p388_p2)  }
   0xd   : > { %s9146_s26 = smov (!%p429_p3, %s5628_s26), 1  ;;  %620 = vmatprep.subr.bf16.mxu0 %v6755_v5  ;;  %v6782_v50 = vld [vmem:[%s9132_s1 + $0x20] ss:$8 sps:$4 sm:$0xff]   ;;  %v6787_v52 = vld [vmem:[%s9132_s1 + $0x34] ss:$8 sps:$4 sm:$0xff]   ;;  %vm1089_vm2 = vcmask 506880  }
   0xe   : > { %s6477_s20 = sshll.u32 %s9146_s26, 5  ;;  %v6785_v55 = vld [vmem:[%s9132_s1 + $0x30] ss:$8 sps:$4 sm:$0xff]   ;;  %v6791_v57 = vld [vmem:[%s9132_s1 + $0x44] ss:$8 sps:$4 sm:$0xff]   ;;  %vm1356_vm3 = vcmask 1043456   ;;  %s436_s19 = scalar_lea.vmem %s9144_s13, %s9146_s26 }
   0xf   : > { %s7481_s29 = scalar_lea.vmem %s9131_s0, %s6477_s20  ;;  %v6789_v59 = vld [vmem:[%s9132_s1 + $0x40] ss:$8 sps:$4 sm:$0xff]   ;;  %v6794_v60 = vld [vmem:[%s9132_s1 + $0x54] ss:$8 sps:$4 sm:$0xff]   ;;  %v6792_v62 = vld [vmem:[%s9132_s1 + $0x50] ss:$8 sps:$4 sm:$0xff]  }
  0x10   : > { %621 = vmatpush1.bf16.msra.mxu0 %v6757_v6  ;;  %v438_v10 = vld [vmem:[%s7481_s29] sm:$0xf]  ;;  %v439_v11 = vld [vmem:[%s7481_s29 + $0x4] sm:$0xf]  ;;  %v7503_v16 = vld [vmem:[%s7481_s29 + $0x8] sm:$0xff]   ;;  %vm2200_vm6 = vcmask 916480  }
  0x11   : > { %622 = vmatprep.subr.bf16.mxu0 %v6758_v7  ;;  %v7494_v13 = vcombine.low %v438_v10, %v439_v11  ;;  %v7506_v17 = vld [vmem:[%s7481_s29 + $0x10] sm:$0xff]   ;;  %v7510_v19 = vld [vmem:[%s7481_s29 + $0x18] sm:$0xf]  ;;  %v462_v20 = vld [vmem:[%s7481_s29 + $0x1c] sm:$0xf]  ;;  %v872_v23 = vrot.slane %v7503_v16, 1 }
  0x12   : > { %v7517_v22 = vcombine.low %v7510_v19, %v462_v20  ;;  %v874_v24 = vrot.slane %v7506_v17, 1  ;;  %v509_v28 = vshll.u32 %v7503_v16, 16  ;;  %v513_v39 = vshrl.u32 %v7503_v16, 16  ;;  %v849_v49 = vld [vmem:[%s7481_s29] sm:$0xe] }
  0x13   : > { %v504_v18 = vshll.u32 %v7494_v13, 16  ;;  %v502_v25 = vshrl.u32 %v7494_v13, 16  ;;  %v517_v40 = vshll.u32 %v7506_v17, 16  ;;  %v521_v47 = vshrl.u32 %v7506_v17, 16  ;;  %v6797_v0 = vld [vmem:[%s9132_s1 + $0x64] ss:$8 sps:$4 sm:$0xff]  }
  0x14   : > { %623 = vmatpush1.bf16.msra.mxu0 %v6760_v8  ;;  %v7527_v29 = vsel %vm870_vm0, %v872_v23, %v874_v24  ;;  %v876_v30 = vrot.slane %v7517_v22, 1  ;;  %v511_v35 = vrot.slane %v509_v28, 1  ;;  %v525_v41 = vshll.u32 %v7517_v22, 16  ;;  %v6795_v1 = vld [vmem:[%s9132_s1 + $0x60] ss:$8 sps:$4 sm:$0xff]  }
  0x15   : > { %624 = vmatprep.subr.bf16.mxu0 %v6761_v9  ;;  %v506_v27 = vrot.slane %v504_v18, 1  ;;  %v519_v45 = vrot.slane %v517_v40, 1  ;;  %v5704_v51 = vcombine.low %v849_v49, %v439_v11  ;;  %v529_v63 = vshrl.u32 %v7517_v22, 16  ;;  %v6800_v4 = vld [vmem:[%s9132_s1 + $0x74] ss:$8 sps:$4 sm:$0xff]  }
  0x16   : > { %v7536_v32 = vsel %vm870_vm0, %v874_v24, %v876_v30  ;;  %v515_v44 = vor.u32 %v513_v39, %v511_v35  ;;  %v527_v48 = vrot.slane %v525_v41, 1  ;;  %v6798_v5 = vld [vmem:[%s9132_s1 + $0x70] ss:$8 sps:$4 sm:$0xff]   ;;  %v6803_v6 = vld [vmem:[%s9132_s1 + $0x104] ss:$8 sps:$4 sm:$0xff]   ;;  %vm2272_vm7 = vcmask 977920  }
  0x17   : > { %v507_v34 = vor.u32 %v506_v27, %v502_v25  ;;  %v871_v54 = vrot.slane %v5704_v51, 1  ;;  %v523_v58 = vor.u32 %v521_v47, %v519_v45  ;;  %v6801_v7 = vld [vmem:[%s9132_s1 + $0x100] ss:$8 sps:$4 sm:$0xff]   ;;  %v6806_v8 = vld [vmem:[%s9132_s1 + $0x114] ss:$8 sps:$4 sm:$0xff]   ;;  %vm2706_vm9 = vcmask 982016  }
  0x18   : > { %625 = vmatpush1.bf16.msra.mxu0 %v6763_v12  ;;  %v520_v53 = vsel %vm500_vm1, %v515_v44, %v519_v45  ;;  %v531_v3 = vor.u32 %v529_v63, %v527_v48  ;;  %v6804_v9 = vld [vmem:[%s9132_s1 + $0x110] ss:$8 sps:$4 sm:$0xff]   ;;  %v6809_v10 = vld [vmem:[%s9132_s1 + $0x124] ss:$8 sps:$4 sm:$0xff]   ;;  %v6807_v11 = vld [vmem:[%s9132_s1 + $0x120] ss:$8 sps:$4 sm:$0xff]  }
  0x19   : > { %626 = vmatprep.subr.bf16.mxu0 %v6764_v14  ;;  %v512_v37 = vsel %vm500_vm1, %v507_v34, %v511_v35  ;;  %v7574_v56 = vsel %vm870_vm0, %v871_v54, %v872_v23  ;;  %v528_v61 = vsel %vm500_vm1, %v523_v58, %v527_v48  ;;  %v6812_v12 = vld [vmem:[%s9132_s1 + $0x134] ss:$8 sps:$4 sm:$0xff]   ;;  %v6815_v14 = vld [vmem:[%s9132_s1 + $0x144] ss:$8 sps:$4 sm:$0xff]   ;;  %v6820_v23 = vld [vmem:[%s9132_s1 + $0x160] ss:$8 sps:$4 sm:$0xff]  }
  0x1a   : > { %v6818_v18 = vld [vmem:[%s9132_s1 + $0x154] ss:$8 sps:$4 sm:$0xff]   ;;  %vm1357_vm4 = vsmask.f32 3328  ;;  %vm3679_vm10 = vcmask 1045504   ;;  %vm3675_vm11 = vcmask 236544  }
  0x1b   : > { %v445_v20 = vld [vmem:[%s7481_s29 + $0x1c] sm:$0x7]  ;;  %vm1358_vm5 = vmand %vm1356_vm3, %vm1357_vm4  ;;  %vm7373_vm12 = vmmov 0   ;;  %vm4040_vm13 = vcmask 752640   ;;  %vm4148_vm14 = vcmask 326660   ;;  %vm4151_vm15 = vcmask 1042432  }
  0x1c   : > { %627 = vmatpush1.bf16.msra.mxu0 %v6766_v15  ;;  %v6813_v15 = vld [vmem:[%s9132_s1 + $0x140] ss:$8 sps:$4 sm:$0xff]   ;;  %v5671_v24 = vcombine.low %v7510_v19, %v445_v20  ;;  %v6825_v25 = vld [vmem:[%s9132_s1 + $0x174] ss:$8 sps:$4 sm:$0xff]   ;;  %vm2277_vm8 = vmand %vm2272_vm7, %vm1357_vm4  ;;  %vm4329_vm4 = vcmask 326656  }
  0x1d   : > { %628 = vmatprep.subr.bf16.mxu0 %v6767_v21  ;;  %v6822_v21 = vld [vmem:[%s9132_s1 + $0x164] ss:$8 sps:$4 sm:$0xff]   ;;  %v6843_v20 = vld [vmem:[%s9135_s4 + $0x78] sm:$0xff]  }
  0x20   : > { %629 = vmatpush1.bf16.msra.mxu0 %v6769_v26 }
  0x21   : > { %630 = vmatprep.subr.bf16.mxu0 %v6770_v31 }
  0x24   : > { %631 = vmatpush1.bf16.msra.mxu0 %v6772_v33 }
  0x25   : > { %776 = vmatprep.subr.bf16.mxu0 %v6777_v36 }
  0x27   : > { %649 = vmatmul.mubr.bf16.vlgmr.msra.gmra.mrb[0].mxu0 %v512_v37 }
  0x28   : > { %777 = vmatpush1.bf16.msra.mxu0 %v6775_v38  ;;  %658 = vmatprep.mubr.bf16.mxu0 %v7370_v2 }
  0x29   : > { %778 = vmatprep.subr.bf16.mxu0 %v6780_v42 }
  0x2c   : > { %779 = vmatpush1.bf16.msra.mxu0 %v6778_v43 }
  0x2d   : > { %780 = vmatprep.subr.bf16.mxu0 %v6784_v46 }
  0x2f   : > { %659 = vmatmul.mubr.bf16.gmra.mrb[4].mxu0 %v520_v53 }
  0x30   : > { %781 = vmatpush1.bf16.msra.mxu0 %v6782_v50  ;;  %668 = vmatprep.mubr.bf16.mxu0 %v7370_v2 }
  0x31   : > { %782 = vmatprep.subr.bf16.mxu0 %v6787_v52 }
  0x34   : > { %783 = vmatpush1.bf16.msra.mxu0 %v6785_v55 }
  0x35   : > { %784 = vmatprep.subr.bf16.mxu0 %v6791_v57 }
  0x37   : > { %669 = vmatmul.mubr.bf16.gmra.mrb[8].mxu0 %v528_v61 }
  0x38   : > { %785 = vmatpush1.bf16.msra.mxu0 %v6789_v59  ;;  %678 = vmatprep.mubr.bf16.mxu0 %v7370_v2 }
  0x39   : > { %786 = vmatprep.subr.bf16.mxu0 %v6794_v60 }
  0x3c   : > { %787 = vmatpush1.bf16.msra.mxu0 %v6792_v62 }
  0x3d   : > { %788 = vmatprep.subr.bf16.mxu0 %v6797_v0  ;;  %v6829_v0 = vld [vmem:[%s9135_s4 + $0x40] sm:$0xff]  }
  0x3f   : > { %679 = vmatmul.mubr.bf16.gmra.mrb[12].mxu0 %v531_v3  ;;  %v6827_v3 = vld [vmem:[%s9134_s3] sm:$0xff]  }
  0x40   : > { %789 = vmatpush1.bf16.msra.mxu0 %v6795_v1  ;;  %808 = vmatprep.mubr.bf16.mxu0 %v7370_v2 }
  0x41   : > { %790 = vmatprep.subr.bf16.mxu0 %v6800_v4  ;;  %v6830_v4 = vld [vmem:[%s9135_s4] sm:$0xff]  }
  0x44   : > { %791 = vmatpush1.bf16.msra.mxu0 %v6798_v5  ;;  %v6831_v5 = vld [vmem:[%s9135_s4 + $0x48] sm:$0xff]  }
  0x45   : > { %962 = vmatprep.subr.bf16.mxu0 %v6803_v6  ;;  %v6832_v6 = vld [vmem:[%s9135_s4 + $0x8] sm:$0xff]  }
  0x47   : > { %809 = vmatmul.mubr.bf16.vlgmr.msra.gmra.mrb[0].mxu0 %v7494_v13  ;;  %v6810_v13 = vld [vmem:[%s9132_s1 + $0x130] ss:$8 sps:$4 sm:$0xff]  }
  0x48   : > { %963 = vmatpush1.bf16.msra.mxu0 %v6801_v7  ;;  %818 = vmatprep.mubr.bf16.mxu0 %v7370_v2  ;;  %v6833_v7 = vld [vmem:[%s9135_s4 + $0x50] sm:$0xff]  }
  0x49   : > { %964 = vmatprep.subr.bf16.mxu0 %v6806_v8  ;;  %v6828_v8 = vld [vmem:[%s9134_s3 + $0x8] sm:$0xff]  }
  0x4c   : > { %965 = vmatpush1.bf16.msra.mxu0 %v6804_v9  ;;  %v6834_v9 = vld [vmem:[%s9135_s4 + $0x10] sm:$0xff]  }
  0x4d   : > { %966 = vmatprep.subr.bf16.mxu0 %v6809_v10  ;;  %v6835_v10 = vld [vmem:[%s9135_s4 + $0x58] sm:$0xff]  }
  0x4f   : > { %819 = vmatmul.mubr.bf16.gmra.mrb[4].mxu0 %v7503_v16  ;;  %v6816_v16 = vld [vmem:[%s9132_s1 + $0x150] ss:$8 sps:$4 sm:$0xff]  }
  0x50   : > { %967 = vmatpush1.bf16.msra.mxu0 %v6807_v11  ;;  %828 = vmatprep.mubr.bf16.mxu0 %v7370_v2  ;;  %v6836_v11 = vld [vmem:[%s9135_s4 + $0x18] sm:$0xff]  }
  0x51   : > { %968 = vmatprep.subr.bf16.mxu0 %v6812_v12  ;;  %v6837_v12 = vld [vmem:[%s9135_s4 + $0x60] sm:$0xff]  }
  0x54   : > { %969 = vmatpush1.bf16.msra.mxu0 %v6810_v13  ;;  %v6838_v13 = vld [vmem:[%s9135_s4 + $0x20] sm:$0xff]  }
  0x55   : > { %970 = vmatprep.subr.bf16.mxu0 %v6815_v14  ;;  %v6839_v14 = vld [vmem:[%s9135_s4 + $0x68] sm:$0xff]  }
  0x57   : > { %829 = vmatmul.mubr.bf16.gmra.mrb[8].mxu0 %v7506_v17  ;;  %v6823_v17 = vld [vmem:[%s9132_s1 + $0x170] ss:$8 sps:$4 sm:$0xff]  }
  0x58   : > { %971 = vmatpush1.bf16.msra.mxu0 %v6813_v15  ;;  %838 = vmatprep.mubr.bf16.mxu0 %v7370_v2  ;;  %v6840_v15 = vld [vmem:[%s9135_s4 + $0x28] sm:$0xff]  }
  0x59   : > { %972 = vmatprep.subr.bf16.mxu0 %v6818_v18  ;;  %v6841_v18 = vld [vmem:[%s9135_s4 + $0x70] sm:$0xff]  }
  0x5c   : > { %973 = vmatpush1.bf16.msra.mxu0 %v6816_v16  ;;  %v6842_v16 = vld [vmem:[%s9135_s4 + $0x30] sm:$0xff]  }
  0x5d   : > { %974 = vmatprep.subr.bf16.mxu0 %v6822_v21  ;;  %v6844_v21 = vld [vmem:[%s9135_s4 + $0x38] sm:$0xff]  }
  0x5f   : > { %839 = vmatmul.mubr.bf16.gmra.mrb[12].mxu0 %v5671_v24 }
  0x60   : > { %975 = vmatpush1.bf16.msra.mxu0 %v6820_v23  ;;  %994 = vmatprep.mubr.bf16.mxu0 %v7370_v2  ;;  %v6847_v23 = vld [vmem:[%s9133_s2 + $0x84] ss:$8 sps:$4 sm:$0xff]  }
  0x61   : > { %976 = vmatprep.subr.bf16.mxu0 %v6825_v25 }
  0x64   : > { %977 = vmatpush1.bf16.msra.mxu0 %v6823_v17 }
  0x67   : > { %995 = vmatmul.mubr.bf16.vlgmr.msra.gmra.mrb[0].mxu0 %v7574_v56 }
  0x68   : > { %1004 = vmatprep.mubr.bf16.mxu0 %v7370_v2 }
  0x6f   : > { %1005 = vmatmul.mubr.bf16.gmra.mrb[4].mxu0 %v7527_v29 }
  0x70   : > { %1014 = vmatprep.mubr.bf16.mxu0 %v7370_v2 }
  0x77   : > { %1015 = vmatmul.mubr.bf16.gmra.mrb[8].mxu0 %v7536_v32 }
  0x78   : > { %1024 = vmatprep.mubr.bf16.mxu0 %v7370_v2 }
  0x7f   : > { %1025 = vmatmul.mubr.bf16.gmra.mrb[12].mxu0 %v876_v30 }
  0x80   : > { %2055 = vmatprep.mubr.bf16.mxu0 %v7370_v2 }
 0x13a   : > { %v996_v19 = vpop.f32.mrb[0].mxu0 }
 0x13b   : > { %v998_v26 = vpop.f32.mrb[1].mxu0  ;;  %v1055_v28 = vmax.f32 %v996_v19, 0.0 }
 0x13c   : > { %v1000_v27 = vpop.f32.mrb[2].mxu0  ;;  %v1056_v34 = vmax.f32 %v998_v26, 0.0 }
 0x13d   : > { %v1057_v31 = vmax.f32 %v1000_v27, 0.0  ;;  %v1002_v33 = vpop.f32.mrb[3].mxu0 }
 0x13e   : > { %v1058_v35 = vmax.f32 %v1002_v33, 0.0  ;;  %v6848_v33 = vld [vmem:[%s9133_s2 + $0x90] ss:$8 sps:$4 sm:$0xff]  }
 0x13f   : > { %v1071_v29 = vpack.c.bf16 %v1057_v31, %v1055_v28  ;;  %v6845_v28 = vld [vmem:[%s9133_s2 + $0x80] ss:$8 sps:$4 sm:$0xff]   ;;  %v6850_v31 = vld [vmem:[%s9133_s2 + $0x94] ss:$8 sps:$4 sm:$0xff]  }
 0x140   : > { %v1072_v36 = vpack.c.bf16 %v1058_v35, %v1056_v34  ;;  %v6853_v35 = vld [vmem:[%s9133_s2 + $0xa4] ss:$8 sps:$4 sm:$0xff]  }
 0x142   : > { %v1006_v37 = vpop.f32.mrb[4].mxu0  ;;  %1103 = vmatprep.subr.bf16.mxu1 %v1072_v36 }
 0x143   : > { %v1008_v32 = vpop.f32.mrb[5].mxu0  ;;  %1104 = vmatpush1.bf16.msra.mxu1 %v1071_v29  ;;  %v1059_v39 = vmax.f32 %v1006_v37, 0.0 }
 0x144   : > { %v1010_v38 = vpop.f32.mrb[6].mxu0  ;;  %v1060_v40 = vmax.f32 %v1008_v32, 0.0 }
 0x145   : > { %v1061_v22 = vmax.f32 %v1010_v38, 0.0  ;;  %v1012_v30 = vpop.f32.mrb[7].mxu0  ;;  %v6851_v38 = vld [vmem:[%s9133_s2 + $0xa0] ss:$8 sps:$4 sm:$0xff]  }
 0x146   : > { %v1062_v41 = vmax.f32 %v1012_v30, 0.0  ;;  %v6854_v30 = vld [vmem:[%s9133_s2 + $0xb0] ss:$8 sps:$4 sm:$0xff]  }
 0x147   : > { %v1073_v42 = vpack.c.bf16 %v1061_v22, %v1059_v39  ;;  %v6856_v22 = vld [vmem:[%s9133_s2 + $0xb4] ss:$8 sps:$4 sm:$0xff]  }
 0x148   : > { %v1074_v43 = vpack.c.bf16 %v1062_v41, %v1060_v40  ;;  %v6859_v40 = vld [vmem:[%s9133_s2 + $0xc4] ss:$8 sps:$4 sm:$0xff]   ;;  %v1362_v41 = vld [vmem:[%s7481_s29] sm:$0xf] }
 0x14a   : > { %v1016_v44 = vpop.f32.mrb[8].mxu0  ;;  %1105 = vmatprep.subr.bf16.mxu1 %v1074_v43  ;;  %v6857_v43 = vld [vmem:[%s9133_s2 + $0xc0] ss:$8 sps:$4 sm:$0xff]  }
 0x14b   : > { %v1018_v45 = vpop.f32.mrb[9].mxu0  ;;  %1106 = vmatpush1.bf16.msra.mxu1 %v1073_v42  ;;  %v1063_v47 = vmax.f32 %v1016_v44, 0.0  ;;  %v7760_v42 = vld [vmem:[%s7481_s29 + $0x4] sm:$0xf] }
 0x14c   : > { %v1020_v46 = vpop.f32.mrb[10].mxu0  ;;  %v1064_v50 = vmax.f32 %v1018_v45, 0.0  ;;  %v7766_v44 = vcombine.low %v1362_v41, %v7760_v42  ;;  %v6862_v45 = vld [vmem:[%s9133_s2 + $0xd4] ss:$8 sps:$4 sm:$0xff]   ;;  %v6918_v41 = vld [vmem:[%s9133_s2 + $0x164] ss:$8 sps:$4 sm:$0xff]  }
 0x14d   : > { %v1065_v48 = vmax.f32 %v1020_v46, 0.0  ;;  %v1022_v49 = vpop.f32.mrb[11].mxu0  ;;  %v6860_v46 = vld [vmem:[%s9133_s2 + $0xd0] ss:$8 sps:$4 sm:$0xff]  }
 0x14e   : > { %v1066_v51 = vmax.f32 %v1022_v49, 0.0  ;;  %v6865_v49 = vld [vmem:[%s9133_s2 + $0xe4] ss:$8 sps:$4 sm:$0xff]  }
 0x14f   : > { %v1075_v52 = vpack.c.bf16 %v1065_v48, %v1063_v47  ;;  %v7775_v47 = vld [vmem:[%s7481_s29 + $0x8] sm:$0xff]   ;;  %v1427_v48 = vshll.u32 %v7766_v44, 16 }
 0x150   : > { %v1076_v53 = vpack.c.bf16 %v1066_v51, %v1064_v50  ;;  %v6863_v50 = vld [vmem:[%s9133_s2 + $0xe0] ss:$8 sps:$4 sm:$0xff]   ;;  %v1425_v51 = vshrl.u32 %v7766_v44, 16 }
 0x152   : > { %v1026_v54 = vpop.f32.mrb[12].mxu0  ;;  %1107 = vmatprep.subr.bf16.mxu1 %v1076_v53  ;;  %v1432_v53 = vshll.u32 %v7775_v47, 16 }
 0x153   : > { %v1028_v55 = vpop.f32.mrb[13].mxu0  ;;  %1108 = vmatpush1.bf16.msra.mxu1 %v1075_v52  ;;  %v1067_v57 = vmax.f32 %v1026_v54, 0.0  ;;  %v1429_v52 = vrot.slane %v1427_v48, 1  ;;  %v6868_v54 = vld [vmem:[%s9133_s2 + $0xf4] ss:$8 sps:$4 sm:$0xff]  }
 0x154   : > { %v1030_v56 = vpop.f32.mrb[14].mxu0  ;;  %v1068_v60 = vmax.f32 %v1028_v55, 0.0  ;;  %v6866_v55 = vld [vmem:[%s9133_s2 + $0xf0] ss:$8 sps:$4 sm:$0xff]   ;;  %v6921_v48 = vld [vmem:[%s9133_s2 + $0x174] ss:$8 sps:$4 sm:$0xff]  }
 0x155   : > { %v1069_v58 = vmax.f32 %v1030_v56, 0.0  ;;  %v1032_v59 = vpop.f32.mrb[15].mxu0  ;;  %v1430_v56 = vor.u32 %v1429_v52, %v1425_v51  ;;  %v1794_v51 = vrot.slane %v7775_v47, 1 }
 0x156   : > { %v1070_v61 = vmax.f32 %v1032_v59, 0.0  ;;  %v6873_v59 = vld [vmem:[%s9133_s2 + $0x4] ss:$8 sps:$4 sm:$0xff]  }
 0x157   : > { %v1077_v62 = vpack.c.bf16 %v1069_v58, %v1067_v57  ;;  %v1434_v57 = vrot.slane %v1432_v53, 1  ;;  %v7793_v58 = vld [vmem:[%s7481_s29 + $0x10] sm:$0xff]  }
 0x158   : > { %v1078_v63 = vpack.c.bf16 %v1070_v61, %v1068_v60  ;;  %v6871_v61 = vld [vmem:[%s9133_s2] ss:$8 sps:$4 sm:$0xff]   ;;  %v1796_v52 = vrot.slane %v7793_v58, 1 }
 0x159   : > { %v1098_v1 = vsel %vm870_vm0, %v1077_v62, 0  ;;  %v1435_v60 = vsel %vm500_vm1, %v1430_v56, %v1434_v57  ;;  %v1436_v62 = vshrl.u32 %v7775_v47, 16 }
 0x15a   : > { %5723 = vmatprep.subr.msk.bf16.mxu1 %vm870_vm0, %v1078_v63  ;;  %v1440_v63 = vshll.u32 %v7793_v58, 16  ;;  %v1797_v53 = vsel %vm870_vm0, %v1794_v51, %v1796_v52 }
 0x15b   : > { %1110 = vmatpush1.bf16.msra.mxu1 %v1098_v1  ;;  %v7808_v1 = vld [vmem:[%s7481_s29 + $0x18] sm:$0xf] }
 0x15c   : > { %6488 = vmatprep.subr.bf16.mxu1 %v6829_v0  ;;  %v6876_v0 = vld [vmem:[%s9133_s2 + $0x14] ss:$8 sps:$4 sm:$0xff]  }
 0x15e   : > { %5724 = vmatmul.mubr.msk.bf16.vlgmr.msra.gmra.mrb[0].mxu1 %vm1089_vm2, %v6827_v3  ;;  %v1386_v3 = vld [vmem:[%s7481_s29 + $0x1c] sm:$0xf] }
 0x15f   : > { %1145 = vmatprep.mubr.bf16.mxu1 %v7370_v2  ;;  %6489 = vmatpush3.bf16.msra.mxu1 %v6830_v4  ;;  %v6874_v4 = vld [vmem:[%s9133_s2 + $0x10] ss:$8 sps:$4 sm:$0xff]  }
 0x160   : > { %6490 = vmatprep.subr.bf16.mxu1 %v6831_v5  ;;  %v1438_v5 = vor.u32 %v1436_v62, %v1434_v57 }
 0x163   : > { %6491 = vmatpush3.bf16.msra.mxu1 %v6832_v6  ;;  %v1442_v6 = vrot.slane %v1440_v63, 1 }
 0x164   : > { %6492 = vmatprep.subr.bf16.mxu1 %v6833_v7  ;;  %v7816_v7 = vcombine.low %v7808_v1, %v1386_v3 }
 0x166   : > { %5725 = vmatmul.mubr.msk.bf16.gmra.mrb[4].mxu1 %vm1089_vm2, %v6828_v8  ;;  %v6880_v8 = vld [vmem:[%s9133_s2 + $0x24] ss:$8 sps:$4 sm:$0xff]  }
 0x167   : > { %6493 = vmatpush3.bf16.msra.mxu1 %v6834_v9  ;;  %v1443_v9 = vsel %vm500_vm1, %v1438_v5, %v1442_v6 }
 0x168   : > { %6494 = vmatprep.subr.bf16.mxu1 %v6835_v10  ;;  %v6878_v10 = vld [vmem:[%s9133_s2 + $0x20] ss:$8 sps:$4 sm:$0xff]  }
 0x16b   : > { %6495 = vmatpush3.bf16.msra.mxu1 %v6836_v11  ;;  %v1444_v11 = vshrl.u32 %v7793_v58, 16 }
 0x16c   : > { %6496 = vmatprep.subr.bf16.mxu1 %v6837_v12  ;;  %v1448_v12 = vshll.u32 %v7816_v7, 16 }
 0x16f   : > { %6497 = vmatpush3.bf16.msra.mxu1 %v6838_v13  ;;  %v6883_v13 = vld [vmem:[%s9133_s2 + $0x34] ss:$8 sps:$4 sm:$0xff]  }
 0x170   : > { %6498 = vmatprep.subr.bf16.mxu1 %v6839_v14  ;;  %v6881_v14 = vld [vmem:[%s9133_s2 + $0x30] ss:$8 sps:$4 sm:$0xff]  }
 0x173   : > { %6499 = vmatpush3.bf16.msra.mxu1 %v6840_v15  ;;  %v1446_v15 = vor.u32 %v1444_v11, %v1442_v6 }
 0x174   : > { %6500 = vmatprep.subr.bf16.mxu1 %v6841_v18  ;;  %v1450_v18 = vrot.slane %v1448_v12, 1 }
 0x177   : > { %6501 = vmatpush3.bf16.msra.mxu1 %v6842_v16  ;;  %v6887_v16 = vld [vmem:[%s9133_s2 + $0x44] ss:$8 sps:$4 sm:$0xff]  }
 0x178   : > { %6502 = vmatprep.subr.bf16.mxu1 %v6843_v20  ;;  %v1451_v20 = vsel %vm500_vm1, %v1446_v15, %v1450_v18 }
 0x17b   : > { %6503 = vmatpush3.bf16.msra.mxu1 %v6844_v21  ;;  %v6885_v21 = vld [vmem:[%s9133_s2 + $0x40] ss:$8 sps:$4 sm:$0xff]  }
 0x17c   : > { %1539 = vmatprep.subr.bf16.mxu1 %v6847_v23  ;;  %v6890_v23 = vld [vmem:[%s9133_s2 + $0x54] ss:$8 sps:$4 sm:$0xff]  }
 0x231   : > { %v1137_v24 = vpop.f32.mrb[0].mxu1 }
 0x232   : > { %v1139_v25 = vpop.f32.mrb[1].mxu1 }
 0x233   : > { %v1141_v17 = vpop.f32.mrb[2].mxu1 }
 0x234   : > { %v1156_v19 = vpack.c.bf16 %v1141_v17, %v1137_v24  ;;  %v1143_v26 = vpop.f32.mrb[3].mxu1  ;;  %v1452_v24 = vshrl.u32 %v7816_v7, 16  ;;  %v6893_v17 = vld [vmem:[%s9133_s2 + $0x64] ss:$8 sps:$4 sm:$0xff]  }
 0x235   : > { %v1157_v27 = vpack.c.bf16 %v1143_v26, %v1139_v25  ;;  %v6888_v25 = vld [vmem:[%s9133_s2 + $0x50] ss:$8 sps:$4 sm:$0xff]   ;;  %v6891_v26 = vld [vmem:[%s9133_s2 + $0x60] ss:$8 sps:$4 sm:$0xff]  }
 0x237   : > { %1320 = vmatprep.mubr.bf16.mxu1 %v1157_v27  ;;  %v6896_v27 = vld [vmem:[%s9133_s2 + $0x74] ss:$8 sps:$4 sm:$0xff]  }
 0x238   : > { %1321 = vmatmul.mubr.bf16.vlgmr.msra.gmra.mrb[8].mxu1 %v1156_v19  ;;  %v1454_v19 = vor.u32 %v1452_v24, %v1450_v18 }
 0x239   : > { %1540 = vmatpush1.bf16.msra.mxu1 %v6845_v28  ;;  %v1147_v34 = vpop.f32.mrb[4].mxu1  ;;  %v6894_v28 = vld [vmem:[%s9133_s2 + $0x70] ss:$8 sps:$4 sm:$0xff]  }
 0x23a   : > { %1541 = vmatprep.subr.bf16.mxu1 %v6850_v31  ;;  %v1149_v29 = vpop.f32.mrb[5].mxu1  ;;  %v6899_v31 = vld [vmem:[%s9133_s2 + $0x104] ss:$8 sps:$4 sm:$0xff]  }
 0x23b   : > { %v1151_v36 = vpop.f32.mrb[6].mxu1 }
 0x23c   : > { %v1158_v37 = vpack.c.bf16 %v1151_v36, %v1147_v34  ;;  %v1153_v32 = vpop.f32.mrb[7].mxu1  ;;  %v6902_v34 = vld [vmem:[%s9133_s2 + $0x114] ss:$8 sps:$4 sm:$0xff]   ;;  %v6903_v36 = vld [vmem:[%s9133_s2 + $0x120] ss:$8 sps:$4 sm:$0xff]  }
 0x23d   : > { %1542 = vmatpush1.bf16.msra.mxu1 %v6848_v33  ;;  %v1159_v39 = vpack.c.bf16 %v1153_v32, %v1149_v29  ;;  %v6897_v33 = vld [vmem:[%s9133_s2 + $0x100] ss:$8 sps:$4 sm:$0xff]   ;;  %v6905_v29 = vld [vmem:[%s9133_s2 + $0x124] ss:$8 sps:$4 sm:$0xff]   ;;  %v6906_v32 = vld [vmem:[%s9133_s2 + $0x130] ss:$8 sps:$4 sm:$0xff]  }
 0x23e   : > { %1543 = vmatprep.subr.bf16.mxu1 %v6853_v35  ;;  %v6900_v35 = vld [vmem:[%s9133_s2 + $0x110] ss:$8 sps:$4 sm:$0xff]  }
 0x23f   : > { %1328 = vmatprep.mubr.bf16.mxu1 %v1159_v39  ;;  %v6909_v39 = vld [vmem:[%s9133_s2 + $0x140] ss:$8 sps:$4 sm:$0xff]  }
 0x240   : > { %1329 = vmatmul.mubr.bf16.gmra.mrb[12].mxu1 %v1158_v37  ;;  %v6908_v37 = vld [vmem:[%s9133_s2 + $0x134] ss:$8 sps:$4 sm:$0xff]  }
 0x241   : > { %1544 = vmatpush1.bf16.msra.mxu1 %v6851_v38  ;;  %1571 = vmatprep.mubr.bf16.mxu1 %v7370_v2  ;;  %v6911_v38 = vld [vmem:[%s9133_s2 + $0x144] ss:$8 sps:$4 sm:$0xff]  }
 0x242   : > { %1545 = vmatprep.subr.bf16.mxu1 %v6856_v22  ;;  %v6914_v22 = vld [vmem:[%s9133_s2 + $0x154] ss:$8 sps:$4 sm:$0xff]  }
 0x245   : > { %1546 = vmatpush1.bf16.msra.mxu1 %v6854_v30  ;;  %v6912_v30 = vld [vmem:[%s9133_s2 + $0x150] ss:$8 sps:$4 sm:$0xff]  }
 0x246   : > { %1547 = vmatprep.subr.bf16.mxu1 %v6859_v40  ;;  %v1369_v40 = vld [vmem:[%s7481_s29 + $0x1c] sm:$0x7] }
 0x249   : > { %1548 = vmatpush1.bf16.msra.mxu1 %v6857_v43  ;;  %v1772_v43 = vld [vmem:[%s7481_s29] sm:$0xe] }
 0x24a   : > { %1549 = vmatprep.subr.bf16.mxu1 %v6862_v45  ;;  %v6916_v45 = vld [vmem:[%s9133_s2 + $0x160] ss:$8 sps:$4 sm:$0xff]  }
 0x24d   : > { %1550 = vmatpush1.bf16.msra.mxu1 %v6860_v46  ;;  %v5815_v46 = vcombine.low %v1772_v43, %v7760_v42 }
 0x24e   : > { %1551 = vmatprep.subr.bf16.mxu1 %v6865_v49  ;;  %v6919_v49 = vld [vmem:[%s9133_s2 + $0x170] ss:$8 sps:$4 sm:$0xff]  }
 0x251   : > { %1552 = vmatpush1.bf16.msra.mxu1 %v6863_v50  ;;  %v1793_v50 = vrot.slane %v5815_v46, 1 }
 0x252   : > { %1553 = vmatprep.subr.bf16.mxu1 %v6868_v54  ;;  %v1798_v54 = vrot.slane %v7816_v7, 1  ;;  %v1359_v7 = vld [vmem:[#allocation2 + $0x18] sm:$0xf] }
 0x253   : > { %v1795_v42 = vsel %vm870_vm0, %v1793_v50, %v1794_v51 }
 0x255   : > { %1554 = vmatpush1.bf16.msra.mxu1 %v6866_v55  ;;  %v1799_v55 = vsel %vm870_vm0, %v1796_v52, %v1798_v54  ;;  %v6923_v52 = vld [vmem:[%s9134_s3] sm:$0xff]  }
 0x256   : > { %1699 = vmatprep.subr.bf16.mxu1 %v6873_v59 }
 0x258   : > { %1572 = vmatmul.mubr.bf16.vlgmr.msra.gmra.mrb[16].mxu1 %v1435_v60 }
 0x259   : > { %1700 = vmatpush1.bf16.msra.mxu1 %v6871_v61  ;;  %1581 = vmatprep.mubr.bf16.mxu1 %v7370_v2 }
 0x25a   : > { %1701 = vmatprep.subr.bf16.mxu1 %v6876_v0 }
 0x25d   : > { %1702 = vmatpush1.bf16.msra.mxu1 %v6874_v4 }
 0x25e   : > { %1703 = vmatprep.subr.bf16.mxu1 %v6880_v8 }
 0x260   : > { %1582 = vmatmul.mubr.bf16.gmra.mrb[20].mxu1 %v1443_v9 }
 0x261   : > { %1704 = vmatpush1.bf16.msra.mxu1 %v6878_v10  ;;  %1591 = vmatprep.mubr.bf16.mxu1 %v7370_v2 }
 0x262   : > { %1705 = vmatprep.subr.bf16.mxu1 %v6883_v13 }
 0x265   : > { %1706 = vmatpush1.bf16.msra.mxu1 %v6881_v14 }
 0x266   : > { %1707 = vmatprep.subr.bf16.mxu1 %v6887_v16 }
 0x268   : > { %1592 = vmatmul.mubr.bf16.gmra.mrb[24].mxu1 %v1451_v20 }
 0x269   : > { %1708 = vmatpush1.bf16.msra.mxu1 %v6885_v21  ;;  %1601 = vmatprep.mubr.bf16.mxu1 %v7370_v2 }
 0x26a   : > { %1709 = vmatprep.subr.bf16.mxu1 %v6890_v23 }
 0x26d   : > { %1710 = vmatpush1.bf16.msra.mxu1 %v6888_v25 }
 0x26e   : > { %1711 = vmatprep.subr.bf16.mxu1 %v6893_v17 }
 0x270   : > { %1602 = vmatmul.mubr.bf16.gmra.mrb[28].mxu1 %v1454_v19 }
 0x271   : > { %1712 = vmatpush1.bf16.msra.mxu1 %v6891_v26  ;;  %1731 = vmatprep.mubr.bf16.mxu1 %v7370_v2 }
 0x272   : > { %1713 = vmatprep.subr.bf16.mxu1 %v6896_v27 }
 0x275   : > { %1714 = vmatpush1.bf16.msra.mxu1 %v6894_v28 }
 0x276   : > { %1884 = vmatprep.subr.bf16.mxu1 %v6899_v31 }
 0x278   : > { %1732 = vmatmul.mubr.bf16.vlgmr.msra.gmra.mrb[16].mxu1 %v7766_v44  ;;  %v5782_v44 = vcombine.low %v7808_v1, %v1369_v40 }
 0x279   : > { %1885 = vmatpush1.bf16.msra.mxu1 %v6897_v33  ;;  %1741 = vmatprep.mubr.bf16.mxu1 %v7370_v2 }
 0x27a   : > { %1886 = vmatprep.subr.bf16.mxu1 %v6902_v34 }
 0x27d   : > { %1887 = vmatpush1.bf16.msra.mxu1 %v6900_v35 }
 0x27e   : > { %1888 = vmatprep.subr.bf16.mxu1 %v6905_v29 }
 0x280   : > { %1742 = vmatmul.mubr.bf16.gmra.mrb[20].mxu1 %v7775_v47 }
 0x281   : > { %1889 = vmatpush1.bf16.msra.mxu1 %v6903_v36  ;;  %1751 = vmatprep.mubr.bf16.mxu1 %v7370_v2 }
 0x282   : > { %1890 = vmatprep.subr.bf16.mxu1 %v6908_v37 }
 0x285   : > { %1891 = vmatpush1.bf16.msra.mxu1 %v6906_v32 }
 0x286   : > { %1892 = vmatprep.subr.bf16.mxu1 %v6911_v38 }
 0x288   : > { %1752 = vmatmul.mubr.bf16.gmra.mrb[24].mxu1 %v7793_v58 }
 0x289   : > { %1893 = vmatpush1.bf16.msra.mxu1 %v6909_v39  ;;  %1761 = vmatprep.mubr.bf16.mxu1 %v7370_v2 }
 0x28a   : > { %1894 = vmatprep.subr.bf16.mxu1 %v6914_v22 }
 0x28d   : > { %1895 = vmatpush1.bf16.msra.mxu1 %v6912_v30 }
 0x28e   : > { %1896 = vmatprep.subr.bf16.mxu1 %v6918_v41 }
 0x290   : > { %1762 = vmatmul.mubr.bf16.gmra.mrb[28].mxu1 %v5782_v44 }
 0x291   : > { %1897 = vmatpush1.bf16.msra.mxu1 %v6916_v45  ;;  %1916 = vmatprep.mubr.bf16.mxu1 %v7370_v2 }
 0x292   : > { %1898 = vmatprep.subr.bf16.mxu1 %v6921_v48 }
 0x295   : > { %1899 = vmatpush1.bf16.msra.mxu1 %v6919_v49 }
 0x298   : > { %1917 = vmatmul.mubr.bf16.vlgmr.msra.gmra.mrb[16].mxu1 %v1795_v42 }
 0x299   : > { %1926 = vmatprep.mubr.bf16.mxu1 %v7370_v2 }
 0x2a0   : > { %1927 = vmatmul.mubr.bf16.gmra.mrb[20].mxu1 %v1797_v53  ;;  %v6925_v53 = vld [vmem:[%s9136_s5] sm:$0xff]  }
 0x2a1   : > { %1936 = vmatprep.mubr.bf16.mxu1 %v7370_v2 }
 0x2a8   : > { %1937 = vmatmul.mubr.bf16.gmra.mrb[24].mxu1 %v1799_v55  ;;  %v6924_v55 = vld [vmem:[%s9134_s3 + $0x8] sm:$0xff]  }
 0x2a9   : > { %1946 = vmatprep.mubr.bf16.mxu1 %v7370_v2 }
 0x2b0   : > { %1947 = vmatmul.mubr.bf16.gmra.mrb[28].mxu1 %v1798_v54  ;;  %v6926_v54 = vld [vmem:[%s9136_s5 + $0x8] sm:$0xff]  }
 0x30b   : > { %v6504_v47 = vpop.f32.mrb[8].mxu1 }
 0x30c   : > { %v6505_v56 = vpop.f32.mrb[9].mxu1 }
 0x30d   : > { %v6506_v57 = vadd.f32 %v6505_v56, %v6504_v47  ;;  %v6507_v59 = vpop.f32.mrb[10].mxu1  ;;  %v6927_v47 = vld [vmem:[%s9136_s5 + $0x10] sm:$0xff]   ;;  %v6928_v56 = vld [vmem:[%s9136_s5 + $0x18] sm:$0xff]  }
 0x30e   : > { %v6508_v60 = vpop.f32.mrb[11].mxu1 }
 0x30f   : > { %v6478_v61 = vpack.c.bf16 %v6506_v57, %v6506_v57  ;;  %v6509_v58 = vadd.f32 %v6508_v60, %v6507_v59  ;;  %v6929_v57 = vld [vmem:[%s9136_s5 + $0x20] sm:$0xff]   ;;  %v6930_v59 = vld [vmem:[%s9136_s5 + $0x28] sm:$0xff]   ;;  %v6931_v60 = vld [vmem:[%s9136_s5 + $0x30] sm:$0xff]  }
 0x311   : > { %1353 = vst [vmem:[#allocation2] sm:$0xf] %v6478_v61  ;;  %v6479_v62 = vpack.c.bf16 %v6509_v58, %v6509_v58  ;;  %v6932_v61 = vld [vmem:[%s9136_s5 + $0x38] sm:$0xff]   ;;  %v6933_v58 = vld [vmem:[%s9136_s5 + $0x40] sm:$0xff]  }
 0x313   : > { %1354 = vst [vmem:[#allocation2 + $0x8] sm:$0xf] %v6479_v62  ;;  %v6510_v63 = vpop.f32.mrb[12].mxu1  ;;  %v6934_v62 = vld [vmem:[%s9136_s5 + $0x48] sm:$0xff]  }
 0x314   : > { %v6511_v0 = vpop.f32.mrb[13].mxu1 }
 0x315   : > { %v6512_v1 = vadd.f32 %v6511_v0, %v6510_v63  ;;  %v6513_v3 = vpop.f32.mrb[14].mxu1  ;;  %v6935_v63 = vld [vmem:[%s9136_s5 + $0x50] sm:$0xff]   ;;  %v6936_v0 = vld [vmem:[%s9136_s5 + $0x58] sm:$0xff]  }
 0x316   : > { %v6514_v4 = vpop.f32.mrb[15].mxu1 }
 0x317   : > { %v6480_v5 = vpack.c.bf16 %v6512_v1, %v6512_v1  ;;  %v6515_v6 = vadd.f32 %v6514_v4, %v6513_v3  ;;  %v6937_v1 = vld [vmem:[%s9136_s5 + $0x60] sm:$0xff]   ;;  %v6938_v3 = vld [vmem:[%s9136_s5 + $0x68] sm:$0xff]   ;;  %v6939_v4 = vld [vmem:[%s9136_s5 + $0x70] sm:$0xff]  }
 0x319   : > { %1355 = vst [vmem:[#allocation2 + $0x10] sm:$0xf] %v6480_v5  ;;  %v6481_v8 = vpack.c.bf16 %v6515_v6, %v6515_v6  ;;  %v6940_v5 = vld [vmem:[%s9137_s6 + $0x174] ss:$12 sps:$4 sm:$0xff]   ;;  %v6942_v6 = vld [vmem:[%s9137_s6 + $0x178] ss:$12 sps:$4 sm:$0xff]  }
 0x31a   : > { %2723 = vmatprep.subr.bf16.mxu1 %v6942_v6 }
 0x31b   : > { %v1360_v9 = vsel %vm1358_vm5, %v6481_v8, %v1359_v7  ;;  %v6945_v7 = vld [vmem:[%s9137_s6 + $0x190] ss:$12 sps:$4 sm:$0xff]   ;;  %2724 = vmatpush1.bf16.msra.mxu1 %v6940_v5  ;;  %v6943_v8 = vld [vmem:[%s9137_s6 + $0x18c] ss:$12 sps:$4 sm:$0xff]   ;;  %v7010_v5 = vld [vmem:[%s9137_s6 + $0xc8] ss:$12 sps:$4 sm:$0xff]  }
 0x31c   : > { %1361 = vst [vmem:[#allocation2 + $0x18] sm:$0xf] %v1360_v9  ;;  %2725 = vmatprep.subr.bf16.mxu1 %v6945_v7  ;;  %v6948_v9 = vld [vmem:[%s9137_s6 + $0x1a8] ss:$12 sps:$4 sm:$0xff]   ;;  %vm4895_vm5 = vcmask 130048  }
 0x31f   : > { %2726 = vmatpush1.bf16.msra.mxu1 %v6943_v8 }
 0x320   : > { %2727 = vmatprep.subr.bf16.mxu1 %v6948_v9 }
 0x36b   : > { %v1918_v10 = vpop.f32.mrb[16].mxu1 }
 0x36c   : > { %v1920_v11 = vpop.f32.mrb[17].mxu1  ;;  %v1977_v13 = vmax.f32 %v1918_v10, 0.0  ;;  %v6967_v10 = vld [vmem:[%s9137_s6 + $0x23c] ss:$12 sps:$4 sm:$0xff]  }
 0x36d   : > { %v1922_v12 = vpop.f32.mrb[18].mxu1  ;;  %v1978_v18 = vmax.f32 %v1920_v11, 0.0  ;;  %v6946_v11 = vld [vmem:[%s9137_s6 + $0x1a4] ss:$12 sps:$4 sm:$0xff]  }
 0x36e   : > { %v1979_v14 = vmax.f32 %v1922_v12, 0.0  ;;  %v1924_v15 = vpop.f32.mrb[19].mxu1  ;;  %v6951_v12 = vld [vmem:[%s9137_s6 + $0x1c0] ss:$12 sps:$4 sm:$0xff]   ;;  %2728 = vmatpush1.bf16.msra.mxu1 %v6946_v11 }
 0x36f   : > { %v1980_v16 = vmax.f32 %v1924_v15, 0.0  ;;  %2729 = vmatprep.subr.bf16.mxu1 %v6951_v12  ;;  %v6952_v15 = vld [vmem:[%s9137_s6 + $0x1d4] ss:$12 sps:$4 sm:$0xff]  }
 0x370   : > { %v1993_v20 = vpack.c.bf16 %v1979_v14, %v1977_v13  ;;  %v6949_v13 = vld [vmem:[%s9137_s6 + $0x1bc] ss:$12 sps:$4 sm:$0xff]   ;;  %v6954_v14 = vld [vmem:[%s9137_s6 + $0x1d8] ss:$12 sps:$4 sm:$0xff]  }
 0x371   : > { %v1994_v21 = vpack.c.bf16 %v1980_v16, %v1978_v18  ;;  %v6957_v18 = vld [vmem:[%s9137_s6 + $0x1f0] ss:$12 sps:$4 sm:$0xff]   ;;  %v6955_v16 = vld [vmem:[%s9137_s6 + $0x1ec] ss:$12 sps:$4 sm:$0xff]  }
 0x372   : > { %2730 = vmatpush1.bf16.msra.mxu1 %v6949_v13 }
 0x373   : > { %v1928_v23 = vpop.f32.mrb[20].mxu1  ;;  %2023 = vmatprep.subr.bf16.mxu0 %v1994_v21  ;;  %2731 = vmatprep.subr.bf16.mxu1 %v6954_v14  ;;  %v6958_v21 = vld [vmem:[%s9137_s6 + $0x204] ss:$12 sps:$4 sm:$0xff]  }
 0x374   : > { %v1930_v24 = vpop.f32.mrb[21].mxu1  ;;  %2024 = vmatpush1.bf16.msra.mxu0 %v1993_v20  ;;  %v1981_v17 = vmax.f32 %v1928_v23, 0.0  ;;  %v6960_v20 = vld [vmem:[%s9137_s6 + $0x208] ss:$12 sps:$4 sm:$0xff]   ;;  %v6963_v23 = vld [vmem:[%s9137_s6 + $0x220] ss:$12 sps:$4 sm:$0xff]  }
 0x375   : > { %v1932_v25 = vpop.f32.mrb[22].mxu1  ;;  %v1982_v27 = vmax.f32 %v1930_v24, 0.0  ;;  %v6961_v24 = vld [vmem:[%s9137_s6 + $0x21c] ss:$12 sps:$4 sm:$0xff]  }
 0x376   : > { %v1983_v19 = vmax.f32 %v1932_v25, 0.0  ;;  %v1934_v26 = vpop.f32.mrb[23].mxu1  ;;  %2732 = vmatpush1.bf16.msra.mxu1 %v6952_v15  ;;  %v6966_v25 = vld [vmem:[%s9137_s6 + $0x238] ss:$12 sps:$4 sm:$0xff]  }
 0x377   : > { %v1984_v28 = vmax.f32 %v1934_v26, 0.0  ;;  %2733 = vmatprep.subr.bf16.mxu1 %v6957_v18  ;;  %v2278_v18 = vld [vmem:[#allocation2 + $0x1c] sm:$0xf] }
 0x378   : > { %v1995_v31 = vpack.c.bf16 %v1983_v19, %v1981_v17  ;;  %v6964_v17 = vld [vmem:[%s9137_s6 + $0x234] ss:$12 sps:$4 sm:$0xff]  }
 0x379   : > { %v1996_v33 = vpack.c.bf16 %v1984_v28, %v1982_v27 }
 0x37a   : > { %2734 = vmatpush1.bf16.msra.mxu1 %v6955_v16 }
 0x37b   : > { %v1938_v34 = vpop.f32.mrb[24].mxu1  ;;  %2025 = vmatprep.subr.bf16.mxu0 %v1996_v33  ;;  %2735 = vmatprep.subr.bf16.mxu1 %v6960_v20 }
 0x37c   : > { %v1940_v35 = vpop.f32.mrb[25].mxu1  ;;  %2026 = vmatpush1.bf16.msra.mxu0 %v1995_v31  ;;  %v1985_v36 = vmax.f32 %v1938_v34, 0.0  ;;  %v6968_v34 = vld [vmem:[%s9137_s6 + $0x17c] ss:$12 sps:$4 sm:$0xff]  }
 0x37d   : > { %v1942_v29 = vpop.f32.mrb[26].mxu1  ;;  %v1986_v38 = vmax.f32 %v1940_v35, 0.0 }
 0x37e   : > { %v1987_v37 = vmax.f32 %v1942_v29, 0.0  ;;  %v1944_v32 = vpop.f32.mrb[27].mxu1  ;;  %2736 = vmatpush1.bf16.msra.mxu1 %v6958_v21 }
 0x37f   : > { %v1988_v39 = vmax.f32 %v1944_v32, 0.0  ;;  %2737 = vmatprep.subr.bf16.mxu1 %v6963_v23 }
 0x380   : > { %v1997_v22 = vpack.c.bf16 %v1987_v37, %v1985_v36 }
 0x381   : > { %v1998_v30 = vpack.c.bf16 %v1988_v39, %v1986_v38  ;;  %v6971_v39 = vld [vmem:[%s9137_s6 + $0x250] ss:$12 sps:$4 sm:$0xff]  }
 0x382   : > { %2738 = vmatpush1.bf16.msra.mxu1 %v6961_v24 }
 0x383   : > { %v1948_v40 = vpop.f32.mrb[28].mxu1  ;;  %2027 = vmatprep.subr.bf16.mxu0 %v1998_v30  ;;  %2739 = vmatprep.subr.bf16.mxu1 %v6966_v25  ;;  %v6969_v30 = vld [vmem:[%s9137_s6 + $0x24c] ss:$12 sps:$4 sm:$0xff]  }
 0x384   : > { %v1950_v41 = vpop.f32.mrb[29].mxu1  ;;  %2028 = vmatpush1.bf16.msra.mxu0 %v1997_v22  ;;  %v1989_v44 = vmax.f32 %v1948_v40, 0.0  ;;  %v6972_v22 = vld [vmem:[%s9137_s6 + $0x254] ss:$12 sps:$4 sm:$0xff]  }
 0x385   : > { %v1952_v43 = vpop.f32.mrb[30].mxu1  ;;  %v1990_v48 = vmax.f32 %v1950_v41, 0.0  ;;  %v6973_v40 = vld [vmem:[%s9137_s6 + $0x194] ss:$12 sps:$4 sm:$0xff]  }
 0x386   : > { %v1991_v45 = vmax.f32 %v1952_v43, 0.0  ;;  %v1954_v46 = vpop.f32.mrb[31].mxu1  ;;  %2740 = vmatpush1.bf16.msra.mxu1 %v6964_v17  ;;  %v6976_v41 = vld [vmem:[%s9137_s6 + $0x268] ss:$12 sps:$4 sm:$0xff]   ;;  %v6977_v43 = vld [vmem:[%s9137_s6 + $0x26c] ss:$12 sps:$4 sm:$0xff]  }
 0x387   : > { %v1992_v49 = vmax.f32 %v1954_v46, 0.0  ;;  %2741 = vmatprep.subr.bf16.mxu1 %v6971_v39  ;;  %v6981_v46 = vld [vmem:[%s9137_s6 + $0x280] ss:$12 sps:$4 sm:$0xff]  }
 0x388   : > { %v1999_v50 = vpack.c.bf16 %v1991_v45, %v1989_v44  ;;  %v6974_v44 = vld [vmem:[%s9137_s6 + $0x264] ss:$12 sps:$4 sm:$0xff]   ;;  %v6978_v45 = vld [vmem:[%s9137_s6 + $0x1ac] ss:$12 sps:$4 sm:$0xff]  }
 0x389   : > { %v2000_v51 = vpack.c.bf16 %v1992_v49, %v1990_v48  ;;  %v6982_v48 = vld [vmem:[%s9137_s6 + $0x284] ss:$12 sps:$4 sm:$0xff]   ;;  %v6979_v49 = vld [vmem:[%s9137_s6 + $0x27c] ss:$12 sps:$4 sm:$0xff]  }
 0x38a   : > { %v2018_v42 = vsel %vm870_vm0, %v1999_v50, 0  ;;  %2742 = vmatpush1.bf16.msra.mxu1 %v6969_v30  ;;  %v6983_v50 = vld [vmem:[%s9137_s6 + $0x1c4] ss:$12 sps:$4 sm:$0xff]  }
 0x38b   : > { %5834 = vmatprep.subr.msk.bf16.mxu0 %vm870_vm0, %v2000_v51  ;;  %2743 = vmatprep.subr.bf16.mxu1 %v6976_v41  ;;  %v6986_v51 = vld [vmem:[%s9137_s6 + $0x298] ss:$12 sps:$4 sm:$0xff]   ;;  %v7007_v41 = vld [vmem:[%s9137_s6] ss:$12 sps:$4 sm:$0xff]  }
 0x38c   : > { %2030 = vmatpush1.bf16.msra.mxu0 %v2018_v42  ;;  %v6984_v42 = vld [vmem:[%s9137_s6 + $0x294] ss:$12 sps:$4 sm:$0xff]  }
 0x38d   : > { %2207 = vmatprep.subr.bf16.mxu0 %v7370_v2 }
 0x38e   : > { %2744 = vmatpush1.bf16.msra.mxu1 %v6974_v44 }
 0x38f   : > { %5835 = vmatmul.mubr.msk.bf16.vlgmr.msra.gmra.mrb[16].mxu0 %vm1089_vm2, %v6923_v52  ;;  %2745 = vmatprep.subr.bf16.mxu1 %v6981_v46  ;;  %v6987_v52 = vld [vmem:[%s9137_s6 + $0x29c] ss:$12 sps:$4 sm:$0xff]  }
 0x390   : > { %2065 = vmatprep.mubr.bf16.mxu0 %v7370_v2  ;;  %2208 = vmatpush1.bf16.msra.mxu0 %v6925_v53  ;;  %v6988_v53 = vld [vmem:[%s9137_s6 + $0x1dc] ss:$12 sps:$4 sm:$0xff]  }
 0x391   : > { %2209 = vmatprep.subr.bf16.mxu0 %v7370_v2 }
 0x392   : > { %2746 = vmatpush1.bf16.msra.mxu1 %v6979_v49  ;;  %v7015_v49 = vld [vmem:[%s9137_s6 + $0xe0] ss:$12 sps:$4 sm:$0xff]  }
 0x393   : > { %2747 = vmatprep.subr.bf16.mxu1 %v6986_v51  ;;  %v7016_v51 = vld [vmem:[%s9137_s6 + $0x20] ss:$12 sps:$4 sm:$0xff]  }
 0x394   : > { %2210 = vmatpush1.bf16.msra.mxu0 %v6926_v54  ;;  %v6989_v54 = vld [vmem:[%s9137_s6 + $0x2ac] ss:$12 sps:$4 sm:$0xff]  }
 0x395   : > { %2211 = vmatprep.subr.bf16.mxu0 %v7370_v2 }
 0x396   : > { %2748 = vmatpush1.bf16.msra.mxu1 %v6984_v42  ;;  %v7019_v42 = vld [vmem:[%s9137_s6 + $0x34] ss:$12 sps:$4 sm:$0xff]  }
 0x397   : > { %5836 = vmatmul.mubr.msk.bf16.gmra.mrb[20].mxu0 %vm1089_vm2, %v6924_v55  ;;  %v6991_v55 = vld [vmem:[%s9137_s6 + $0x2b0] ss:$12 sps:$4 sm:$0xff]  }
 0x398   : > { %2212 = vmatpush1.bf16.msra.mxu0 %v6927_v47  ;;  %v6992_v47 = vld [vmem:[%s9137_s6 + $0x2b4] ss:$12 sps:$4 sm:$0xff]   ;;  %2749 = vmatprep.subr.bf16.mxu1 %v6991_v55  ;;  %v7021_v55 = vld [vmem:[%s9137_s6 + $0x38] ss:$12 sps:$4 sm:$0xff]  }
 0x399   : > { %2213 = vmatprep.subr.bf16.mxu0 %v7370_v2 }
 0x39a   : > { %2750 = vmatpush1.bf16.msra.mxu1 %v6989_v54  ;;  %v7017_v54 = vld [vmem:[%s9137_s6 + $0x30] ss:$12 sps:$4 sm:$0xff]  }
 0x39c   : > { %2214 = vmatpush1.bf16.msra.mxu0 %v6928_v56  ;;  %v6993_v56 = vld [vmem:[%s9137_s6 + $0x1f4] ss:$12 sps:$4 sm:$0xff]  }
 0x39d   : > { %2215 = vmatprep.subr.bf16.mxu0 %v7370_v2 }
 0x3a0   : > { %2216 = vmatpush1.bf16.msra.mxu0 %v6929_v57  ;;  %v6996_v57 = vld [vmem:[%s9137_s6 + $0x2c8] ss:$12 sps:$4 sm:$0xff]  }
 0x3a1   : > { %2217 = vmatprep.subr.bf16.mxu0 %v7370_v2  ;;  %2751 = vmatprep.subr.bf16.mxu1 %v6996_v57  ;;  %v7025_v57 = vld [vmem:[%s9137_s6 + $0x110] ss:$12 sps:$4 sm:$0xff]  }
 0x3a4   : > { %2218 = vmatpush1.bf16.msra.mxu0 %v6930_v59  ;;  %v6997_v59 = vld [vmem:[%s9137_s6 + $0x2cc] ss:$12 sps:$4 sm:$0xff]  }
 0x3a5   : > { %2219 = vmatprep.subr.bf16.mxu0 %v7370_v2 }
 0x3a8   : > { %2220 = vmatpush1.bf16.msra.mxu0 %v6931_v60  ;;  %v5918_v60 = vld [vmem:[%s9137_s6 + $0x2dc] sm:$0xff] }
 0x3a9   : > { %2221 = vmatprep.subr.bf16.mxu0 %v7370_v2 }
 0x3ac   : > { %2222 = vmatpush1.bf16.msra.mxu0 %v6932_v61  ;;  %v6994_v61 = vld [vmem:[%s9137_s6 + $0x2c4] ss:$12 sps:$4 sm:$0xff]  }
 0x3ad   : > { %2223 = vmatprep.subr.bf16.mxu0 %v7370_v2  ;;  %2752 = vmatpush1.bf16.msra.mxu1 %v6994_v61  ;;  %v7029_v61 = vld [vmem:[%s9137_s6 + $0x64] ss:$12 sps:$4 sm:$0xff]  }
 0x3b0   : > { %2224 = vmatpush1.bf16.msra.mxu0 %v6933_v58  ;;  %v6998_v58 = vld [vmem:[%s9137_s6 + $0x20c] ss:$12 sps:$4 sm:$0xff]  }
 0x3b1   : > { %2225 = vmatprep.subr.bf16.mxu0 %v7370_v2 }
 0x3b4   : > { %2226 = vmatpush1.bf16.msra.mxu0 %v6934_v62  ;;  %v5970_v62 = vcombine.high %v5918_v60, %v5918_v60 }
 0x3b5   : > { %2227 = vmatprep.subr.bf16.mxu0 %v7370_v2 }
 0x3b6   : > { %5972 = vmatprep.subr.msk.bf16.mxu1 %vm1356_vm3, %v5970_v62  ;;  %v7027_v62 = vld [vmem:[%s9137_s6 + $0x60] ss:$12 sps:$4 sm:$0xff]  }
 0x3b8   : > { %2228 = vmatpush1.bf16.msra.mxu0 %v6935_v63  ;;  %v5969_v63 = vcombine.low %v5918_v60, %v5918_v60  ;;  %v7026_v60 = vld [vmem:[%s9137_s6 + $0x50] ss:$12 sps:$4 sm:$0xff]  }
 0x3b9   : > { %2229 = vmatprep.subr.bf16.mxu0 %v7370_v2 }
 0x3bc   : > { %2230 = vmatpush1.bf16.msra.mxu0 %v6936_v0  ;;  %v7000_v0 = vld [vmem:[%s9137_s6 + $0x2e4] ss:$0 sps:$4 sm:$0xff]  }
 0x3bd   : > { %2231 = vmatprep.subr.bf16.mxu0 %v7370_v2 }
 0x3c0   : > { %2232 = vmatpush1.bf16.msra.mxu0 %v6937_v1  ;;  %v2715_v1 = vsel %vm1356_vm3, %v5969_v63, 0  ;;  %v7031_v63 = vld [vmem:[%s9137_s6 + $0x68] ss:$12 sps:$4 sm:$0xff]  }
 0x3c1   : > { %2233 = vmatprep.subr.bf16.mxu0 %v7370_v2  ;;  %2754 = vmatpush1.bf16.msra.mxu1 %v2715_v1  ;;  %v7035_v1 = vld [vmem:[%s9137_s6 + $0x140] ss:$12 sps:$4 sm:$0xff]  }
 0x3c4   : > { %2234 = vmatpush1.bf16.msra.mxu0 %v6938_v3  ;;  %v7002_v3 = vld [vmem:[%s9137_s6 + $0x224] ss:$12 sps:$4 sm:$0xff]  }
 0x3c5   : > { %2235 = vmatprep.subr.bf16.mxu0 %v7370_v2 }
 0x3c8   : > { %2236 = vmatpush1.bf16.msra.mxu0 %v6939_v4  ;;  %v7009_v4 = vld [vmem:[%s9137_s6 + $0x4] ss:$12 sps:$4 sm:$0xff]  }
 0x3c9   : > { %6516 = vmatprep.subr.bf16.mxu0 %v6967_v10  ;;  %3088 = vmatprep.subr.bf16.mxu1 %v7009_v4  ;;  %v7036_v4 = vld [vmem:[%s9137_s6 + $0x80] ss:$12 sps:$4 sm:$0xff]  }
 0x462   : > { %v2057_v19 = vpop.f32.mrb[16].mxu0 }
 0x463   : > { %v2059_v26 = vpop.f32.mrb[17].mxu0 }
 0x464   : > { %v2061_v27 = vpop.f32.mrb[18].mxu0 }
 0x465   : > { %v2076_v28 = vpack.c.bf16 %v2061_v27, %v2057_v19  ;;  %v2063_v31 = vpop.f32.mrb[19].mxu0 }
 0x466   : > { %v2077_v33 = vpack.c.bf16 %v2063_v31, %v2059_v26 }
 0x468   : > { %5852 = vmatprep.mubr.msk.bf16.mxu0 %vm2200_vm6, %v2077_v33 }
 0x469   : > { %2240 = vmatmul.mubr.bf16.vlgmr.msra.gmra.mrb[24].mxu0 %v2076_v28 }
 0x46a   : > { %v2067_v35 = vpop.f32.mrb[20].mxu0  ;;  %6517 = vmatpush3.bf16.msra.mxu0 %v6968_v34 }
 0x46b   : > { %v2069_v29 = vpop.f32.mrb[21].mxu0  ;;  %6518 = vmatprep.subr.bf16.mxu0 %v6972_v22 }
 0x46c   : > { %v2071_v36 = vpop.f32.mrb[22].mxu0 }
 0x46d   : > { %v2078_v37 = vpack.c.bf16 %v2071_v36, %v2067_v35  ;;  %v2073_v32 = vpop.f32.mrb[23].mxu0 }
 0x46e   : > { %v2079_v38 = vpack.c.bf16 %v2073_v32, %v2069_v29  ;;  %6519 = vmatpush3.bf16.msra.mxu0 %v6973_v40 }
 0x46f   : > { %6520 = vmatprep.subr.bf16.mxu0 %v6977_v43  ;;  %v7011_v43 = vld [vmem:[%s9137_s6 + $0x8] ss:$12 sps:$4 sm:$0xff]  }
 0x470   : > { %5853 = vmatprep.mubr.msk.bf16.mxu0 %vm2200_vm6, %v2079_v38  ;;  %vm5535_vm6 = vcmask 261120  }
 0x471   : > { %2248 = vmatmul.mubr.bf16.gmra.mrb[28].mxu0 %v2078_v37 }
 0x472   : > { %6521 = vmatpush3.bf16.msra.mxu0 %v6978_v45 }
 0x473   : > { %6522 = vmatprep.subr.bf16.mxu0 %v6982_v48  ;;  %v7014_v48 = vld [vmem:[%s9137_s6 + $0x1c] ss:$12 sps:$4 sm:$0xff]  }
 0x476   : > { %6523 = vmatpush3.bf16.msra.mxu0 %v6983_v50  ;;  %v7012_v50 = vld [vmem:[%s9137_s6 + $0x18] ss:$12 sps:$4 sm:$0xff]  }
 0x477   : > { %6524 = vmatprep.subr.bf16.mxu0 %v6987_v52  ;;  %v7020_v52 = vld [vmem:[%s9137_s6 + $0xf8] ss:$12 sps:$4 sm:$0xff]  }
 0x47a   : > { %6525 = vmatpush3.bf16.msra.mxu0 %v6988_v53 }
 0x47b   : > { %6526 = vmatprep.subr.bf16.mxu0 %v6992_v47 }
 0x47e   : > { %6527 = vmatpush3.bf16.msra.mxu0 %v6993_v56  ;;  %v7024_v56 = vld [vmem:[%s9137_s6 + $0x4c] ss:$12 sps:$4 sm:$0xff]  }
 0x47f   : > { %6528 = vmatprep.subr.bf16.mxu0 %v6997_v59  ;;  %v7022_v59 = vld [vmem:[%s9137_s6 + $0x48] ss:$12 sps:$4 sm:$0xff]  }
 0x482   : > { %6529 = vmatpush3.bf16.msra.mxu0 %v6998_v58  ;;  %v7030_v58 = vld [vmem:[%s9137_s6 + $0x128] ss:$12 sps:$4 sm:$0xff]  }
 0x483   : > { %6734 = vmatprep.subr.msk.bf16.mxu0 %vm1356_vm3, %v7000_v0  ;;  %v7034_v0 = vld [vmem:[%s9137_s6 + $0x7c] ss:$12 sps:$4 sm:$0xff]  }
 0x486   : > { %6531 = vmatpush3.bf16.msra.mxu0 %v7002_v3  ;;  %v7032_v3 = vld [vmem:[%s9137_s6 + $0x78] ss:$12 sps:$4 sm:$0xff]  }
 0x487   : > { %6544 = vmatprep.subr.bf16.mxu0 %v7010_v5  ;;  %v7039_v5 = vld [vmem:[%s9137_s6 + $0x94] ss:$12 sps:$4 sm:$0xff]  }
 0x53c   : > { %v2241_v6 = vpop.f32.mrb[24].mxu0 }
 0x53d   : > { %v6482_v7 = vpack.c.bf16 %v2241_v6, %v2241_v6  ;;  %v2243_v8 = vpop.f32.mrb[25].mxu0  ;;  %v7040_v6 = vld [vmem:[%s9137_s6 + $0x158] ss:$12 sps:$4 sm:$0xff]  }
 0x53e   : > { %v2244_v9 = vpop.f32.mrb[26].mxu0  ;;  %v7041_v8 = vld [vmem:[%s9137_s6 + $0x98] ss:$12 sps:$4 sm:$0xff]  }
 0x53f   : > { %2273 = vst.msk [vmem:[#allocation2 + $0x4] sm:$0xf] %vm2272_vm7, %v6482_v7  ;;  %v6483_v10 = vpack.c.bf16 %v2244_v9, %v2244_v9  ;;  %v2246_v11 = vpop.f32.mrb[27].mxu0  ;;  %v7037_v7 = vld [vmem:[%s9137_s6 + $0x90] ss:$12 sps:$4 sm:$0xff]  }
 0x540   : > { %v7044_v9 = vld [vmem:[%s9137_s6 + $0xac] ss:$12 sps:$4 sm:$0xff]   ;;  %v7042_v11 = vld [vmem:[%s9137_s6 + $0xa8] ss:$12 sps:$4 sm:$0xff]  }
 0x541   : > { %2274 = vst.msk [vmem:[#allocation2 + $0xc] sm:$0xf] %vm2272_vm7, %v6483_v10  ;;  %v7045_v10 = vld [vmem:[%s9137_s6 + $0x170] ss:$0 sps:$4 sm:$0xff]  }
 0x544   : > { %v2249_v12 = vpop.f32.mrb[28].mxu0 }
 0x545   : > { %v6484_v13 = vpack.c.bf16 %v2249_v12, %v2249_v12  ;;  %v2251_v14 = vpop.f32.mrb[29].mxu0  ;;  %v7046_v12 = vld [vmem:[%s9137_s6 + $0xb0] ss:$12 sps:$4 sm:$0xff]  }
 0x546   : > { %v2252_v15 = vpop.f32.mrb[30].mxu0  ;;  %v2281_v21 = vld [vmem:[#allocation2] sm:$0xff]  ;;  %v7050_v14 = vld [vmem:[%s9137_s6 + $0x3b0] ss:$12 sps:$4 sm:$0xff]  }
 0x547   : > { %2275 = vst.msk [vmem:[#allocation2 + $0x14] sm:$0xf] %vm2272_vm7, %v6484_v13  ;;  %v6485_v16 = vpack.c.bf16 %v2252_v15, %v2252_v15  ;;  %v2254_v20 = vpop.f32.mrb[31].mxu0  ;;  %v7049_v13 = vld [vmem:[%s9137_s6 + $0xc4] ss:$12 sps:$4 sm:$0xff]  }
 0x548   : > { %v8154_v23 = vld [vmem:[#allocation2 + $0x8] sm:$0xff] }
 0x549   : > { %v2279_v24 = vsel %vm2277_vm8, %v6485_v16, %v2278_v18  ;;  %v5921_v25 = vcombine.high %v2281_v21, %v8154_v23  ;;  %v8158_v17 = vcombine.low %v2281_v21, %v8154_v23  ;;  %v7047_v15 = vld [vmem:[%s9137_s6 + $0xc0] ss:$12 sps:$4 sm:$0xff]   ;;  %v7051_v16 = vld [vmem:[%s9137_s6 + $0x2f0] ss:$12 sps:$4 sm:$0xff]   ;;  %v7055_v21 = vld [vmem:[%s9137_s6 + $0x3c8] ss:$12 sps:$4 sm:$0xff]  }
 0x54a   : > { %2280 = vst [vmem:[#allocation2 + $0x1c] sm:$0xf] %v2279_v24  ;;  %v7054_v20 = vld [vmem:[%s9137_s6 + $0xdc] ss:$12 sps:$4 sm:$0xff]  }
 0x54b   : > { %v2441_v19 = vshll.u32 %v5921_v25, 16  ;;  %v2429_v26 = vshll.u32 %v8158_v17, 16  ;;  %v2439_v29 = vshrl.u32 %v5921_v25, 16  ;;  %v2427_v37 = vshrl.u32 %v8158_v17, 16 }
 0x54d   : > { %v2443_v31 = vrot.slane %v2441_v19, 1  ;;  %v2431_v35 = vrot.slane %v2429_v26, 1  ;;  %v8301_v19 = vld [vmem:[#allocation2] sm:$0xee]  ;;  %v7056_v26 = vld [vmem:[%s9137_s6 + $0x308] ss:$12 sps:$4 sm:$0xff]  }
 0x54e   : > { %v8161_v27 = vld [vmem:[#allocation2 + $0x10] sm:$0xff] }
 0x54f   : > { %v2444_v38 = vor.u32 %v2443_v31, %v2439_v29  ;;  %v2432_v22 = vor.u32 %v2431_v35, %v2427_v37  ;;  %v6093_v31 = vcombine.high %v8301_v19, %v8154_v23  ;;  %v7060_v35 = vld [vmem:[%s9137_s6 + $0x3e0] ss:$12 sps:$4 sm:$0xff]  }
 0x550   : > { %v7061_v37 = vld [vmem:[%s9137_s6 + $0x320] ss:$12 sps:$4 sm:$0xff]  }
 0x551   : > { %v2284_v28 = vld [vmem:[#allocation2 + $0x18] sm:$0x77] }
 0x552   : > { %v8164_v33 = vcombine.low %v8161_v27, %v2284_v28  ;;  %v8167_v34 = vcombine.high %v8161_v27, %v2284_v28  ;;  %v8282_v18 = vld [vmem:[#allocation2 + $0x18] sm:$0xff]  ;;  %v7059_v28 = vld [vmem:[%s9137_s6 + $0xf4] ss:$12 sps:$4 sm:$0xff]  }
 0x553   : > { %v6095_v24 = vcombine.high %v8161_v27, %v8282_v18 }
 0x554   : > { %v2446_v36 = vshll.u32 %v8167_v34, 16  ;;  %v2434_v32 = vshll.u32 %v8164_v33, 16  ;;  %v2453_v40 = vshrl.u32 %v8167_v34, 16  ;;  %v2450_v53 = vshrl.u32 %v8164_v33, 16 }
 0x555   : > { %v8314_v29 = vrot.slane %v6095_v24, 1  ;;  %v7128_v24 = vld [vmem:[%s9137_s6 + $0x40c] ss:$12 sps:$4 sm:$0xff]  }
 0x556   : > { %v2448_v39 = vrot.slane %v2446_v36, 1  ;;  %v2436_v30 = vrot.slane %v2434_v32, 1  ;;  %v7057_v36 = vld [vmem:[%s9137_s6 + $0xf0] ss:$12 sps:$4 sm:$0xff]   ;;  %v3268_v32 = vrot.slane %v6093_v31, 1 }
 0x557   : > { %v6090_v31 = vld [vmem:[%s9137_s6 + $0x450] sm:$0xff] }
 0x558   : > { %v2449_v44 = vsel %vm500_vm1, %v2444_v38, %v2448_v39  ;;  %v2437_v45 = vsel %vm500_vm1, %v2432_v22, %v2436_v30  ;;  %v2455_v46 = vor.u32 %v2453_v40, %v2448_v39  ;;  %v2452_v47 = vor.u32 %v2450_v53, %v2436_v30  ;;  %v7068_v38 = vld [vmem:[%s9137_s6 + $0x10c] ss:$12 sps:$4 sm:$0xff]   ;;  %v7066_v30 = vld [vmem:[%s9137_s6 + $0x108] ss:$12 sps:$4 sm:$0xff]   ;;  %v7081_v53 = vld [vmem:[%s9137_s6 + $0x150] ss:$12 sps:$4 sm:$0xff]  }
 0x559   : > { %5973 = vmatprep.mubr.msk.bf16.mxu1 %vm2706_vm9, %v2449_v44  ;;  %5975 = vmatprep.mubr.msk.bf16.mxu0 %vm2706_vm9, %v2449_v44  ;;  %v7069_v39 = vld [vmem:[%s9137_s6 + $0x3f8] ss:$12 sps:$4 sm:$0xff]   ;;  %v8331_v22 = vsel %vm870_vm0, %v3268_v32, %v8314_v29  ;;  %v7071_v44 = vld [vmem:[%s9137_s6 + $0x120] ss:$12 sps:$4 sm:$0xff]   ;;  %vm4149_vm1 = vmor %vm4148_vm14, %vm1356_vm3 }
 0x55a   : > { %2756 = vmatmul.mubr.bf16.vlgmr.msra.gmra.mrb[32].mxu1 %v2437_v45  ;;  %2809 = vmatmul.mubr.bf16.vlgmr.msra.gmra.mrb[32].mxu0 %v2437_v45  ;;  %v7070_v40 = vld [vmem:[%s9137_s6 + $0x338] ss:$12 sps:$4 sm:$0xff]   ;;  %v7075_v45 = vld [vmem:[%s9137_s6 + $0x350] ss:$12 sps:$4 sm:$0xff]  }
 0x55b   : > { %3089 = vmatpush1.bf16.msra.mxu1 %v7007_v41  ;;  %6545 = vmatpush3.bf16.msra.mxu0 %v7011_v43  ;;  %v7073_v41 = vld [vmem:[%s9137_s6 + $0x124] ss:$12 sps:$4 sm:$0xff]  }
 0x55c   : > { %5974 = vmatprep.mubr.msk.bf16.mxu1 %vm2706_vm9, %v2455_v46  ;;  %5976 = vmatprep.mubr.msk.bf16.mxu0 %vm2706_vm9, %v2455_v46  ;;  %v7074_v43 = vld [vmem:[%s9137_s6 + $0x410] ss:$12 sps:$4 sm:$0xff]  }
 0x55d   : > { %3090 = vmatprep.subr.bf16.mxu1 %v7014_v48  ;;  %6546 = vmatprep.subr.bf16.mxu0 %v7015_v49  ;;  %v7078_v46 = vld [vmem:[%s9137_s6 + $0x13c] ss:$12 sps:$4 sm:$0xff]   ;;  %v7076_v49 = vld [vmem:[%s9137_s6 + $0x138] ss:$12 sps:$4 sm:$0xff]  }
 0x55e   : > { %v7079_v48 = vld [vmem:[%s9137_s6 + $0x428] ss:$12 sps:$4 sm:$0xff]  }
 0x55f   : > { %3091 = vmatpush1.bf16.msra.mxu1 %v7012_v50  ;;  %6547 = vmatpush3.bf16.msra.mxu0 %v7016_v51  ;;  %v7080_v50 = vld [vmem:[%s9137_s6 + $0x368] ss:$12 sps:$4 sm:$0xff]  }
 0x560   : > { %3092 = vmatprep.subr.bf16.mxu1 %v7019_v42  ;;  %6548 = vmatprep.subr.bf16.mxu0 %v7020_v52  ;;  %v7083_v51 = vld [vmem:[%s9137_s6 + $0x154] ss:$12 sps:$4 sm:$0xff]   ;;  %v2345_v52 = vld [vmem:[%s9137_s6 + $0x168] sm:$0xff] }
 0x561   : > { %v7084_v42 = vld [vmem:[%s9137_s6 + $0x440] ss:$12 sps:$4 sm:$0xff]  }
 0x562   : > { %2766 = vmatmul.mubr.bf16.gmra.mrb[36].mxu1 %v2452_v47  ;;  %2817 = vmatmul.mubr.bf16.gmra.mrb[36].mxu0 %v2452_v47  ;;  %v6022_v47 = vcombine.low %v2345_v52, %v2345_v52 }
 0x563   : > { %3093 = vmatpush1.bf16.msra.mxu1 %v7017_v54  ;;  %6549 = vmatpush3.bf16.msra.mxu0 %v7021_v55  ;;  %v7085_v54 = vld [vmem:[%s9137_s6 + $0x380] ss:$12 sps:$4 sm:$0xff]   ;;  %v6023_v55 = vcombine.high %v2345_v52, %v2345_v52 }
 0x564   : > { %6026 = vmatprep.mubr.msk.bf16.mxu1 %vm2706_vm9, %v5921_v25  ;;  %6028 = vmatprep.mubr.msk.bf16.mxu0 %vm2706_vm9, %v5921_v25  ;;  %v7052_v25 = vld [vmem:[%s9137_s6 + $0xd8] ss:$12 sps:$4 sm:$0xff]  }
 0x565   : > { %3094 = vmatprep.subr.bf16.mxu1 %v7024_v56  ;;  %6550 = vmatprep.subr.bf16.mxu0 %v7025_v57  ;;  %v7087_v56 = vld [vmem:[%s9137_s6 + $0x458] ss:$0 sps:$4 sm:$0xff]   ;;  %v6094_v57 = vcombine.low %v8161_v27, %v8282_v18  ;;  %v7122_v18 = vld [vmem:[%s9137_s6 + $0x3dc] ss:$12 sps:$4 sm:$0xff]  }
 0x567   : > { %3095 = vmatpush1.bf16.msra.mxu1 %v7022_v59  ;;  %6551 = vmatpush3.bf16.msra.mxu0 %v7026_v60  ;;  %v6092_v59 = vcombine.low %v8301_v19, %v8154_v23  ;;  %v3080_v60 = vsel %vm1356_vm3, %v6022_v47, 0  ;;  %v8396_v27 = vrot.slane %v6094_v57, 1  ;;  %v7090_v23 = vld [vmem:[%s9137_s6 + $0x2e8] ss:$12 sps:$4 sm:$0xff]   ;;  %v7131_v19 = vld [vmem:[%s9137_s6 + $0x424] ss:$12 sps:$4 sm:$0xff]  }
 0x568   : > { %3096 = vmatprep.subr.bf16.mxu1 %v7029_v61  ;;  %6552 = vmatprep.subr.bf16.mxu0 %v7030_v58  ;;  %v7089_v61 = vld [vmem:[%s9137_s6 + $0x398] ss:$12 sps:$4 sm:$0xff]  }
 0x569   : > { %v7092_v58 = vld [vmem:[%s9137_s6 + $0x2ec] ss:$12 sps:$4 sm:$0xff]  }
 0x56b   : > { %3097 = vmatpush1.bf16.msra.mxu1 %v7027_v62  ;;  %6553 = vmatpush3.bf16.msra.mxu0 %v7031_v63  ;;  %v3265_v62 = vrot.slane %v6092_v59, 1  ;;  %v7095_v63 = vld [vmem:[%s9137_s6 + $0x304] ss:$12 sps:$4 sm:$0xff]  }
 0x56c   : > { %3098 = vmatprep.subr.bf16.mxu1 %v7034_v0  ;;  %6554 = vmatprep.subr.bf16.mxu0 %v7035_v1  ;;  %v7093_v1 = vld [vmem:[%s9137_s6 + $0x300] ss:$12 sps:$4 sm:$0xff]  }
 0x56d   : > { %v8407_v0 = vsel %vm870_vm0, %v3265_v62, %v8396_v27 }
 0x56f   : > { %3099 = vmatpush1.bf16.msra.mxu1 %v7032_v3  ;;  %6555 = vmatpush3.bf16.msra.mxu0 %v7036_v4  ;;  %v7096_v3 = vld [vmem:[%s9137_s6 + $0x318] ss:$12 sps:$4 sm:$0xff]   ;;  %v7099_v4 = vld [vmem:[%s9137_s6 + $0x330] ss:$12 sps:$4 sm:$0xff]  }
 0x570   : > { %3100 = vmatprep.subr.bf16.mxu1 %v7039_v5  ;;  %6556 = vmatprep.subr.bf16.mxu0 %v7040_v6  ;;  %v7104_v5 = vld [vmem:[%s9137_s6 + $0x34c] ss:$12 sps:$4 sm:$0xff]   ;;  %v7107_v6 = vld [vmem:[%s9137_s6 + $0x364] ss:$12 sps:$4 sm:$0xff]  }
 0x573   : > { %3101 = vmatpush1.bf16.msra.mxu1 %v7037_v7  ;;  %6557 = vmatpush3.bf16.msra.mxu0 %v7041_v8  ;;  %v7105_v7 = vld [vmem:[%s9137_s6 + $0x360] ss:$12 sps:$4 sm:$0xff]   ;;  %v7110_v8 = vld [vmem:[%s9137_s6 + $0x37c] ss:$12 sps:$4 sm:$0xff]  }
 0x574   : > { %3102 = vmatprep.subr.bf16.mxu1 %v7044_v9  ;;  %6735 = vmatprep.subr.msk.bf16.mxu0 %vm1356_vm3, %v7045_v10  ;;  %v7108_v9 = vld [vmem:[%s9137_s6 + $0x378] ss:$12 sps:$4 sm:$0xff]   ;;  %v7113_v10 = vld [vmem:[%s9137_s6 + $0x394] ss:$12 sps:$4 sm:$0xff]  }
 0x577   : > { %3103 = vmatpush1.bf16.msra.mxu1 %v7042_v11  ;;  %6559 = vmatpush3.bf16.msra.mxu0 %v7046_v12  ;;  %v7111_v11 = vld [vmem:[%s9137_s6 + $0x390] ss:$12 sps:$4 sm:$0xff]   ;;  %v7116_v12 = vld [vmem:[%s9137_s6 + $0x3ac] ss:$12 sps:$4 sm:$0xff]  }
 0x578   : > { %3104 = vmatprep.subr.bf16.mxu1 %v7049_v13  ;;  %6572 = vmatprep.subr.bf16.mxu0 %v7050_v14  ;;  %v7114_v13 = vld [vmem:[%s9137_s6 + $0x3a8] ss:$12 sps:$4 sm:$0xff]   ;;  %v7119_v14 = vld [vmem:[%s9137_s6 + $0x3c4] ss:$12 sps:$4 sm:$0xff]  }
 0x57a   : > { %3174 = vmatmul.mubr.bf16.vlgmr.msra.gmra.mrb[40].mxu0 %v8158_v17 }
 0x57b   : > { %3105 = vmatpush1.bf16.msra.mxu1 %v7047_v15  ;;  %6029 = vmatprep.mubr.msk.bf16.mxu0 %vm2706_vm9, %v8167_v34  ;;  %v7117_v15 = vld [vmem:[%s9137_s6 + $0x3c0] ss:$12 sps:$4 sm:$0xff]  }
 0x57c   : > { %6573 = vmatpush3.bf16.msra.mxu0 %v7051_v16  ;;  %3106 = vmatprep.subr.bf16.mxu1 %v7054_v20  ;;  %v7120_v16 = vld [vmem:[%s9137_s6 + $0x3d8] ss:$12 sps:$4 sm:$0xff]   ;;  %v7125_v20 = vld [vmem:[%s9137_s6 + $0x3f4] ss:$12 sps:$4 sm:$0xff]  }
 0x57d   : > { %6574 = vmatprep.subr.bf16.mxu0 %v7055_v21  ;;  %v7123_v21 = vld [vmem:[%s9137_s6 + $0x3f0] ss:$12 sps:$4 sm:$0xff]  }
 0x57f   : > { %3107 = vmatpush1.bf16.msra.mxu1 %v7052_v25  ;;  %v7126_v25 = vld [vmem:[%s9137_s6 + $0x408] ss:$12 sps:$4 sm:$0xff]  }
 0x580   : > { %6575 = vmatpush3.bf16.msra.mxu0 %v7056_v26  ;;  %3108 = vmatprep.subr.bf16.mxu1 %v7059_v28  ;;  %v7129_v26 = vld [vmem:[%s9137_s6 + $0x420] ss:$12 sps:$4 sm:$0xff]   ;;  %v7134_v28 = vld [vmem:[%s9137_s6 + $0x43c] ss:$12 sps:$4 sm:$0xff]  }
 0x581   : > { %6576 = vmatprep.subr.bf16.mxu0 %v7060_v35  ;;  %v7132_v35 = vld [vmem:[%s9137_s6 + $0x438] ss:$12 sps:$4 sm:$0xff]  }
 0x582   : > { %3182 = vmatmul.mubr.bf16.gmra.mrb[44].mxu0 %v8164_v33 }
 0x583   : > { %3109 = vmatpush1.bf16.msra.mxu1 %v7057_v36  ;;  %6147 = vmatprep.mubr.msk.bf16.mxu0 %vm2706_vm9, %v8331_v22  ;;  %v6142_v36 = vcombine.high %v6090_v31, %v6090_v31 }
 0x584   : > { %6577 = vmatpush3.bf16.msra.mxu0 %v7061_v37  ;;  %3110 = vmatprep.subr.bf16.mxu1 %v7068_v38  ;;  %v6141_v37 = vcombine.low %v6090_v31, %v6090_v31  ;;  %v7173_v31 = vld [vmem:[%s9139_s8 + $0xb4] ss:$8 sps:$4 sm:$0xff]  }
 0x585   : > { %6578 = vmatprep.subr.bf16.mxu0 %v7069_v39 }
 0x586   : > { %v3528_v32 = vsel %vm1356_vm3, %v6141_v37, 0 }
 0x587   : > { %3111 = vmatpush1.bf16.msra.mxu1 %v7066_v30 }
 0x588   : > { %6579 = vmatpush3.bf16.msra.mxu0 %v7070_v40  ;;  %3112 = vmatprep.subr.bf16.mxu1 %v7073_v41 }
 0x589   : > { %6580 = vmatprep.subr.bf16.mxu0 %v7074_v43 }
 0x58b   : > { %3113 = vmatpush1.bf16.msra.mxu1 %v7071_v44 }
 0x58c   : > { %6581 = vmatpush3.bf16.msra.mxu0 %v7075_v45  ;;  %3114 = vmatprep.subr.bf16.mxu1 %v7078_v46 }
 0x58d   : > { %6582 = vmatprep.subr.bf16.mxu0 %v7079_v48 }
 0x58f   : > { %3115 = vmatpush1.bf16.msra.mxu1 %v7076_v49 }
 0x590   : > { %6583 = vmatpush3.bf16.msra.mxu0 %v7080_v50  ;;  %3116 = vmatprep.subr.bf16.mxu1 %v7083_v51  ;;  %v7138_v50 = vld [vmem:[%s9139_s8] ss:$8 sps:$4 sm:$0xff]  }
 0x591   : > { %6584 = vmatprep.subr.bf16.mxu0 %v7084_v42  ;;  %v7143_v42 = vld [vmem:[%s9139_s8 + $0x14] ss:$8 sps:$4 sm:$0xff]  }
 0x593   : > { %3117 = vmatpush1.bf16.msra.mxu1 %v7081_v53 }
 0x594   : > { %6585 = vmatpush3.bf16.msra.mxu0 %v7085_v54  ;;  %6025 = vmatprep.subr.msk.bf16.mxu1 %vm1356_vm3, %v6023_v55  ;;  %v7141_v55 = vld [vmem:[%s9139_s8 + $0x10] ss:$8 sps:$4 sm:$0xff]  }
 0x595   : > { %6736 = vmatprep.subr.msk.bf16.mxu0 %vm1356_vm3, %v7087_v56  ;;  %v7146_v56 = vld [vmem:[%s9139_s8 + $0x24] ss:$8 sps:$4 sm:$0xff]  }
 0x597   : > { %3119 = vmatpush1.bf16.msra.mxu1 %v3080_v60 }
 0x598   : > { %6587 = vmatpush3.bf16.msra.mxu0 %v7089_v61  ;;  %3536 = vmatprep.subr.bf16.mxu1 %v7092_v58  ;;  %v7144_v61 = vld [vmem:[%s9139_s8 + $0x20] ss:$8 sps:$4 sm:$0xff]   ;;  %v7149_v58 = vld [vmem:[%s9139_s8 + $0x34] ss:$8 sps:$4 sm:$0xff]  }
 0x59a   : > { %3121 = vmatmul.mubr.bf16.vlgmr.msra.gmra.mrb[32].mxu1 %v8158_v17  ;;  %v7098_v17 = vld [vmem:[%s9137_s6 + $0x31c] ss:$12 sps:$4 sm:$0xff]  }
 0x59b   : > { %3622 = vmatmul.mubr.bf16.vlgmr.msra.gmra.mrb[48].mxu0 %v8407_v0  ;;  %6027 = vmatprep.mubr.msk.bf16.mxu1 %vm2706_vm9, %v8167_v34  ;;  %v7101_v34 = vld [vmem:[%s9137_s6 + $0x334] ss:$12 sps:$4 sm:$0xff]  }
 0x59c   : > { %3537 = vmatpush1.bf16.msra.mxu1 %v7090_v23  ;;  %6148 = vmatprep.mubr.msk.bf16.mxu0 %vm2706_vm9, %v8314_v29 }
 0x59d   : > { %3538 = vmatprep.subr.bf16.mxu1 %v7095_v63 }
 0x5a0   : > { %3539 = vmatpush1.bf16.msra.mxu1 %v7093_v1 }
 0x5a1   : > { %3540 = vmatprep.subr.bf16.mxu1 %v7098_v17  ;;  %v7152_v17 = vld [vmem:[%s9139_s8 + $0x44] ss:$8 sps:$4 sm:$0xff]  }
 0x5a2   : > { %3131 = vmatmul.mubr.bf16.gmra.mrb[36].mxu1 %v8164_v33  ;;  %v7102_v33 = vld [vmem:[%s9137_s6 + $0x348] ss:$12 sps:$4 sm:$0xff]  }
 0x5a3   : > { %3630 = vmatmul.mubr.bf16.gmra.mrb[52].mxu0 %v8396_v27  ;;  %6145 = vmatprep.mubr.msk.bf16.mxu1 %vm2706_vm9, %v8331_v22 }
 0x5a4   : > { %3541 = vmatpush1.bf16.msra.mxu1 %v7096_v3  ;;  %3723 = vmatprep.mubr.bf16.mxu0 %v7370_v2 }
 0x5a5   : > { %3542 = vmatprep.subr.bf16.mxu1 %v7101_v34 }
 0x5a8   : > { %3543 = vmatpush1.bf16.msra.mxu1 %v7099_v4 }
 0x5a9   : > { %3544 = vmatprep.subr.bf16.mxu1 %v7104_v5  ;;  %v7150_v5 = vld [vmem:[%s9139_s8 + $0x40] ss:$8 sps:$4 sm:$0xff]  }
 0x5ac   : > { %3545 = vmatpush1.bf16.msra.mxu1 %v7102_v33  ;;  %v7155_v33 = vld [vmem:[%s9139_s8 + $0x54] ss:$8 sps:$4 sm:$0xff]  }
 0x5ad   : > { %3546 = vmatprep.subr.bf16.mxu1 %v7107_v6  ;;  %v7153_v6 = vld [vmem:[%s9139_s8 + $0x50] ss:$8 sps:$4 sm:$0xff]  }
 0x5b0   : > { %3547 = vmatpush1.bf16.msra.mxu1 %v7105_v7  ;;  %v7158_v7 = vld [vmem:[%s9139_s8 + $0x64] ss:$8 sps:$4 sm:$0xff]  }
 0x5b1   : > { %3548 = vmatprep.subr.bf16.mxu1 %v7110_v8  ;;  %v7156_v8 = vld [vmem:[%s9139_s8 + $0x60] ss:$8 sps:$4 sm:$0xff]  }
 0x5b4   : > { %3549 = vmatpush1.bf16.msra.mxu1 %v7108_v9  ;;  %v7161_v9 = vld [vmem:[%s9139_s8 + $0x74] ss:$8 sps:$4 sm:$0xff]  }
 0x5b5   : > { %3550 = vmatprep.subr.bf16.mxu1 %v7113_v10  ;;  %v7159_v10 = vld [vmem:[%s9139_s8 + $0x70] ss:$8 sps:$4 sm:$0xff]  }
 0x5b8   : > { %3551 = vmatpush1.bf16.msra.mxu1 %v7111_v11  ;;  %v7164_v11 = vld [vmem:[%s9139_s8 + $0x84] ss:$8 sps:$4 sm:$0xff]  }
 0x5b9   : > { %3552 = vmatprep.subr.bf16.mxu1 %v7116_v12  ;;  %v7162_v12 = vld [vmem:[%s9139_s8 + $0x80] ss:$8 sps:$4 sm:$0xff]  }
 0x5bc   : > { %3553 = vmatpush1.bf16.msra.mxu1 %v7114_v13  ;;  %v7167_v13 = vld [vmem:[%s9139_s8 + $0x94] ss:$8 sps:$4 sm:$0xff]  }
 0x5bd   : > { %3554 = vmatprep.subr.bf16.mxu1 %v7119_v14 }
 0x5c0   : > { %3555 = vmatpush1.bf16.msra.mxu1 %v7117_v15 }
 0x5c1   : > { %3556 = vmatprep.subr.bf16.mxu1 %v7122_v18  ;;  %v7165_v18 = vld [vmem:[%s9139_s8 + $0x90] ss:$8 sps:$4 sm:$0xff]  }
 0x5c4   : > { %3557 = vmatpush1.bf16.msra.mxu1 %v7120_v16 }
 0x5c5   : > { %3558 = vmatprep.subr.bf16.mxu1 %v7125_v20 }
 0x5c8   : > { %3559 = vmatpush1.bf16.msra.mxu1 %v7123_v21  ;;  %v7170_v21 = vld [vmem:[%s9139_s8 + $0xa4] ss:$8 sps:$4 sm:$0xff]  }
 0x5c9   : > { %3560 = vmatprep.subr.bf16.mxu1 %v7128_v24 }
 0x5cc   : > { %3561 = vmatpush1.bf16.msra.mxu1 %v7126_v25 }
 0x5cd   : > { %3562 = vmatprep.subr.bf16.mxu1 %v7131_v19 }
 0x5d0   : > { %3563 = vmatpush1.bf16.msra.mxu1 %v7129_v26  ;;  %v7168_v26 = vld [vmem:[%s9139_s8 + $0xa0] ss:$8 sps:$4 sm:$0xff]  }
 0x5d1   : > { %3564 = vmatprep.subr.bf16.mxu1 %v7134_v28 }
 0x5d4   : > { %3565 = vmatpush1.bf16.msra.mxu1 %v7132_v35 }
 0x5d5   : > { %6144 = vmatprep.subr.msk.bf16.mxu1 %vm1356_vm3, %v6142_v36 }
 0x5d8   : > { %3567 = vmatpush1.bf16.msra.mxu1 %v3528_v32 }
 0x5db   : > { %3569 = vmatmul.mubr.bf16.vlgmr.msra.gmra.mrb[32].mxu1 %v8407_v0  ;;  %v7147_v0 = vld [vmem:[%s9139_s8 + $0x30] ss:$8 sps:$4 sm:$0xff]  }
 0x5dc   : > { %6146 = vmatprep.mubr.msk.bf16.mxu1 %vm2706_vm9, %v8314_v29  ;;  %v7140_v29 = vld [vmem:[%s9139_s8 + $0x4] ss:$8 sps:$4 sm:$0xff]  }
 0x5dd   : > { %4050 = vmatprep.subr.bf16.mxu1 %v7140_v29  ;;  %v7183_v29 = vld [vmem:[%s9139_s8 + $0xd0] ss:$8 sps:$4 sm:$0xff]  }
 0x5de   : > { %4051 = vmatpush1.bf16.msra.mxu1 %v7138_v50 }
 0x5df   : > { %4052 = vmatprep.subr.bf16.mxu1 %v7143_v42  ;;  %v7191_v42 = vld [vmem:[%s9139_s8 + $0xe4] ss:$8 sps:$4 sm:$0xff]  }
 0x5e2   : > { %4053 = vmatpush1.bf16.msra.mxu1 %v7141_v55 }
 0x5e3   : > { %3579 = vmatmul.mubr.bf16.gmra.mrb[36].mxu1 %v8396_v27  ;;  %4054 = vmatprep.subr.bf16.mxu1 %v7146_v56 }
 0x5e6   : > { %4055 = vmatpush1.bf16.msra.mxu1 %v7144_v61 }
 0x5e7   : > { %4056 = vmatprep.subr.bf16.mxu1 %v7149_v58 }
 0x5ea   : > { %4057 = vmatpush1.bf16.msra.mxu1 %v7147_v0 }
 0x5eb   : > { %4058 = vmatprep.subr.bf16.mxu1 %v7152_v17 }
 0x5ee   : > { %4059 = vmatpush1.bf16.msra.mxu1 %v7150_v5 }
 0x5ef   : > { %4060 = vmatprep.subr.bf16.mxu1 %v7155_v33 }
 0x5f2   : > { %4061 = vmatpush1.bf16.msra.mxu1 %v7153_v6 }
 0x5f3   : > { %4062 = vmatprep.subr.bf16.mxu1 %v7158_v7 }
 0x5f6   : > { %4063 = vmatpush1.bf16.msra.mxu1 %v7156_v8 }
 0x5f7   : > { %4064 = vmatprep.subr.bf16.mxu1 %v7161_v9  ;;  %v7137_v9 = vld [vmem:[%s9138_s7] sm:$0x7f]  }
 0x5fa   : > { %4065 = vmatpush1.bf16.msra.mxu1 %v7159_v10  ;;  %v7372_v10 = vmov 0.0  }
 0x5fb   : > { %4066 = vmatprep.subr.bf16.mxu1 %v7164_v11  ;;  %v7176_v11 = vld [vmem:[%s9139_s8 + $0x104] ss:$8 sps:$4 sm:$0xff]  }
 0x5fe   : > { %4067 = vmatpush1.bf16.msra.mxu1 %v7162_v12 }
 0x5ff   : > { %4068 = vmatprep.subr.bf16.mxu1 %v7167_v13  ;;  %v7174_v13 = vld [vmem:[%s9139_s8 + $0x100] ss:$8 sps:$4 sm:$0xff]  }
 0x602   : > { %4069 = vmatpush1.bf16.msra.mxu1 %v7165_v18  ;;  %v7188_v18 = vld [vmem:[%s9139_s8 + $0x124] ss:$8 sps:$4 sm:$0xff]  }
 0x603   : > { %4070 = vmatprep.subr.bf16.mxu1 %v7170_v21  ;;  %v7192_v21 = vld [vmem:[%s9139_s8 + $0x130] ss:$8 sps:$4 sm:$0xff]  }
 0x606   : > { %4071 = vmatpush1.bf16.msra.mxu1 %v7168_v26  ;;  %v7198_v26 = vld [vmem:[%s9139_s8 + $0x140] ss:$8 sps:$4 sm:$0xff]  }
 0x607   : > { %4072 = vmatprep.subr.bf16.mxu1 %v7173_v31  ;;  %v7203_v31 = vld [vmem:[%s9139_s8 + $0x150] ss:$8 sps:$4 sm:$0x3f]  }
 0x62d   : > { %v6532_v38 = vpop.f32.mrb[32].mxu0 }
 0x62e   : > { %v6533_v39 = vpop.f32.mrb[33].mxu0 }
 0x62f   : > { %v6534_v22 = vadd.f32 %v6533_v39, %v6532_v38  ;;  %v6535_v30 = vpop.f32.mrb[34].mxu0  ;;  %v7171_v38 = vld [vmem:[%s9139_s8 + $0xb0] ss:$8 sps:$4 sm:$0xff]  }
 0x630   : > { %v6536_v40 = vpop.f32.mrb[35].mxu0  ;;  %4073 = vmatpush1.bf16.msra.mxu1 %v7171_v38 }
 0x631   : > { %v6537_v41 = vadd.f32 %v6536_v40, %v6535_v30  ;;  %v7179_v40 = vld [vmem:[%s9139_s8 + $0xc4] ss:$8 sps:$4 sm:$0xff]  }
 0x632   : > { %4074 = vmatprep.subr.bf16.mxu1 %v7179_v40  ;;  %v7204_v40 = vld [vmem:[%s9140_s9 + $0xa8] ss:$8 sps:$4 sm:$0xff]  }
 0x635   : > { %v6538_v43 = vpop.f32.mrb[36].mxu0 }
 0x636   : > { %v6539_v44 = vpop.f32.mrb[37].mxu0 }
 0x637   : > { %v6540_v45 = vadd.f32 %v6539_v44, %v6538_v43  ;;  %v6541_v46 = vpop.f32.mrb[38].mxu0 }
 0x638   : > { %v6542_v48 = vpop.f32.mrb[39].mxu0 }
 0x639   : > { %v6543_v49 = vadd.f32 %v6542_v48, %v6541_v46  ;;  %v7185_v48 = vld [vmem:[%s9139_s8 + $0xd4] ss:$8 sps:$4 sm:$0xff]  }
 0x64d   : > { %v6560_v51 = vpop.f32.mrb[40].mxu0 }
 0x64e   : > { %v6561_v52 = vpop.f32.mrb[41].mxu0 }
 0x64f   : > { %v6562_v53 = vadd.f32 %v6561_v52, %v6560_v51  ;;  %v6563_v54 = vpop.f32.mrb[42].mxu0  ;;  %v7189_v52 = vld [vmem:[%s9139_s8 + $0xe0] ss:$8 sps:$4 sm:$0xff]  }
 0x650   : > { %v6564_v47 = vpop.f32.mrb[43].mxu0 }
 0x651   : > { %v3176_v57 = vadd.f32 %v6562_v53, %v6534_v22  ;;  %v6565_v59 = vadd.f32 %v6564_v47, %v6563_v54 }
 0x653   : > { %v3179_v60 = vadd.f32 %v6565_v59, %v6537_v41 }
 0x655   : > { %v6566_v27 = vpop.f32.mrb[44].mxu0 }
 0x656   : > { %v6567_v23 = vpop.f32.mrb[45].mxu0 }
 0x657   : > { %v6568_v62 = vadd.f32 %v6567_v23, %v6566_v27  ;;  %v6569_v63 = vpop.f32.mrb[46].mxu0 }
 0x658   : > { %v6570_v1 = vpop.f32.mrb[47].mxu0 }
 0x659   : > { %v3184_v3 = vadd.f32 %v6568_v62, %v6540_v45  ;;  %v6571_v34 = vadd.f32 %v6570_v1, %v6569_v63  ;;  %v7177_v45 = vld [vmem:[%s9139_s8 + $0xc0] ss:$8 sps:$4 sm:$0xff]  }
 0x65a   : > { %4075 = vmatpush1.bf16.msra.mxu1 %v7177_v45 }
 0x65b   : > { %v3187_v4 = vadd.f32 %v6571_v34, %v6543_v49  ;;  %4076 = vmatprep.subr.bf16.mxu1 %v7185_v48 }
 0x65e   : > { %4077 = vmatpush1.bf16.msra.mxu1 %v7183_v29  ;;  %v7210_v29 = vld [vmem:[%s9140_s9 + $0xc8] ss:$8 sps:$4 sm:$0xff]  }
 0x65f   : > { %4078 = vmatprep.subr.bf16.mxu1 %v7191_v42  ;;  %v7213_v42 = vld [vmem:[%s9140_s9 + $0xd8] ss:$8 sps:$4 sm:$0xff]  }
 0x662   : > { %4079 = vmatpush1.bf16.msra.mxu1 %v7189_v52  ;;  %v7218_v52 = vld [vmem:[%s9140_s9 + $0xec] ss:$8 sps:$4 sm:$0xff]  }
 0x66e   : > { %v6588_v14 = vpop.f32.mrb[48].mxu0 }
 0x66f   : > { %v6589_v15 = vpop.f32.mrb[49].mxu0 }
 0x670   : > { %v6590_v16 = vadd.f32 %v6589_v15, %v6588_v14  ;;  %v6591_v20 = vpop.f32.mrb[50].mxu0  ;;  %v7182_v14 = vld [vmem:[%s9139_s8 + $0x114] ss:$8 sps:$4 sm:$0xff]   ;;  %v7180_v15 = vld [vmem:[%s9139_s8 + $0x110] ss:$8 sps:$4 sm:$0xff]  }
 0x671   : > { %v6592_v24 = vpop.f32.mrb[51].mxu0 }
 0x672   : > { %v3640_v25 = vadd.f32 %v6590_v16, %v3176_v57  ;;  %v6593_v19 = vadd.f32 %v6592_v24, %v6591_v20  ;;  %v7186_v16 = vld [vmem:[%s9139_s8 + $0x120] ss:$8 sps:$4 sm:$0xff]   ;;  %v7194_v20 = vld [vmem:[%s9139_s8 + $0x134] ss:$8 sps:$4 sm:$0xff]  }
 0x673   : > { %v7197_v24 = vld [vmem:[%s9139_s8 + $0xf4] ss:$8 sps:$4 sm:$0xff]  }
 0x674   : > { %v3643_v28 = vadd.f32 %v6593_v19, %v3179_v60  ;;  %v3654_v35 = vmax.f32 %v3640_v25, 0.0  ;;  %v7195_v25 = vld [vmem:[%s9139_s8 + $0xf0] ss:$8 sps:$4 sm:$0xff]   ;;  %4080 = vmatprep.subr.bf16.mxu1 %v7197_v24  ;;  %v7200_v19 = vld [vmem:[%s9139_s8 + $0x144] ss:$8 sps:$4 sm:$0xff]  }
 0x675   : > { %4081 = vmatpush1.bf16.msra.mxu1 %v7195_v25 }
 0x676   : > { %v3657_v36 = vmax.f32 %v3643_v28, 0.0  ;;  %v6594_v37 = vpop.f32.mrb[52].mxu0  ;;  %v7201_v28 = vld [vmem:[%s9139_s8 + $0x154] ss:$8 sps:$4 sm:$0x3f]  }
 0x677   : > { %v6595_v32 = vpop.f32.mrb[53].mxu0 }
 0x678   : > { %v3666_v39 = vpack.c.bf16 %v3657_v36, %v3654_v35  ;;  %v6596_v22 = vadd.f32 %v6595_v32, %v6594_v37  ;;  %v6597_v30 = vpop.f32.mrb[54].mxu0  ;;  %v4045_v35 = vsel %vm3679_vm10, %v7203_v31, 0  ;;  %v7206_v36 = vld [vmem:[%s9140_s9 + $0xac] ss:$8 sps:$4 sm:$0xff]  }
 0x679   : > { %v6598_v41 = vpop.f32.mrb[55].mxu0  ;;  %4339 = vmatprep.subr.bf16.mxu1 %v7206_v36  ;;  %v7237_v36 = vld [vmem:[%s9140_s9] ss:$8 sps:$4 sm:$0xff]  }
 0x67a   : > { %v3646_v43 = vadd.f32 %v6596_v22, %v3184_v3  ;;  %v6599_v44 = vadd.f32 %v6598_v41, %v6597_v30  ;;  %v7371_v3 = vmov 65535   ;;  %v7209_v41 = vld [vmem:[%s9140_s9 + $0xbc] ss:$8 sps:$4 sm:$0xff]  }
 0x67b   : > { %v3680_v34 = vsel %vm3679_vm10, 4294967295, %v7371_v3 }
 0x67c   : > { %v3649_v46 = vadd.f32 %v6599_v44, %v3187_v4  ;;  %v3660_v49 = vmax.f32 %v3646_v43, 0.0  ;;  %v3681_v6 = vsel %vm870_vm0, %v3680_v34, 0  ;;  %v7207_v44 = vld [vmem:[%s9140_s9 + $0xb8] ss:$8 sps:$4 sm:$0xff]   ;;  %vm4152_vm0 = vcmask 325636  }
 0x67d   : > { %vm4153_vm2 = vmor %vm4152_vm0, %vm4151_vm15 }
 0x67e   : > { %v3663_v50 = vmax.f32 %v3649_v46, 0.0  ;;  %v7212_v46 = vld [vmem:[%s9140_s9 + $0xcc] ss:$8 sps:$4 sm:$0xff]  }
 0x680   : > { %v3669_v51 = vpack.c.bf16 %v3663_v50, %v3660_v49 }
 0x682   : > { %v3689_v12 = vand.u32 %v3681_v6, %v3669_v51  ;;  %v7215_v51 = vld [vmem:[%s9140_s9 + $0xdc] ss:$8 sps:$4 sm:$0xff]  }
 0x6ae   : > { %v3570_v53 = vpop.f32.mrb[32].mxu1 }
 0x6af   : > { %v3572_v54 = vpop.f32.mrb[33].mxu1  ;;  %v3652_v47 = vmax.f32 %v3570_v53, 0.0  ;;  %v7216_v53 = vld [vmem:[%s9140_s9 + $0xe8] ss:$8 sps:$4 sm:$0xff]  }
 0x6b0   : > { %v3574_v55 = vpop.f32.mrb[34].mxu1  ;;  %v3653_v59 = vmax.f32 %v3572_v54, 0.0  ;;  %v7221_v54 = vld [vmem:[%s9140_s9 + $0xfc] ss:$8 sps:$4 sm:$0xff]  }
 0x6b1   : > { %v3655_v56 = vmax.f32 %v3574_v55, 0.0  ;;  %v3576_v57 = vpop.f32.mrb[35].mxu1  ;;  %v7219_v55 = vld [vmem:[%s9140_s9 + $0xf8] ss:$8 sps:$4 sm:$0xff]  }
 0x6b2   : > { %v3656_v60 = vmax.f32 %v3576_v57, 0.0  ;;  %v7227_v57 = vld [vmem:[%s9140_s9 + $0x11c] ss:$8 sps:$4 sm:$0xff]  }
 0x6b3   : > { %v3664_v61 = vpack.c.bf16 %v3655_v56, %v3652_v47  ;;  %v7224_v47 = vld [vmem:[%s9140_s9 + $0x10c] ss:$8 sps:$4 sm:$0xff]   ;;  %v7222_v56 = vld [vmem:[%s9140_s9 + $0x108] ss:$8 sps:$4 sm:$0xff]  }
 0x6b4   : > { %v3665_v58 = vpack.c.bf16 %v3656_v60, %v3653_v59  ;;  %v7225_v59 = vld [vmem:[%s9140_s9 + $0x118] ss:$8 sps:$4 sm:$0xff]   ;;  %v7230_v60 = vld [vmem:[%s9140_s9 + $0x12c] ss:$8 sps:$4 sm:$0xff]  }
 0x6b6   : > { %v3580_v27 = vpop.f32.mrb[36].mxu1  ;;  %3691 = vmatprep.subr.bf16.mxu0 %v3665_v58  ;;  %v7233_v58 = vld [vmem:[%s9140_s9 + $0x13c] ss:$8 sps:$4 sm:$0xff]  }
 0x6b7   : > { %v3582_v23 = vpop.f32.mrb[37].mxu1  ;;  %3692 = vmatpush1.bf16.msra.mxu0 %v3664_v61  ;;  %v3658_v63 = vmax.f32 %v3580_v27, 0.0  ;;  %v7228_v61 = vld [vmem:[%s9140_s9 + $0x128] ss:$8 sps:$4 sm:$0xff]  }
 0x6b8   : > { %v3584_v62 = vpop.f32.mrb[38].mxu1  ;;  %v3659_v17 = vmax.f32 %v3582_v23, 0.0  ;;  %v6220_v27 = vld [vmem:[%s9140_s9 + $0x148] sm:$0xff]  ;;  %v7231_v23 = vld [vmem:[%s9140_s9 + $0x138] ss:$8 sps:$4 sm:$0xff]  }
 0x6b9   : > { %v3661_v0 = vmax.f32 %v3584_v62, 0.0  ;;  %v3586_v1 = vpop.f32.mrb[39].mxu1  ;;  %v6244_v62 = vcombine.high %v6220_v27, %v6220_v27 }
 0x6ba   : > { %v3662_v4 = vmax.f32 %v3586_v1, 0.0  ;;  %v7239_v1 = vld [vmem:[%s9140_s9 + $0x4] ss:$8 sps:$4 sm:$0xff]  }
 0x6bb   : > { %v3667_v5 = vpack.c.bf16 %v3661_v0, %v3658_v63  ;;  %v6243_v63 = vcombine.low %v6220_v27, %v6220_v27  ;;  %v7278_v27 = vld [vmem:[%s9140_s9 + $0x164] ss:$8 sps:$4 sm:$0xff]  }
 0x6bc   : > { %v3668_v33 = vpack.c.bf16 %v3662_v4, %v3659_v17 }
 0x6bd   : > { %v3683_v8 = vand.u32 %v3681_v6, %v3667_v5  ;;  %v4334_v0 = vsel %vm1356_vm3, %v6243_v63, 0  ;;  %v7281_v63 = vld [vmem:[%s9140_s9 + $0x174] ss:$8 sps:$4 sm:$0xff]  }
 0x6be   : > { %v3686_v7 = vand.u32 %v3681_v6, %v3668_v33 }
 0x6c0   : > { %3693 = vmatprep.subr.bf16.mxu0 %v3686_v7 }
 0x6c1   : > { %3694 = vmatpush1.bf16.msra.mxu0 %v3683_v8 }
 0x6c2   : > { %6606 = vmatprep.subr.bf16.mxu0 %v7372_v10 }
 0x6c4   : > { %6150 = vmatmul.mubr.msk.bf16.vlgmr.msra.gmra.mrb[56].mxu0 %vm3675_vm11, %v7137_v9 }
 0x6c5   : > { %6607 = vmatpush3.bf16.msra.mxu0 %v3666_v39  ;;  %6610 = vmatprep.mubr.msk.bf16.mxu0 %vm7373_vm12, %v7372_v10 }
 0x6c6   : > { %6608 = vmatprep.subr.bf16.mxu0 %v7372_v10 }
 0x6c9   : > { %6609 = vmatpush3.bf16.msra.mxu0 %v3689_v12 }
 0x6ca   : > { %4093 = vmatprep.subr.bf16.mxu0 %v7176_v11 }
 0x6cc   : > { %6611 = vmatmul.mubr.msk.bf16.vlgmr.msra.gmra.mrb[60].mxu0 %vm3675_vm11, %v7137_v9 }
 0x6cd   : > { %4094 = vmatpush1.bf16.msra.mxu0 %v7174_v13  ;;  %4125 = vmatprep.mubr.bf16.mxu0 %v7370_v2 }
 0x6ce   : > { %4095 = vmatprep.subr.bf16.mxu0 %v7182_v14 }
 0x6d1   : > { %4096 = vmatpush1.bf16.msra.mxu0 %v7180_v15 }
 0x6d2   : > { %4097 = vmatprep.subr.bf16.mxu0 %v7188_v18 }
 0x6d5   : > { %4098 = vmatpush1.bf16.msra.mxu0 %v7186_v16 }
 0x6d6   : > { %4099 = vmatprep.subr.bf16.mxu0 %v7194_v20 }
 0x6d9   : > { %4100 = vmatpush1.bf16.msra.mxu0 %v7192_v21 }
 0x6da   : > { %4101 = vmatprep.subr.bf16.mxu0 %v7200_v19 }
 0x6dd   : > { %4102 = vmatpush1.bf16.msra.mxu0 %v7198_v26 }
 0x6de   : > { %6196 = vmatprep.subr.msk.bf16.mxu0 %vm3679_vm10, %v7201_v28 }
 0x6e1   : > { %4104 = vmatpush1.bf16.msra.mxu0 %v4045_v35 }
 0x6e2   : > { %4899 = vmatprep.subr.bf16.mxu0 %v7370_v2 }
 0x797   : > { %v3725_v37 = vpop.f32.mrb[56].mxu0 }
 0x798   : > { %v3727_v32 = vpop.f32.mrb[57].mxu0 }
 0x799   : > { %v3729_v38 = vpop.f32.mrb[58].mxu0 }
 0x79a   : > { %v3775_v39 = vpack.c.bf16 %v3729_v38, %v3725_v37  ;;  %v3731_v22 = vpop.f32.mrb[59].mxu0 }
 0x79b   : > { %v3776_v30 = vpack.c.bf16 %v3731_v22, %v3727_v32  ;;  %v7244_v32 = vld [vmem:[%s9140_s9 + $0x14] ss:$8 sps:$4 sm:$0xff]   ;;  %v7247_v22 = vld [vmem:[%s9140_s9 + $0x24] ss:$8 sps:$4 sm:$0xff]  }
 0x79d   : > { %4082 = vmatprep.mubr.bf16.mxu1 %v3776_v30  ;;  %v7245_v30 = vld [vmem:[%s9140_s9 + $0x20] ss:$8 sps:$4 sm:$0xff]  }
 0x79e   : > { %4083 = vmatmul.mubr.bf16.vlgmr.msra.gmra.mrb[40].mxu1 %v3775_v39  ;;  %v7242_v39 = vld [vmem:[%s9140_s9 + $0x10] ss:$8 sps:$4 sm:$0xff]  }
 0x79f   : > { %v3768_v43 = vpop.f32.mrb[60].mxu0  ;;  %4340 = vmatpush1.bf16.msra.mxu1 %v7204_v40  ;;  %v7250_v40 = vld [vmem:[%s9140_s9 + $0x34] ss:$8 sps:$4 sm:$0xff]  }
 0x7a0   : > { %v6612_v45 = vpop.f32.mrb[61].mxu0  ;;  %4341 = vmatprep.subr.bf16.mxu1 %v7209_v41  ;;  %v7248_v41 = vld [vmem:[%s9140_s9 + $0x30] ss:$8 sps:$4 sm:$0xff]  }
 0x7a1   : > { %v3771_v48 = vpop.f32.mrb[62].mxu0  ;;  %v7256_v45 = vld [vmem:[%s9140_s9 + $0x54] ss:$8 sps:$4 sm:$0xff]  }
 0x7a2   : > { %v3777_v49 = vpack.c.bf16 %v3771_v48, %v3768_v43  ;;  %v6613_v50 = vpop.f32.mrb[63].mxu0  ;;  %v7253_v43 = vld [vmem:[%s9140_s9 + $0x44] ss:$8 sps:$4 sm:$0xff]  }
 0x7a3   : > { %4342 = vmatpush1.bf16.msra.mxu1 %v7207_v44  ;;  %v7251_v44 = vld [vmem:[%s9140_s9 + $0x40] ss:$8 sps:$4 sm:$0xff]   ;;  %v7259_v48 = vld [vmem:[%s9140_s9 + $0x64] ss:$8 sps:$4 sm:$0xff]   ;;  %v7262_v50 = vld [vmem:[%s9140_s9 + $0x74] ss:$8 sps:$4 sm:$0xff]  }
 0x7a4   : > { %6197 = vmatmul.mubr.msk.bf16.vlgmr.msra.gmra.mrb[64].mxu0 %vm4040_vm13, %v3777_v49  ;;  %4343 = vmatprep.subr.bf16.mxu1 %v7212_v46  ;;  %v7254_v46 = vld [vmem:[%s9140_s9 + $0x50] ss:$8 sps:$4 sm:$0xff]   ;;  %v7257_v49 = vld [vmem:[%s9140_s9 + $0x60] ss:$8 sps:$4 sm:$0xff]  }
 0x7a7   : > { %4344 = vmatpush1.bf16.msra.mxu1 %v7210_v29  ;;  %v7260_v29 = vld [vmem:[%s9140_s9 + $0x70] ss:$8 sps:$4 sm:$0xff]  }
 0x7a8   : > { %4345 = vmatprep.subr.bf16.mxu1 %v7215_v51  ;;  %v7265_v51 = vld [vmem:[%s9140_s9 + $0x84] ss:$8 sps:$4 sm:$0xff]  }
 0x7ab   : > { %4346 = vmatpush1.bf16.msra.mxu1 %v7213_v42  ;;  %v7263_v42 = vld [vmem:[%s9140_s9 + $0x80] ss:$8 sps:$4 sm:$0xff]  }
 0x7ac   : > { %4347 = vmatprep.subr.bf16.mxu1 %v7218_v52  ;;  %v7268_v52 = vld [vmem:[%s9140_s9 + $0x94] ss:$8 sps:$4 sm:$0xff]  }
 0x7af   : > { %4348 = vmatpush1.bf16.msra.mxu1 %v7216_v53  ;;  %v4177_v53 = vld [vmem:[%s9140_s9 + $0xa0] sm:$0xff] }
 0x7b0   : > { %4349 = vmatprep.subr.bf16.mxu1 %v7221_v54  ;;  %v7266_v54 = vld [vmem:[%s9140_s9 + $0x90] ss:$8 sps:$4 sm:$0xff]  }
 0x7b3   : > { %4350 = vmatpush1.bf16.msra.mxu1 %v7219_v55  ;;  %v6270_v55 = vcombine.high %v4177_v53, %v4177_v53 }
 0x7b4   : > { %4351 = vmatprep.subr.bf16.mxu1 %v7224_v47  ;;  %v6269_v47 = vcombine.low %v4177_v53, %v4177_v53 }
 0x7b7   : > { %4352 = vmatpush1.bf16.msra.mxu1 %v7222_v56  ;;  %v4497_v56 = vsel %vm1356_vm3, %v6269_v47, 0  ;;  %v7316_v47 = vld [vmem:[%s9142_s11 + $0x8] sm:$0xff]  }
 0x7b8   : > { %4353 = vmatprep.subr.bf16.mxu1 %v7227_v57  ;;  %v7274_v57 = vld [vmem:[%s9140_s9 + $0x154] ss:$8 sps:$4 sm:$0xff]  }
 0x7bb   : > { %4354 = vmatpush1.bf16.msra.mxu1 %v7225_v59 }
 0x7bc   : > { %4355 = vmatprep.subr.bf16.mxu1 %v7230_v60 }
 0x7bf   : > { %4356 = vmatpush1.bf16.msra.mxu1 %v7228_v61  ;;  %v7272_v61 = vld [vmem:[%s9140_s9 + $0x150] ss:$8 sps:$4 sm:$0xff]  }
 0x7c0   : > { %4357 = vmatprep.subr.bf16.mxu1 %v7233_v58 }
 0x7c3   : > { %4358 = vmatpush1.bf16.msra.mxu1 %v7231_v23 }
 0x7c4   : > { %6245 = vmatprep.subr.msk.bf16.mxu1 %vm1356_vm3, %v6244_v62  ;;  %v7276_v62 = vld [vmem:[%s9140_s9 + $0x160] ss:$8 sps:$4 sm:$0xff]  }
 0x7c7   : > { %4360 = vmatpush1.bf16.msra.mxu1 %v4334_v0  ;;  %v7279_v0 = vld [vmem:[%s9140_s9 + $0x170] ss:$8 sps:$4 sm:$0xff]  }
 0x7c8   : > { %4502 = vmatprep.subr.bf16.mxu1 %v7239_v1  ;;  %v7284_v1 = vld [vmem:[%s9140_s9 + $0x184] ss:$8 sps:$4 sm:$0xff]  }
 0x871   : > { %v4084_v17 = vpop.f32.mrb[40].mxu1 }
 0x872   : > { %v4086_v3 = vpop.f32.mrb[41].mxu1 }
 0x873   : > { %v4088_v34 = vpop.f32.mrb[42].mxu1 }
 0x874   : > { %v4090_v4 = vpop.f32.mrb[43].mxu1 }
 0x877   : > { %v4127_v5 = vpop.f32.mrb[64].mxu0 }
 0x878   : > { %v4128_v33 = vadd.f32 %v4127_v5, %v4084_v17  ;;  %v4129_v6 = vpop.f32.mrb[65].mxu0  ;;  %v7282_v17 = vld [vmem:[%s9140_s9 + $0x180] ss:$8 sps:$4 sm:$0xff]  }
 0x879   : > { %v4130_v7 = vadd.f32 %v4129_v6, %v4086_v3  ;;  %v4131_v8 = vpop.f32.mrb[66].mxu0  ;;  %v7287_v3 = vld [vmem:[%s9140_s9 + $0x194] ss:$8 sps:$4 sm:$0xff]   ;;  %v7288_v5 = vld [vmem:[%s9140_s9 + $0x1a0] ss:$8 sps:$4 sm:$0xff]  }
 0x87a   : > { %v4132_v9 = vadd.f32 %v4131_v8, %v4088_v34  ;;  %v4133_v11 = vpop.f32.mrb[67].mxu0  ;;  %v7285_v34 = vld [vmem:[%s9140_s9 + $0x190] ss:$8 sps:$4 sm:$0xff]   ;;  %v7294_v8 = vld [vmem:[%s9140_s9 + $0x1c0] ss:$8 sps:$4 sm:$0xff]  }
 0x87b   : > { %v6486_v12 = vpack.c.bf16 %v4130_v7, %v4128_v33  ;;  %v4134_v13 = vadd.f32 %v4133_v11, %v4090_v4  ;;  %v7290_v4 = vld [vmem:[%s9140_s9 + $0x1a4] ss:$8 sps:$4 sm:$0xff]   ;;  %v7293_v33 = vld [vmem:[%s9140_s9 + $0x1b4] ss:$8 sps:$4 sm:$0xff]   ;;  %v7291_v6 = vld [vmem:[%s9140_s9 + $0x1b0] ss:$8 sps:$4 sm:$0xff]  }
 0x87c   : > { %v7296_v7 = vld [vmem:[%s9140_s9 + $0x1c4] ss:$8 sps:$4 sm:$0xff]   ;;  %v7297_v11 = vld [vmem:[%s9140_s9 + $0x1d0] ss:$8 sps:$4 sm:$0xff]  }
 0x87d   : > { %4150 = vst.msk [vmem:[#allocation3] sm:$0xff] %vm4149_vm1, %v6486_v12  ;;  %v6487_v14 = vpack.c.bf16 %v4134_v13, %v4132_v9  ;;  %v7299_v9 = vld [vmem:[%s9140_s9 + $0x1d4] ss:$8 sps:$4 sm:$0xff]   ;;  %v7302_v12 = vld [vmem:[%s9140_s9 + $0x1e4] ss:$8 sps:$4 sm:$0xff]  }
 0x87e   : > { %v6293_v13 = vld [vmem:[%s9140_s9 + $0x1f0] sm:$0xff] }
 0x87f   : > { %4154 = vst.msk [vmem:[#allocation3 + $0x8] sm:$0x77] %vm4153_vm2, %v6487_v14  ;;  %v7300_v14 = vld [vmem:[%s9140_s9 + $0x1e0] ss:$8 sps:$4 sm:$0xff]  }
 0x884   : > { %v8723_v15 = vld [vmem:[#allocation3] sm:$0xff] }
 0x885   : > { %v4545_v59 = vld [vmem:[#allocation3] sm:$0xee] }
 0x886   : > { %v8725_v18 = vld [vmem:[#allocation3 + $0x8] sm:$0x77] }
 0x887   : > { %v6222_v16 = vcombine.high %v8723_v15, %v8725_v18  ;;  %v6221_v20 = vcombine.low %v8723_v15, %v8725_v18  ;;  %v4156_v31 = vld [vmem:[#allocation3 + $0x8] sm:$0x33]  ;;  %v6295_v60 = vcombine.high %v4545_v59, %v8725_v18 }
 0x888   : > { %v6248_v38 = vcombine.high %v8723_v15, %v4156_v31  ;;  %v6247_v58 = vcombine.low %v8723_v15, %v4156_v31  ;;  %v6317_v15 = vcombine.high %v6293_v13, %v6293_v13  ;;  %v7311_v31 = vld [vmem:[%s9142_s11 + $0x70] sm:$0xff]  }
 0x889   : > { %v4219_v21 = vshll.u32 %v6222_v16, 16  ;;  %v4212_v24 = vshll.u32 %v6221_v20, 16  ;;  %v4217_v25 = vshrl.u32 %v6222_v16, 16  ;;  %v4210_v26 = vshrl.u32 %v6221_v20, 16 }
 0x88a   : > { %v4574_v23 = vrot.slane %v6295_v60, 1  ;;  %v6316_v16 = vcombine.low %v6293_v13, %v6293_v13  ;;  %v7320_v60 = vld [vmem:[%s9142_s11 + $0x28] sm:$0xff]   ;;  %v7338_v13 = vld [vmem:[%s9142_s11 + $0x100] sm:$0xff]  }
 0x88b   : > { %v4221_v19 = vrot.slane %v4219_v21, 1  ;;  %v4214_v28 = vrot.slane %v4212_v24, 1  ;;  %v6294_v21 = vcombine.low %v4545_v59, %v8725_v18  ;;  %v7308_v18 = vld [vmem:[%s9142_s11 + $0x58] sm:$0xff]   ;;  %v7319_v59 = vld [vmem:[%s9142_s11 + $0x20] sm:$0xff]  }
 0x88c   : > { %v4685_v20 = vsel %vm1356_vm3, %v6316_v16, 0  ;;  %v7341_v16 = vld [vmem:[%s9142_s11 + $0x118] sm:$0xff]  }
 0x88d   : > { %v4222_v35 = vor.u32 %v4221_v19, %v4217_v25  ;;  %v4215_v37 = vor.u32 %v4214_v28, %v4210_v26  ;;  %v4573_v24 = vrot.slane %v6294_v21, 1  ;;  %v7306_v25 = vld [vmem:[%s9142_s11 + $0x48] sm:$0xff]   ;;  %v7307_v19 = vld [vmem:[%s9142_s11 + $0x50] sm:$0xff]   ;;  %v7309_v26 = vld [vmem:[%s9142_s11 + $0x60] sm:$0xff]  }
 0x88e   : > { %4900 = vmatpush1.bf16.msra.mxu0 %v7306_v25  ;;  %v7310_v28 = vld [vmem:[%s9142_s11 + $0x68] sm:$0xff]  }
 0x88f   : > { %6246 = vmatprep.mubr.msk.bf16.mxu1 %vm4329_vm4, %v4222_v35  ;;  %4901 = vmatprep.subr.bf16.mxu0 %v7370_v2  ;;  %v7312_v35 = vld [vmem:[%s9142_s11 + $0x78] sm:$0xff]   ;;  %v7343_v25 = vld [vmem:[%s9142_s11 + $0x128] sm:$0xff]  }
 0x890   : > { %4372 = vmatmul.mubr.bf16.vlgmr.msra.gmra.mrb[44].mxu1 %v4215_v37 }
 0x891   : > { %4503 = vmatpush1.bf16.msra.mxu1 %v7237_v36  ;;  %6272 = vmatprep.mubr.msk.bf16.mxu1 %vm4329_vm4, %v6248_v38  ;;  %v7313_v36 = vld [vmem:[%s9142_s11 + $0x80] sm:$0xff]  }
 0x892   : > { %4504 = vmatprep.subr.bf16.mxu1 %v7244_v32  ;;  %4902 = vmatpush1.bf16.msra.mxu0 %v7307_v19  ;;  %v7344_v19 = vld [vmem:[%s9142_s11 + $0x130] sm:$0xff]  }
 0x893   : > { %4903 = vmatprep.subr.bf16.mxu0 %v7370_v2 }
 0x895   : > { %4505 = vmatpush1.bf16.msra.mxu1 %v7242_v39 }
 0x896   : > { %4506 = vmatprep.subr.bf16.mxu1 %v7247_v22  ;;  %4904 = vmatpush1.bf16.msra.mxu0 %v7308_v18  ;;  %v7345_v18 = vld [vmem:[%s9142_s11 + $0x138] sm:$0xff]  }
 0x897   : > { %4905 = vmatprep.subr.bf16.mxu0 %v7370_v2 }
 0x899   : > { %4507 = vmatpush1.bf16.msra.mxu1 %v7245_v30 }
 0x89a   : > { %4508 = vmatprep.subr.bf16.mxu1 %v7250_v40  ;;  %4906 = vmatpush1.bf16.msra.mxu0 %v7309_v26  ;;  %v7346_v26 = vld [vmem:[%s9142_s11 + $0x140] sm:$0xff]  }
 0x89b   : > { %4907 = vmatprep.subr.bf16.mxu0 %v7370_v2 }
 0x89d   : > { %4509 = vmatpush1.bf16.msra.mxu1 %v7248_v41 }
 0x89e   : > { %4510 = vmatprep.subr.bf16.mxu1 %v7253_v43  ;;  %4908 = vmatpush1.bf16.msra.mxu0 %v7310_v28  ;;  %v7347_v28 = vld [vmem:[%s9142_s11 + $0x148] sm:$0xff]  }
 0x89f   : > { %4909 = vmatprep.subr.bf16.mxu0 %v7370_v2 }
 0x8a1   : > { %4511 = vmatpush1.bf16.msra.mxu1 %v7251_v44 }
 0x8a2   : > { %4512 = vmatprep.subr.bf16.mxu1 %v7256_v45  ;;  %4910 = vmatpush1.bf16.msra.mxu0 %v7311_v31  ;;  %v7348_v31 = vld [vmem:[%s9142_s11 + $0x150] sm:$0xff]  }
 0x8a3   : > { %4911 = vmatprep.subr.bf16.mxu0 %v7370_v2 }
 0x8a5   : > { %4513 = vmatpush1.bf16.msra.mxu1 %v7254_v46  ;;  %v4737_v46 = vld [vmem:[%s9141_s10] sm:$0x7] }
 0x8a6   : > { %4514 = vmatprep.subr.bf16.mxu1 %v7259_v48  ;;  %4912 = vmatpush1.bf16.msra.mxu0 %v7312_v35  ;;  %v7314_v48 = vld [vmem:[%s9142_s11 + $0x88] sm:$0xff]   ;;  %v7349_v35 = vld [vmem:[%s9142_s11 + $0x158] sm:$0xff]  }
 0x8a7   : > { %4913 = vmatprep.subr.bf16.mxu0 %v7370_v2 }
 0x8a9   : > { %4515 = vmatpush1.bf16.msra.mxu1 %v7257_v49 }
 0x8aa   : > { %4516 = vmatprep.subr.bf16.mxu1 %v7262_v50  ;;  %4914 = vmatpush1.bf16.msra.mxu0 %v7313_v36  ;;  %v7350_v36 = vld [vmem:[%s9142_s11 + $0x160] sm:$0xff]  }
 0x8ab   : > { %4915 = vmatprep.subr.bf16.mxu0 %v7370_v2 }
 0x8ad   : > { %4517 = vmatpush1.bf16.msra.mxu1 %v7260_v29 }
 0x8ae   : > { %4518 = vmatprep.subr.bf16.mxu1 %v7265_v51  ;;  %4916 = vmatpush1.bf16.msra.mxu0 %v7314_v48  ;;  %v7361_v48 = vld [vmem:[%s9143_s12 + $0x8] sm:$0xff]  }
 0x8af   : > { %4995 = vmatprep.subr.bf16.mxu0 %v7370_v2 }
 0x8b1   : > { %4519 = vmatpush1.bf16.msra.mxu1 %v7263_v42 }
 0x8b2   : > { %4520 = vmatprep.subr.bf16.mxu1 %v7268_v52 }
 0x8b5   : > { %4521 = vmatpush1.bf16.msra.mxu1 %v7266_v54  ;;  %v7315_v54 = vld [vmem:[%s9142_s11] sm:$0xff]  }
 0x8b6   : > { %6271 = vmatprep.subr.msk.bf16.mxu1 %vm1356_vm3, %v6270_v55 }
 0x8b9   : > { %4523 = vmatpush1.bf16.msra.mxu1 %v4497_v56  ;;  %v7317_v56 = vld [vmem:[%s9142_s11 + $0x10] sm:$0xff]  }
 0x8ba   : > { %4690 = vmatprep.subr.bf16.mxu1 %v7274_v57  ;;  %v7318_v57 = vld [vmem:[%s9142_s11 + $0x18] sm:$0xff]  }
 0x8bc   : > { %4535 = vmatmul.mubr.bf16.vlgmr.msra.gmra.mrb[44].mxu1 %v6247_v58  ;;  %v7322_v58 = vld [vmem:[%s9142_s11 + $0x38] sm:$0xff]  }
 0x8bd   : > { %4691 = vmatpush1.bf16.msra.mxu1 %v7272_v61  ;;  %6319 = vmatprep.mubr.msk.bf16.mxu1 %vm4329_vm4, %v4574_v23  ;;  %v7321_v61 = vld [vmem:[%s9142_s11 + $0x30] sm:$0xff]  }
 0x8be   : > { %4692 = vmatprep.subr.bf16.mxu1 %v7278_v27  ;;  %v7323_v27 = vld [vmem:[%s9142_s11 + $0x40] sm:$0xff]   ;;  %v7324_v23 = vld [vmem:[%s9142_s11 + $0x90] sm:$0xff]  }
 0x8c1   : > { %4693 = vmatpush1.bf16.msra.mxu1 %v7276_v62 }
 0x8c2   : > { %4694 = vmatprep.subr.bf16.mxu1 %v7281_v63  ;;  %v7325_v63 = vld [vmem:[%s9142_s11 + $0x98] sm:$0xff]  }
 0x8c5   : > { %4695 = vmatpush1.bf16.msra.mxu1 %v7279_v0  ;;  %v7326_v0 = vld [vmem:[%s9142_s11 + $0xa0] sm:$0xff]  }
 0x8c6   : > { %4696 = vmatprep.subr.bf16.mxu1 %v7284_v1  ;;  %v7327_v1 = vld [vmem:[%s9142_s11 + $0xa8] sm:$0xff]  }
 0x8c9   : > { %4697 = vmatpush1.bf16.msra.mxu1 %v7282_v17  ;;  %v7328_v17 = vld [vmem:[%s9142_s11 + $0xb0] sm:$0xff]  }
 0x8ca   : > { %4698 = vmatprep.subr.bf16.mxu1 %v7287_v3  ;;  %v7360_v3 = vld [vmem:[%s9143_s12] sm:$0xff]  }
 0x8cd   : > { %4699 = vmatpush1.bf16.msra.mxu1 %v7285_v34  ;;  %v7329_v34 = vld [vmem:[%s9142_s11 + $0xb8] sm:$0xff]  }
 0x8ce   : > { %4700 = vmatprep.subr.bf16.mxu1 %v7290_v4  ;;  %v7330_v4 = vld [vmem:[%s9142_s11 + $0xc0] sm:$0xff]  }
 0x8d1   : > { %4701 = vmatpush1.bf16.msra.mxu1 %v7288_v5  ;;  %v7331_v5 = vld [vmem:[%s9142_s11 + $0xc8] sm:$0xff]  }
 0x8d2   : > { %4702 = vmatprep.subr.bf16.mxu1 %v7293_v33  ;;  %v7332_v33 = vld [vmem:[%s9142_s11 + $0xd0] sm:$0xff]  }
 0x8d5   : > { %4703 = vmatpush1.bf16.msra.mxu1 %v7291_v6 }
 0x8d6   : > { %4704 = vmatprep.subr.bf16.mxu1 %v7296_v7 }
 0x8d9   : > { %4705 = vmatpush1.bf16.msra.mxu1 %v7294_v8  ;;  %v7334_v8 = vld [vmem:[%s9142_s11 + $0xe0] sm:$0xff]  }
 0x8da   : > { %4706 = vmatprep.subr.bf16.mxu1 %v7299_v9  ;;  %v7335_v9 = vld [vmem:[%s9142_s11 + $0xe8] sm:$0xff]  }
 0x8dd   : > { %4707 = vmatpush1.bf16.msra.mxu1 %v7297_v11  ;;  %v7336_v11 = vld [vmem:[%s9142_s11 + $0xf0] sm:$0xff]  }
 0x8de   : > { %4708 = vmatprep.subr.bf16.mxu1 %v7302_v12  ;;  %v7337_v12 = vld [vmem:[%s9142_s11 + $0xf8] sm:$0xff]  }
 0x8e1   : > { %4709 = vmatpush1.bf16.msra.mxu1 %v7300_v14  ;;  %v7339_v14 = vld [vmem:[%s9142_s11 + $0x108] sm:$0xff]  }
 0x8e2   : > { %6318 = vmatprep.subr.msk.bf16.mxu1 %vm1356_vm3, %v6317_v15  ;;  %vm4744_vm3 = vcmask 97280   ;;  %v7340_v15 = vld [vmem:[%s9142_s11 + $0x110] sm:$0xff]  }
 0x8e5   : > { %4711 = vmatpush1.bf16.msra.mxu1 %v4685_v20  ;;  %v7342_v20 = vld [vmem:[%s9142_s11 + $0x120] sm:$0xff]  }
 0x8e8   : > { %4723 = vmatmul.mubr.bf16.vlgmr.msra.gmra.mrb[44].mxu1 %v4573_v24 }
 0x8e9   : > { %4786 = vmatprep.mubr.bf16.mxu1 %v7370_v2 }
 0x9bb   : > { %v4724_v37 = vpop.f32.mrb[44].mxu1 }
 0x9bc   : > { %v4726_v32 = vpop.f32.mrb[45].mxu1  ;;  %v4738_v39 = vmax.f32 %v4724_v37, 0.0  ;;  %v7351_v37 = vld [vmem:[%s9142_s11 + $0x168] sm:$0xff]  }
 0x9bd   : > { %v4728_v38 = vpop.f32.mrb[46].mxu1  ;;  %v4739_v40 = vmax.f32 %v4726_v32, 0.0 }
 0x9be   : > { %v4740_v22 = vmax.f32 %v4728_v38, 0.0  ;;  %v4730_v30 = vpop.f32.mrb[47].mxu1 }
 0x9bf   : > { %v4741_v41 = vmax.f32 %v4730_v30, 0.0  ;;  %v7354_v30 = vld [vmem:[%s9142_s11 + $0x180] sm:$0xff]  }
 0x9c0   : > { %v4742_v43 = vpack.c.bf16 %v4740_v22, %v4738_v39  ;;  %v7352_v39 = vld [vmem:[%s9142_s11 + $0x170] sm:$0xff]   ;;  %v7353_v22 = vld [vmem:[%s9142_s11 + $0x178] sm:$0xff]  }
 0x9c1   : > { %v4743_v44 = vpack.c.bf16 %v4741_v41, %v4739_v40  ;;  %v7355_v40 = vld [vmem:[%s9142_s11 + $0x188] sm:$0xff]   ;;  %v7356_v41 = vld [vmem:[%s9142_s11 + $0x190] sm:$0xff]  }
 0x9c2   : > { %v4749_v45 = vsel %vm3679_vm10, %v4742_v43, 0  ;;  %v7357_v43 = vld [vmem:[%s9142_s11 + $0x198] sm:$0xff]  }
 0x9c3   : > { %6320 = vmatprep.subr.msk.bf16.mxu1 %vm3679_vm10, %v4743_v44  ;;  %v7358_v44 = vld [vmem:[%s9142_s11 + $0x1a0] sm:$0xff]  }
 0x9c4   : > { %4755 = vmatpush1.bf16.msra.mxu1 %v4749_v45  ;;  %v7359_v45 = vld [vmem:[%s9142_s11 + $0x1a8] sm:$0xff]  }
 0x9c5   : > { %6614 = vmatprep.subr.bf16.mxu1 %v7372_v10 }
 0x9c7   : > { %6321 = vmatmul.mubr.msk.bf16.vlgmr.msra.gmra.mrb[48].mxu1 %vm4744_vm3, %v4737_v46 }
 0x9c8   : > { %6618 = vmatprep.mubr.msk.bf16.mxu1 %vm7373_vm12, %v7372_v10  ;;  %6615 = vmatpush3.bf16.msra.mxu1 %v7360_v3 }
 0x9c9   : > { %6616 = vmatprep.subr.bf16.mxu1 %v7372_v10  ;;  %v7333_v10 = vld [vmem:[%s9142_s11 + $0xd8] sm:$0xff]  }
 0x9cc   : > { %6617 = vmatpush3.bf16.msra.mxu1 %v7361_v48 }
 0xa9a   : > { %v4788_v49 = vpop.f32.mrb[48].mxu1 }
 0xa9b   : > { %v8910_v50 = vpack.c.bf16 %v4788_v49, %v4788_v49  ;;  %v4790_v29 = vpop.f32.mrb[49].mxu1 }
 0xa9c   : > { %v8912_v51 = vpack.c.bf16 %v4790_v29, %v4790_v29  ;;  %v4792_v42 = vpop.f32.mrb[50].mxu1 }
 0xa9d   : > { %v4793_v52 = vpop.f32.mrb[51].mxu1  ;;  %v8921_v55 = vshrl.u32 %v8910_v50, 16  ;;  %v5056_v6 = vrot.slane %v8910_v50, 1  ;;  %v5296_v32 = vrot.slane %v8910_v50, 2 }
 0xa9e   : > { %v8915_v53 = vshrl.u32 %v8912_v51, 16  ;;  %v5057_v62 = vrot.slane %v8912_v51, 1  ;;  %v5297_v24 = vrot.slane %v8912_v51, 2 }
 0xa9f   : > { %v5176_v21 = vrot.slane %v8921_v55, 1  ;;  %v5416_v46 = vrot.slane %v8921_v55, 2 }
 0xaa0   : > { %6349 = vmatprep.mubr.msk.bf16.mxu0 %vm4895_vm5, %v8915_v53  ;;  %v5177_v7 = vrot.slane %v8915_v53, 1  ;;  %v5417_v38 = vrot.slane %v8915_v53, 2 }
 0xaa1   : > { %4932 = vmatmul.mubr.bf16.vlgmr.msra.gmra.mrb[68].mxu0 %v8921_v55 }
 0xaa2   : > { %4996 = vmatpush1.bf16.msra.mxu0 %v7315_v54  ;;  %6359 = vmatprep.mubr.msk.bf16.mxu0 %vm4895_vm5, %v8912_v51 }
 0xaa3   : > { %4997 = vmatprep.subr.bf16.mxu0 %v7370_v2 }
 0xaa6   : > { %4998 = vmatpush1.bf16.msra.mxu0 %v7316_v47 }
 0xaa7   : > { %4999 = vmatprep.subr.bf16.mxu0 %v7370_v2 }
 0xaaa   : > { %5000 = vmatpush1.bf16.msra.mxu0 %v7317_v56 }
 0xaab   : > { %5001 = vmatprep.subr.bf16.mxu0 %v7370_v2 }
 0xaae   : > { %5002 = vmatpush1.bf16.msra.mxu0 %v7318_v57 }
 0xaaf   : > { %5003 = vmatprep.subr.bf16.mxu0 %v7370_v2 }
 0xab2   : > { %5004 = vmatpush1.bf16.msra.mxu0 %v7319_v59 }
 0xab3   : > { %5005 = vmatprep.subr.bf16.mxu0 %v7370_v2 }
 0xab6   : > { %5006 = vmatpush1.bf16.msra.mxu0 %v7320_v60 }
 0xab7   : > { %5007 = vmatprep.subr.bf16.mxu0 %v7370_v2 }
 0xaba   : > { %5008 = vmatpush1.bf16.msra.mxu0 %v7321_v61 }
 0xabb   : > { %5009 = vmatprep.subr.bf16.mxu0 %v7370_v2 }
 0xabe   : > { %5010 = vmatpush1.bf16.msra.mxu0 %v7322_v58 }
 0xabf   : > { %5011 = vmatprep.subr.bf16.mxu0 %v7370_v2 }
 0xac2   : > { %5012 = vmatpush1.bf16.msra.mxu0 %v7323_v27 }
 0xac3   : > { %5116 = vmatprep.subr.bf16.mxu0 %v7370_v2 }
 0xac5   : > { %5028 = vmatmul.mubr.bf16.vlgmr.msra.gmra.mrb[68].mxu0 %v8910_v50 }
 0xac6   : > { %5117 = vmatpush1.bf16.msra.mxu0 %v7324_v23  ;;  %6387 = vmatprep.mubr.msk.bf16.mxu0 %vm4895_vm5, %v5057_v62 }
 0xac7   : > { %5118 = vmatprep.subr.bf16.mxu0 %v7370_v2 }
 0xaca   : > { %5119 = vmatpush1.bf16.msra.mxu0 %v7325_v63 }
 0xacb   : > { %5120 = vmatprep.subr.bf16.mxu0 %v7370_v2 }
 0xace   : > { %5121 = vmatpush1.bf16.msra.mxu0 %v7326_v0 }
 0xacf   : > { %5122 = vmatprep.subr.bf16.mxu0 %v7370_v2 }
 0xad2   : > { %5123 = vmatpush1.bf16.msra.mxu0 %v7327_v1 }
 0xad3   : > { %5124 = vmatprep.subr.bf16.mxu0 %v7370_v2 }
 0xad6   : > { %5125 = vmatpush1.bf16.msra.mxu0 %v7328_v17 }
 0xad7   : > { %5126 = vmatprep.subr.bf16.mxu0 %v7370_v2 }
 0xada   : > { %5127 = vmatpush1.bf16.msra.mxu0 %v7329_v34 }
 0xadb   : > { %5128 = vmatprep.subr.bf16.mxu0 %v7370_v2 }
 0xade   : > { %5129 = vmatpush1.bf16.msra.mxu0 %v7330_v4 }
 0xadf   : > { %5130 = vmatprep.subr.bf16.mxu0 %v7370_v2 }
 0xae2   : > { %5131 = vmatpush1.bf16.msra.mxu0 %v7331_v5 }
 0xae3   : > { %5132 = vmatprep.subr.bf16.mxu0 %v7370_v2 }
 0xae6   : > { %5133 = vmatpush1.bf16.msra.mxu0 %v7332_v33 }
 0xae7   : > { %5236 = vmatprep.subr.bf16.mxu0 %v7370_v2 }
 0xae9   : > { %5149 = vmatmul.mubr.bf16.vlgmr.msra.gmra.mrb[68].mxu0 %v5056_v6 }
 0xaea   : > { %5237 = vmatpush1.bf16.msra.mxu0 %v7333_v10  ;;  %6415 = vmatprep.mubr.msk.bf16.mxu0 %vm4895_vm5, %v5177_v7 }
 0xaeb   : > { %5238 = vmatprep.subr.bf16.mxu0 %v7370_v2 }
 0xaee   : > { %5239 = vmatpush1.bf16.msra.mxu0 %v7334_v8 }
 0xaef   : > { %5240 = vmatprep.subr.bf16.mxu0 %v7370_v2 }
 0xaf2   : > { %5241 = vmatpush1.bf16.msra.mxu0 %v7335_v9 }
 0xaf3   : > { %5242 = vmatprep.subr.bf16.mxu0 %v7370_v2 }
 0xaf6   : > { %5243 = vmatpush1.bf16.msra.mxu0 %v7336_v11 }
 0xaf7   : > { %5244 = vmatprep.subr.bf16.mxu0 %v7370_v2 }
 0xafa   : > { %5245 = vmatpush1.bf16.msra.mxu0 %v7337_v12 }
 0xafb   : > { %5246 = vmatprep.subr.bf16.mxu0 %v7370_v2 }
 0xafe   : > { %5247 = vmatpush1.bf16.msra.mxu0 %v7338_v13 }
 0xaff   : > { %5248 = vmatprep.subr.bf16.mxu0 %v7370_v2 }
 0xb02   : > { %5249 = vmatpush1.bf16.msra.mxu0 %v7339_v14 }
 0xb03   : > { %5250 = vmatprep.subr.bf16.mxu0 %v7370_v2 }
 0xb06   : > { %5251 = vmatpush1.bf16.msra.mxu0 %v7340_v15 }
 0xb07   : > { %5252 = vmatprep.subr.bf16.mxu0 %v7370_v2 }
 0xb0a   : > { %5253 = vmatpush1.bf16.msra.mxu0 %v7341_v16 }
 0xb0b   : > { %5356 = vmatprep.subr.bf16.mxu0 %v7370_v2 }
 0xb0d   : > { %5269 = vmatmul.mubr.bf16.vlgmr.msra.gmra.mrb[68].mxu0 %v5176_v21 }
 0xb0e   : > { %5357 = vmatpush1.bf16.msra.mxu0 %v7342_v20  ;;  %6443 = vmatprep.mubr.msk.bf16.mxu0 %vm4895_vm5, %v5297_v24 }
 0xb0f   : > { %5358 = vmatprep.subr.bf16.mxu0 %v7370_v2 }
 0xb12   : > { %5359 = vmatpush1.bf16.msra.mxu0 %v7343_v25 }
 0xb13   : > { %5360 = vmatprep.subr.bf16.mxu0 %v7370_v2 }
 0xb16   : > { %5361 = vmatpush1.bf16.msra.mxu0 %v7344_v19 }
 0xb17   : > { %5362 = vmatprep.subr.bf16.mxu0 %v7370_v2 }
 0xb1a   : > { %5363 = vmatpush1.bf16.msra.mxu0 %v7345_v18 }
 0xb1b   : > { %5364 = vmatprep.subr.bf16.mxu0 %v7370_v2 }
 0xb1e   : > { %5365 = vmatpush1.bf16.msra.mxu0 %v7346_v26 }
 0xb1f   : > { %5366 = vmatprep.subr.bf16.mxu0 %v7370_v2 }
 0xb22   : > { %5367 = vmatpush1.bf16.msra.mxu0 %v7347_v28 }
 0xb23   : > { %5368 = vmatprep.subr.bf16.mxu0 %v7370_v2 }
 0xb26   : > { %5369 = vmatpush1.bf16.msra.mxu0 %v7348_v31 }
 0xb27   : > { %5370 = vmatprep.subr.bf16.mxu0 %v7370_v2 }
 0xb2a   : > { %5371 = vmatpush1.bf16.msra.mxu0 %v7349_v35 }
 0xb2b   : > { %5372 = vmatprep.subr.bf16.mxu0 %v7370_v2 }
 0xb2e   : > { %5373 = vmatpush1.bf16.msra.mxu0 %v7350_v36 }
 0xb2f   : > { %5476 = vmatprep.subr.bf16.mxu0 %v7370_v2 }
 0xb31   : > { %5389 = vmatmul.mubr.bf16.vlgmr.msra.gmra.mrb[68].mxu0 %v5296_v32 }
 0xb32   : > { %5477 = vmatpush1.bf16.msra.mxu0 %v7351_v37  ;;  %6471 = vmatprep.mubr.msk.bf16.mxu0 %vm4895_vm5, %v5417_v38 }
 0xb33   : > { %5478 = vmatprep.subr.bf16.mxu0 %v7370_v2 }
 0xb36   : > { %5479 = vmatpush1.bf16.msra.mxu0 %v7352_v39 }
 0xb37   : > { %5480 = vmatprep.subr.bf16.mxu0 %v7370_v2 }
 0xb3a   : > { %5481 = vmatpush1.bf16.msra.mxu0 %v7353_v22 }
 0xb3b   : > { %5482 = vmatprep.subr.bf16.mxu0 %v7370_v2 }
 0xb3e   : > { %5483 = vmatpush1.bf16.msra.mxu0 %v7354_v30 }
 0xb3f   : > { %5484 = vmatprep.subr.bf16.mxu0 %v7370_v2 }
 0xb42   : > { %5485 = vmatpush1.bf16.msra.mxu0 %v7355_v40 }
 0xb43   : > { %5486 = vmatprep.subr.bf16.mxu0 %v7370_v2 }
 0xb46   : > { %5487 = vmatpush1.bf16.msra.mxu0 %v7356_v41 }
 0xb47   : > { %5488 = vmatprep.subr.bf16.mxu0 %v7370_v2 }
 0xb4a   : > { %5489 = vmatpush1.bf16.msra.mxu0 %v7357_v43 }
 0xb4b   : > { %5490 = vmatprep.subr.bf16.mxu0 %v7370_v2 }
 0xb4e   : > { %5491 = vmatpush1.bf16.msra.mxu0 %v7358_v44 }
 0xb4f   : > { %5492 = vmatprep.subr.bf16.mxu0 %v7370_v2 }
 0xb52   : > { %5493 = vmatpush1.bf16.msra.mxu0 %v7359_v45 }
 0xb55   : > { %5509 = vmatmul.mubr.bf16.vlgmr.msra.gmra.mrb[68].mxu0 %v5416_v46 }
 0xc28   : > { %v5510_v49 = vpop.f32.mrb[68].mxu0 }
 0xc29   : > { %v5517_v50 = vmax.f32 %v5510_v49, 0.0  ;;  %v5512_v29 = vpop.f32.mrb[69].mxu0 }
 0xc2a   : > { %v5513_v51 = vpop.f32.mrb[70].mxu0 }
 0xc2b   : > { %v5518_v42 = vpack.c.bf16 %v5517_v50, %v5517_v50  ;;  %v5514_v52 = vpop.f32.mrb[71].mxu0 }
 0xc2d   : > { %6619 = vmatmul.mubr.msk.bf16.vlgmr.msra.gmra.mrb[52].mxu1 %vm5535_vm6, %v5518_v42 }
 0xd00   : > { %v5573_v2 = vpop.f32.mrb[52].mxu1 }
 0xd01   : > { %v5579_v53 = vmax.f32 %v5573_v2, 0.0  ;;  %v6620_v54 = vpop.f32.mrb[53].mxu1 }
 0xd02   : > { %v5576_v55 = vpop.f32.mrb[54].mxu1 }
 0xd03   : > { %5580 = vst [vmem:[%s436_s19] sm:$0x1] %v5579_v53  ;;  %v6621_v47 = vpop.f32.mrb[55].mxu1 }
 0xd04 PF: > { %s23_s25 = sadd.s32 1, %s7368_s25  }
 0xd05   : > { %p20_p4 = scmp.ge.s32.totalorder %s23_s25, 4  }
 0xd07   :  { %22 = sbr.rel (!%p20_p4) target bundleno = 1 (0x1), region = 115 }

</bundles_post_ra>
